<compile_context>
chip_gen: v7x
topology: tpu7x:2x2x1
jax: 0.10.0
libtpu: 0.0.40
codegen_flags: <defaults>
</compile_context>

<pallas_src>
import jax
import jax.numpy as jnp
from jax.experimental import pallas as pl
from jax.experimental.pallas import tpu as pltpu

L_IN = 240
C_IN = 2
K1 = 5
L1 = L_IN - K1 + 1        # 236 conv1 output positions
LB = 16                   # per-sample lanes per residue block (13..15 valid)
N_OUT = 481 * 2           # 962
N_PAD = 1024              # lane-dense output width (multiple of 128)
BLOCK_B = 128             # max batch tile (multiple of 8)


def _kernel(a1_ref,
            w1_ref, b1_ref, w2_ref, b2_ref, w3_ref, b3_ref, w4_ref, b4_ref,
            wf1_ref, bf1_ref, wf2_ref, bf2_ref,
            out_ref,
            s2, s3, s4, s5, t_ref, slab_ref):
    f32 = jnp.float32
    tb = out_ref.shape[0]          # batch tile
    SB = LB * tb                   # lanes per residue block (multiple of 128)

    # Zero the 128-lane guard column of s4: the "+1 lane offset" tap of the
    # last residue block in stage 4 reads one lane past block 1; the guard
    # keeps that read in-bounds and deterministic (it only ever lands in a
    # garbage tail position that is never consumed as valid data).
    s4[:, 2 * SB:] = jnp.zeros((s4.shape[0], 128), f32)

    # ---------- stage 1: conv1 (im2col, K=10) + ReLU + pool, fused ----------
    # a1_ref[c] is (10, SB): im2col'd conv1 input for output positions
    # congruent to c (mod 16); lane = b_local*16 + m <-> position c + 16*m.
    w1 = w1_ref[...]
    b1 = b1_ref[...]
    for rp in range(8):            # pooled-output residue blocks (mod 8)
        e = jnp.dot(w1, a1_ref[2 * rp], preferred_element_type=f32)
        o = jnp.dot(w1, a1_ref[2 * rp + 1], preferred_element_type=f32)
        # max(relu(e+b), relu(o+b)) == relu(max(e, o) + b)
        s2[:, rp * SB:(rp + 1) * SB] = jnp.maximum(jnp.maximum(e, o) + b1, 0.0)

    # ---------- stages 2-4: conv(K=3) + ReLU + pool, residue-block layout ----
    def conv_pool(src, dst, w_ref, b_ref, R):
        # src: (Cin, R*SB [+guard]) split by input position mod R.
        # dst: (Cout, (R//2)*SB ...) split by pooled position mod R//2.
        w = w_ref[...]             # (K, Cout, Cin)
        b = b_ref[...]             # (Cout, 1)
        for rp in range(R // 2):
            raw = []
            for t in range(2):     # the two conv residues feeding pooled rp
                c = 2 * rp + t
                acc = None
                for j in range(w.shape[0]):
                    idx = c + j
                    # input block (idx mod R); "+1 lane" when the tap wraps.
                    off = (idx % R) * SB + (1 if idx >= R else 0)
                    d = jnp.dot(w[j], src[:, off:off + SB],
                                preferred_element_type=f32)
                    acc = d if acc is None else acc + d
                raw.append(acc)
            dst[:, rp * SB:(rp + 1) * SB] = jnp.maximum(
                jnp.maximum(raw[0], raw[1]) + b, 0.0)

    conv_pool(s2, s3, w2_ref, b2_ref, 8)   # conv2 + pool -> (32, 4*SB)
    conv_pool(s3, s4, w3_ref, b3_ref, 4)   # conv3 + pool -> (64, 2*SB)
    conv_pool(s4, s5, w4_ref, b4_ref, 2)   # conv4 + pool -> (64, SB)

    # dropout4 / dropout2 are identity in eval-mode forward.
    # TODO(synk): training-mode dropout would need pltpu.prng_* masking.

    # ---------- fc head: transpose -> compact slab -> two dense matmuls -----
    t_ref[...] = jnp.transpose(s5[...])          # (SB, 64); row = b*16 + l
    for l in range(13):                          # 13 valid positions / sample
        slab_ref[:, l * 64:(l + 1) * 64] = t_ref[pl.ds(l, tb, stride=LB), :]
    y1 = jnp.maximum(
        jnp.dot(slab_ref[...], wf1_ref[...], preferred_element_type=f32)
        + bf1_ref[...], 0.0)                     # (tb, 64)
    out_ref[...] = (jnp.dot(y1, wf2_ref[...], preferred_element_type=f32)
                    + bf2_ref[...])              # (tb, 1024) lane-dense


def _round_up(x, m):
    return -(-x // m) * m


def init_params(key):
    """Deterministic synthetic parameters, in PyTorch layouts."""
    ks = jax.random.split(key, 12)

    def normal(k, shape, scale):
        return scale * jax.random.normal(k, shape, jnp.float32)

    return {
        "conv1_w": normal(ks[0], (32, 2, 5), 0.30),
        "conv1_b": normal(ks[1], (32,), 0.10),
        "conv2_w": normal(ks[2], (32, 32, 3), 0.10),
        "conv2_b": normal(ks[3], (32,), 0.10),
        "conv3_w": normal(ks[4], (64, 32, 3), 0.10),
        "conv3_b": normal(ks[5], (64,), 0.10),
        "conv4_w": normal(ks[6], (64, 64, 3), 0.08),
        "conv4_b": normal(ks[7], (64,), 0.10),
        "fc1_w": normal(ks[8], (64, 13 * 64), 0.03),
        "fc1_b": normal(ks[9], (64,), 0.10),
        "fc2_w": normal(ks[10], (N_OUT, 64), 0.05),
        "fc2_b": normal(ks[11], (N_OUT,), 0.10),
    }


@jax.jit
def conv_se_cont_forward(x_ncl, params):
    """x_ncl: (B, 2, 240) float32 (PyTorch NCL). Returns (B, 2, 481)."""
    B, cin, lin = x_ncl.shape
    assert cin == C_IN and lin == L_IN

    # Batch tile: multiple of 8 (so SB = 16*tb is a multiple of 128); keep the
    # 1-D batch grid at >=2 steps whenever B allows so v7x megacore can split
    # it across both TensorCores.
    tb = min(BLOCK_B, max(8, _round_up(B, 16) // 2))
    b_pad = _round_up(B, tb)
    if b_pad != B:
        x_ncl = jnp.pad(x_ncl, ((0, b_pad - B), (0, 0), (0, 0)))
    SB = LB * tb

    # --- conv1 im2col, de-interleaved by output position mod 16 -------------
    # a1[c, j*2+cin, b*16+m] = x[b, cin, (c + 16*m) + j]  (0 beyond 235).
    taps = []
    for j in range(K1):
        xj = x_ncl[:, :, j:j + L1]                        # (Bp, 2, 236)
        taps.append(jnp.pad(xj, ((0, 0), (0, 0), (0, 256 - L1))))
    a1 = jnp.stack(taps, axis=1)                          # (Bp, 5, 2, 256)
    a1 = a1.reshape(b_pad, K1, C_IN, 16, 16)              # [b, j, cin, m, c]
    a1 = jnp.transpose(a1, (4, 1, 2, 0, 3))               # [c, j, cin, b, m]
    a1 = a1.reshape(16, K1 * C_IN, b_pad * LB)

    # --- weights: PyTorch layouts -> kernel layouts --------------------------
    w1 = jnp.transpose(params["conv1_w"], (0, 2, 1)).reshape(32, K1 * C_IN)
    b1 = params["conv1_b"].reshape(32, 1)
    w2 = jnp.transpose(params["conv2_w"], (2, 0, 1))      # (3, 32, 32)
    b2 = params["conv2_b"].reshape(32, 1)
    w3 = jnp.transpose(params["conv3_w"], (2, 0, 1))      # (3, 64, 32)
    b3 = params["conv3_b"].reshape(64, 1)
    w4 = jnp.transpose(params["conv4_w"], (2, 0, 1))      # (3, 64, 64)
    b4 = params["conv4_b"].reshape(64, 1)
    # fc1: PyTorch flattens (C=64, L=13) channel-major (f = c*13 + l); the
    # kernel's slab uses f' = l*64 + c.
    wf1 = jnp.transpose(params["fc1_w"].reshape(64, 64, 13),
                        (2, 1, 0)).reshape(13 * 64, 64)
    bf1 = params["fc1_b"].reshape(1, 64)
    wf2 = jnp.pad(jnp.transpose(params["fc2_w"], (1, 0)),
                  ((0, 0), (0, N_PAD - N_OUT)))           # (64, 1024)
    bf2 = jnp.pad(params["fc2_b"], (0, N_PAD - N_OUT)).reshape(1, N_PAD)

    weights = (w1, b1, w2, b2, w3, b3, w4, b4, wf1, bf1, wf2, bf2)

    def full(a):  # whole-array block, same block every grid step
        return pl.BlockSpec(a.shape, lambda i, nd=a.ndim: (0,) * nd)

    in_specs = [pl.BlockSpec((16, K1 * C_IN, SB), lambda i: (0, 0, i))]
    in_specs += [full(t) for t in weights]

    flops_per_sample = 2 * (256 * 10 * 32 + 8 * 16 * 3 * 32 * 32
                            + 4 * 16 * 3 * 32 * 64 + 2 * 16 * 3 * 64 * 64
                            + 832 * 64 + 64 * N_PAD)
    cost = pl.CostEstimate(
        flops=flops_per_sample * b_pad,
        transcendentals=0,
        bytes_accessed=b_pad * (16 * 10 * LB * 4 + N_PAD * 4))

    out = pl.pallas_call(
        _kernel,
        out_shape=jax.ShapeDtypeStruct((b_pad, N_PAD), jnp.float32),
        grid_spec=pltpu.PrefetchScalarGridSpec(
            num_scalar_prefetch=0,
            grid=(b_pad // tb,),
            in_specs=in_specs,
            out_specs=pl.BlockSpec((tb, N_PAD), lambda i: (i, 0)),
            scratch_shapes=[
                pltpu.VMEM((32, 8 * SB), jnp.float32),         # pool1 output
                pltpu.VMEM((32, 4 * SB), jnp.float32),         # pool2 output
                pltpu.VMEM((64, 2 * SB + 128), jnp.float32),   # pool3 (+guard)
                pltpu.VMEM((64, SB), jnp.float32),             # pool4 output
                pltpu.VMEM((SB, 64), jnp.float32),             # pool4^T
                pltpu.VMEM((tb, 13 * 64), jnp.float32),        # fc1 input slab
            ],
        ),
        compiler_params=pltpu.CompilerParams(
            dimension_semantics=("parallel",),
            vmem_limit_bytes=32 * 1024 * 1024),
        cost_estimate=cost,
    )(a1, *weights)

    return out[:B, :N_OUT].reshape(B, 2, 481)


if __name__ == "__main__":
    key = jax.random.PRNGKey(0)
    pkey, xkey = jax.random.split(key)
    params = init_params(pkey)
    x = jax.random.normal(xkey, (2, C_IN, L_IN), jnp.float32)  # (B, 2, 240)
    y = conv_se_cont_forward(x, params)
    jax.block_until_ready(y)
    assert y.shape == (2, 2, 481) and y.dtype == jnp.float32
    assert bool(jnp.all(jnp.isfinite(y)))
    print("KERNEL_OK")
</pallas_src>

<mosaic_0001>
module attributes {stable_mosaic.version = 11 : i64} {
  func.func @_kernel(%arg0: i32, %arg1: memref<16x10x128xf32, #tpu.memory_space<vmem>>, %arg2: memref<32x10xf32, #tpu.memory_space<vmem>>, %arg3: memref<32x1xf32, #tpu.memory_space<vmem>>, %arg4: memref<3x32x32xf32, #tpu.memory_space<vmem>>, %arg5: memref<32x1xf32, #tpu.memory_space<vmem>>, %arg6: memref<3x64x32xf32, #tpu.memory_space<vmem>>, %arg7: memref<64x1xf32, #tpu.memory_space<vmem>>, %arg8: memref<3x64x64xf32, #tpu.memory_space<vmem>>, %arg9: memref<64x1xf32, #tpu.memory_space<vmem>>, %arg10: memref<832x64xf32, #tpu.memory_space<vmem>>, %arg11: memref<1x64xf32, #tpu.memory_space<vmem>>, %arg12: memref<64x1024xf32, #tpu.memory_space<vmem>>, %arg13: memref<1x1024xf32, #tpu.memory_space<vmem>>, %arg14: memref<8x1024xf32, #tpu.memory_space<vmem>>, %arg15: memref<32x1024xf32, #tpu.memory_space<vmem>>, %arg16: memref<32x512xf32, #tpu.memory_space<vmem>>, %arg17: memref<64x384xf32, #tpu.memory_space<vmem>>, %arg18: memref<64x128xf32, #tpu.memory_space<vmem>>, %arg19: memref<128x64xf32, #tpu.memory_space<vmem>>, %arg20: memref<8x832xf32, #tpu.memory_space<vmem>>) attributes {dimension_semantics = [#tpu.dimension_semantics<parallel>], iteration_bounds = array<i64: 1>, scalar_prefetch = 0 : i64, scratch_operands = 6 : i64, tpu.core_type = #tpu.core_type<tc>, window_params = [{transform_indices = @transform_0, window_bounds = array<i64: 16, 10, 128>}, {pipeline_mode = #tpu.pipeline_mode<synchronous>, transform_indices = @transform_1, window_bounds = array<i64: 32, 10>}, {pipeline_mode = #tpu.pipeline_mode<synchronous>, transform_indices = @transform_2, window_bounds = array<i64: 32, 1>}, {pipeline_mode = #tpu.pipeline_mode<synchronous>, transform_indices = @transform_3, window_bounds = array<i64: 3, 32, 32>}, {pipeline_mode = #tpu.pipeline_mode<synchronous>, transform_indices = @transform_4, window_bounds = array<i64: 32, 1>}, {pipeline_mode = #tpu.pipeline_mode<synchronous>, transform_indices = @transform_5, window_bounds = array<i64: 3, 64, 32>}, {pipeline_mode = #tpu.pipeline_mode<synchronous>, transform_indices = @transform_6, window_bounds = array<i64: 64, 1>}, {pipeline_mode = #tpu.pipeline_mode<synchronous>, transform_indices = @transform_7, window_bounds = array<i64: 3, 64, 64>}, {pipeline_mode = #tpu.pipeline_mode<synchronous>, transform_indices = @transform_8, window_bounds = array<i64: 64, 1>}, {pipeline_mode = #tpu.pipeline_mode<synchronous>, transform_indices = @transform_9, window_bounds = array<i64: 832, 64>}, {pipeline_mode = #tpu.pipeline_mode<synchronous>, transform_indices = @transform_10, window_bounds = array<i64: 1, 64>}, {pipeline_mode = #tpu.pipeline_mode<synchronous>, transform_indices = @transform_11, window_bounds = array<i64: 64, 1024>}, {pipeline_mode = #tpu.pipeline_mode<synchronous>, transform_indices = @transform_12, window_bounds = array<i64: 1, 1024>}, {transform_indices = @transform_13, window_bounds = array<i64: 8, 1024>}]} {
    %cst = arith.constant 0.000000e+00 : f32
    %0 = vector.broadcast %cst : f32 to vector<64x128xf32>
    %c0 = arith.constant 0 : index
    %c256 = arith.constant 256 : index
    %1 = vector.load %arg17[%c0, %c256] : memref<64x384xf32, #tpu.memory_space<vmem>>, vector<64x128xf32>
    tpu.vector_store %arg17[%c0, %c256], %0 {strides = array<i32>} : memref<64x384xf32, #tpu.memory_space<vmem>>, vector<64x128xf32>,
    %c0_0 = arith.constant 0 : index
    %c0_1 = arith.constant 0 : index
    %2 = vector.load %arg2[%c0_0, %c0_1] : memref<32x10xf32, #tpu.memory_space<vmem>>, vector<32x10xf32>
    %c0_2 = arith.constant 0 : index
    %c0_3 = arith.constant 0 : index
    %3 = vector.load %arg3[%c0_2, %c0_3] : memref<32x1xf32, #tpu.memory_space<vmem>>, vector<32x1xf32>
    %c0_4 = arith.constant 0 : index
    %c0_5 = arith.constant 0 : index
    %c0_6 = arith.constant 0 : index
    %4 = vector.load %arg1[%c0_4, %c0_5, %c0_6] : memref<16x10x128xf32, #tpu.memory_space<vmem>>, vector<1x10x128xf32>
    %5 = vector.shape_cast %4 : vector<1x10x128xf32> to vector<10x128xf32>
    %cst_7 = arith.constant dense<0.000000e+00> : vector<32x128xf32>
    %6 = tpu.matmul %2, %5, %cst_7 {dimension_numbers = #tpu.dot_dimension_numbers<[1], [0], [0], [1], [0, 0, 1, 1], [], []>} : vector<32x10xf32>, vector<10x128xf32>, vector<32x128xf32> -> vector<32x128xf32>
    %c1 = arith.constant 1 : index
    %c0_8 = arith.constant 0 : index
    %c0_9 = arith.constant 0 : index
    %7 = vector.load %arg1[%c1, %c0_8, %c0_9] : memref<16x10x128xf32, #tpu.memory_space<vmem>>, vector<1x10x128xf32>
    %8 = vector.shape_cast %7 : vector<1x10x128xf32> to vector<10x128xf32>
    %cst_10 = arith.constant dense<0.000000e+00> : vector<32x128xf32>
    %9 = tpu.matmul %2, %8, %cst_10 {dimension_numbers = #tpu.dot_dimension_numbers<[1], [0], [0], [1], [0, 0, 1, 1], [], []>} : vector<32x10xf32>, vector<10x128xf32>, vector<32x128xf32> -> vector<32x128xf32>
    %10 = arith.maximumf %6, %9 : vector<32x128xf32>
    %11 = vector.broadcast %3 : vector<32x1xf32> to vector<32x128xf32>
    %12 = arith.addf %10, %11 : vector<32x128xf32>
    %cst_11 = arith.constant 0.000000e+00 : f32
    %13 = vector.broadcast %cst_11 : f32 to vector<32x128xf32>
    %14 = arith.maximumf %12, %13 : vector<32x128xf32>
    %c0_12 = arith.constant 0 : index
    %c0_13 = arith.constant 0 : index
    %15 = vector.load %arg15[%c0_12, %c0_13] : memref<32x1024xf32, #tpu.memory_space<vmem>>, vector<32x128xf32>
    tpu.vector_store %arg15[%c0_12, %c0_13], %14 {strides = array<i32>} : memref<32x1024xf32, #tpu.memory_space<vmem>>, vector<32x128xf32>,
    %c2 = arith.constant 2 : index
    %c0_14 = arith.constant 0 : index
    %c0_15 = arith.constant 0 : index
    %16 = vector.load %arg1[%c2, %c0_14, %c0_15] : memref<16x10x128xf32, #tpu.memory_space<vmem>>, vector<1x10x128xf32>
    %17 = vector.shape_cast %16 : vector<1x10x128xf32> to vector<10x128xf32>
    %cst_16 = arith.constant dense<0.000000e+00> : vector<32x128xf32>
    %18 = tpu.matmul %2, %17, %cst_16 {dimension_numbers = #tpu.dot_dimension_numbers<[1], [0], [0], [1], [0, 0, 1, 1], [], []>} : vector<32x10xf32>, vector<10x128xf32>, vector<32x128xf32> -> vector<32x128xf32>
    %c3 = arith.constant 3 : index
    %c0_17 = arith.constant 0 : index
    %c0_18 = arith.constant 0 : index
    %19 = vector.load %arg1[%c3, %c0_17, %c0_18] : memref<16x10x128xf32, #tpu.memory_space<vmem>>, vector<1x10x128xf32>
    %20 = vector.shape_cast %19 : vector<1x10x128xf32> to vector<10x128xf32>
    %cst_19 = arith.constant dense<0.000000e+00> : vector<32x128xf32>
    %21 = tpu.matmul %2, %20, %cst_19 {dimension_numbers = #tpu.dot_dimension_numbers<[1], [0], [0], [1], [0, 0, 1, 1], [], []>} : vector<32x10xf32>, vector<10x128xf32>, vector<32x128xf32> -> vector<32x128xf32>
    %22 = arith.maximumf %18, %21 : vector<32x128xf32>
    %23 = vector.broadcast %3 : vector<32x1xf32> to vector<32x128xf32>
    %24 = arith.addf %22, %23 : vector<32x128xf32>
    %cst_20 = arith.constant 0.000000e+00 : f32
    %25 = vector.broadcast %cst_20 : f32 to vector<32x128xf32>
    %26 = arith.maximumf %24, %25 : vector<32x128xf32>
    %c0_21 = arith.constant 0 : index
    %c128 = arith.constant 128 : index
    %27 = vector.load %arg15[%c0_21, %c128] : memref<32x1024xf32, #tpu.memory_space<vmem>>, vector<32x128xf32>
    tpu.vector_store %arg15[%c0_21, %c128], %26 {strides = array<i32>} : memref<32x1024xf32, #tpu.memory_space<vmem>>, vector<32x128xf32>,
    %c4 = arith.constant 4 : index
    %c0_22 = arith.constant 0 : index
    %c0_23 = arith.constant 0 : index
    %28 = vector.load %arg1[%c4, %c0_22, %c0_23] : memref<16x10x128xf32, #tpu.memory_space<vmem>>, vector<1x10x128xf32>
    %29 = vector.shape_cast %28 : vector<1x10x128xf32> to vector<10x128xf32>
    %cst_24 = arith.constant dense<0.000000e+00> : vector<32x128xf32>
    %30 = tpu.matmul %2, %29, %cst_24 {dimension_numbers = #tpu.dot_dimension_numbers<[1], [0], [0], [1], [0, 0, 1, 1], [], []>} : vector<32x10xf32>, vector<10x128xf32>, vector<32x128xf32> -> vector<32x128xf32>
    %c5 = arith.constant 5 : index
    %c0_25 = arith.constant 0 : index
    %c0_26 = arith.constant 0 : index
    %31 = vector.load %arg1[%c5, %c0_25, %c0_26] : memref<16x10x128xf32, #tpu.memory_space<vmem>>, vector<1x10x128xf32>
    %32 = vector.shape_cast %31 : vector<1x10x128xf32> to vector<10x128xf32>
    %cst_27 = arith.constant dense<0.000000e+00> : vector<32x128xf32>
    %33 = tpu.matmul %2, %32, %cst_27 {dimension_numbers = #tpu.dot_dimension_numbers<[1], [0], [0], [1], [0, 0, 1, 1], [], []>} : vector<32x10xf32>, vector<10x128xf32>, vector<32x128xf32> -> vector<32x128xf32>
    %34 = arith.maximumf %30, %33 : vector<32x128xf32>
    %35 = vector.broadcast %3 : vector<32x1xf32> to vector<32x128xf32>
    %36 = arith.addf %34, %35 : vector<32x128xf32>
    %cst_28 = arith.constant 0.000000e+00 : f32
    %37 = vector.broadcast %cst_28 : f32 to vector<32x128xf32>
    %38 = arith.maximumf %36, %37 : vector<32x128xf32>
    %c0_29 = arith.constant 0 : index
    %c256_30 = arith.constant 256 : index
    %39 = vector.load %arg15[%c0_29, %c256_30] : memref<32x1024xf32, #tpu.memory_space<vmem>>, vector<32x128xf32>
    tpu.vector_store %arg15[%c0_29, %c256_30], %38 {strides = array<i32>} : memref<32x1024xf32, #tpu.memory_space<vmem>>, vector<32x128xf32>,
    %c6 = arith.constant 6 : index
    %c0_31 = arith.constant 0 : index
    %c0_32 = arith.constant 0 : index
    %40 = vector.load %arg1[%c6, %c0_31, %c0_32] : memref<16x10x128xf32, #tpu.memory_space<vmem>>, vector<1x10x128xf32>
    %41 = vector.shape_cast %40 : vector<1x10x128xf32> to vector<10x128xf32>
    %cst_33 = arith.constant dense<0.000000e+00> : vector<32x128xf32>
    %42 = tpu.matmul %2, %41, %cst_33 {dimension_numbers = #tpu.dot_dimension_numbers<[1], [0], [0], [1], [0, 0, 1, 1], [], []>} : vector<32x10xf32>, vector<10x128xf32>, vector<32x128xf32> -> vector<32x128xf32>
    %c7 = arith.constant 7 : index
    %c0_34 = arith.constant 0 : index
    %c0_35 = arith.constant 0 : index
    %43 = vector.load %arg1[%c7, %c0_34, %c0_35] : memref<16x10x128xf32, #tpu.memory_space<vmem>>, vector<1x10x128xf32>
    %44 = vector.shape_cast %43 : vector<1x10x128xf32> to vector<10x128xf32>
    %cst_36 = arith.constant dense<0.000000e+00> : vector<32x128xf32>
    %45 = tpu.matmul %2, %44, %cst_36 {dimension_numbers = #tpu.dot_dimension_numbers<[1], [0], [0], [1], [0, 0, 1, 1], [], []>} : vector<32x10xf32>, vector<10x128xf32>, vector<32x128xf32> -> vector<32x128xf32>
    %46 = arith.maximumf %42, %45 : vector<32x128xf32>
    %47 = vector.broadcast %3 : vector<32x1xf32> to vector<32x128xf32>
    %48 = arith.addf %46, %47 : vector<32x128xf32>
    %cst_37 = arith.constant 0.000000e+00 : f32
    %49 = vector.broadcast %cst_37 : f32 to vector<32x128xf32>
    %50 = arith.maximumf %48, %49 : vector<32x128xf32>
    %c0_38 = arith.constant 0 : index
    %c384 = arith.constant 384 : index
    %51 = vector.load %arg15[%c0_38, %c384] : memref<32x1024xf32, #tpu.memory_space<vmem>>, vector<32x128xf32>
    tpu.vector_store %arg15[%c0_38, %c384], %50 {strides = array<i32>} : memref<32x1024xf32, #tpu.memory_space<vmem>>, vector<32x128xf32>,
    %c8 = arith.constant 8 : index
    %c0_39 = arith.constant 0 : index
    %c0_40 = arith.constant 0 : index
    %52 = vector.load %arg1[%c8, %c0_39, %c0_40] : memref<16x10x128xf32, #tpu.memory_space<vmem>>, vector<1x10x128xf32>
    %53 = vector.shape_cast %52 : vector<1x10x128xf32> to vector<10x128xf32>
    %cst_41 = arith.constant dense<0.000000e+00> : vector<32x128xf32>
    %54 = tpu.matmul %2, %53, %cst_41 {dimension_numbers = #tpu.dot_dimension_numbers<[1], [0], [0], [1], [0, 0, 1, 1], [], []>} : vector<32x10xf32>, vector<10x128xf32>, vector<32x128xf32> -> vector<32x128xf32>
    %c9 = arith.constant 9 : index
    %c0_42 = arith.constant 0 : index
    %c0_43 = arith.constant 0 : index
    %55 = vector.load %arg1[%c9, %c0_42, %c0_43] : memref<16x10x128xf32, #tpu.memory_space<vmem>>, vector<1x10x128xf32>
    %56 = vector.shape_cast %55 : vector<1x10x128xf32> to vector<10x128xf32>
    %cst_44 = arith.constant dense<0.000000e+00> : vector<32x128xf32>
    %57 = tpu.matmul %2, %56, %cst_44 {dimension_numbers = #tpu.dot_dimension_numbers<[1], [0], [0], [1], [0, 0, 1, 1], [], []>} : vector<32x10xf32>, vector<10x128xf32>, vector<32x128xf32> -> vector<32x128xf32>
    %58 = arith.maximumf %54, %57 : vector<32x128xf32>
    %59 = vector.broadcast %3 : vector<32x1xf32> to vector<32x128xf32>
    %60 = arith.addf %58, %59 : vector<32x128xf32>
    %cst_45 = arith.constant 0.000000e+00 : f32
    %61 = vector.broadcast %cst_45 : f32 to vector<32x128xf32>
    %62 = arith.maximumf %60, %61 : vector<32x128xf32>
    %c0_46 = arith.constant 0 : index
    %c512 = arith.constant 512 : index
    %63 = vector.load %arg15[%c0_46, %c512] : memref<32x1024xf32, #tpu.memory_space<vmem>>, vector<32x128xf32>
    tpu.vector_store %arg15[%c0_46, %c512], %62 {strides = array<i32>} : memref<32x1024xf32, #tpu.memory_space<vmem>>, vector<32x128xf32>,
    %c10 = arith.constant 10 : index
    %c0_47 = arith.constant 0 : index
    %c0_48 = arith.constant 0 : index
    %64 = vector.load %arg1[%c10, %c0_47, %c0_48] : memref<16x10x128xf32, #tpu.memory_space<vmem>>, vector<1x10x128xf32>
    %65 = vector.shape_cast %64 : vector<1x10x128xf32> to vector<10x128xf32>
    %cst_49 = arith.constant dense<0.000000e+00> : vector<32x128xf32>
    %66 = tpu.matmul %2, %65, %cst_49 {dimension_numbers = #tpu.dot_dimension_numbers<[1], [0], [0], [1], [0, 0, 1, 1], [], []>} : vector<32x10xf32>, vector<10x128xf32>, vector<32x128xf32> -> vector<32x128xf32>
    %c11 = arith.constant 11 : index
    %c0_50 = arith.constant 0 : index
    %c0_51 = arith.constant 0 : index
    %67 = vector.load %arg1[%c11, %c0_50, %c0_51] : memref<16x10x128xf32, #tpu.memory_space<vmem>>, vector<1x10x128xf32>
    %68 = vector.shape_cast %67 : vector<1x10x128xf32> to vector<10x128xf32>
    %cst_52 = arith.constant dense<0.000000e+00> : vector<32x128xf32>
    %69 = tpu.matmul %2, %68, %cst_52 {dimension_numbers = #tpu.dot_dimension_numbers<[1], [0], [0], [1], [0, 0, 1, 1], [], []>} : vector<32x10xf32>, vector<10x128xf32>, vector<32x128xf32> -> vector<32x128xf32>
    %70 = arith.maximumf %66, %69 : vector<32x128xf32>
    %71 = vector.broadcast %3 : vector<32x1xf32> to vector<32x128xf32>
    %72 = arith.addf %70, %71 : vector<32x128xf32>
    %cst_53 = arith.constant 0.000000e+00 : f32
    %73 = vector.broadcast %cst_53 : f32 to vector<32x128xf32>
    %74 = arith.maximumf %72, %73 : vector<32x128xf32>
    %c0_54 = arith.constant 0 : index
    %c640 = arith.constant 640 : index
    %75 = vector.load %arg15[%c0_54, %c640] : memref<32x1024xf32, #tpu.memory_space<vmem>>, vector<32x128xf32>
    tpu.vector_store %arg15[%c0_54, %c640], %74 {strides = array<i32>} : memref<32x1024xf32, #tpu.memory_space<vmem>>, vector<32x128xf32>,
    %c12 = arith.constant 12 : index
    %c0_55 = arith.constant 0 : index
    %c0_56 = arith.constant 0 : index
    %76 = vector.load %arg1[%c12, %c0_55, %c0_56] : memref<16x10x128xf32, #tpu.memory_space<vmem>>, vector<1x10x128xf32>
    %77 = vector.shape_cast %76 : vector<1x10x128xf32> to vector<10x128xf32>
    %cst_57 = arith.constant dense<0.000000e+00> : vector<32x128xf32>
    %78 = tpu.matmul %2, %77, %cst_57 {dimension_numbers = #tpu.dot_dimension_numbers<[1], [0], [0], [1], [0, 0, 1, 1], [], []>} : vector<32x10xf32>, vector<10x128xf32>, vector<32x128xf32> -> vector<32x128xf32>
    %c13 = arith.constant 13 : index
    %c0_58 = arith.constant 0 : index
    %c0_59 = arith.constant 0 : index
    %79 = vector.load %arg1[%c13, %c0_58, %c0_59] : memref<16x10x128xf32, #tpu.memory_space<vmem>>, vector<1x10x128xf32>
    %80 = vector.shape_cast %79 : vector<1x10x128xf32> to vector<10x128xf32>
    %cst_60 = arith.constant dense<0.000000e+00> : vector<32x128xf32>
    %81 = tpu.matmul %2, %80, %cst_60 {dimension_numbers = #tpu.dot_dimension_numbers<[1], [0], [0], [1], [0, 0, 1, 1], [], []>} : vector<32x10xf32>, vector<10x128xf32>, vector<32x128xf32> -> vector<32x128xf32>
    %82 = arith.maximumf %78, %81 : vector<32x128xf32>
    %83 = vector.broadcast %3 : vector<32x1xf32> to vector<32x128xf32>
    %84 = arith.addf %82, %83 : vector<32x128xf32>
    %cst_61 = arith.constant 0.000000e+00 : f32
    %85 = vector.broadcast %cst_61 : f32 to vector<32x128xf32>
    %86 = arith.maximumf %84, %85 : vector<32x128xf32>
    %c0_62 = arith.constant 0 : index
    %c768 = arith.constant 768 : index
    %87 = vector.load %arg15[%c0_62, %c768] : memref<32x1024xf32, #tpu.memory_space<vmem>>, vector<32x128xf32>
    tpu.vector_store %arg15[%c0_62, %c768], %86 {strides = array<i32>} : memref<32x1024xf32, #tpu.memory_space<vmem>>, vector<32x128xf32>,
    %c14 = arith.constant 14 : index
    %c0_63 = arith.constant 0 : index
    %c0_64 = arith.constant 0 : index
    %88 = vector.load %arg1[%c14, %c0_63, %c0_64] : memref<16x10x128xf32, #tpu.memory_space<vmem>>, vector<1x10x128xf32>
    %89 = vector.shape_cast %88 : vector<1x10x128xf32> to vector<10x128xf32>
    %cst_65 = arith.constant dense<0.000000e+00> : vector<32x128xf32>
    %90 = tpu.matmul %2, %89, %cst_65 {dimension_numbers = #tpu.dot_dimension_numbers<[1], [0], [0], [1], [0, 0, 1, 1], [], []>} : vector<32x10xf32>, vector<10x128xf32>, vector<32x128xf32> -> vector<32x128xf32>
    %c15 = arith.constant 15 : index
    %c0_66 = arith.constant 0 : index
    %c0_67 = arith.constant 0 : index
    %91 = vector.load %arg1[%c15, %c0_66, %c0_67] : memref<16x10x128xf32, #tpu.memory_space<vmem>>, vector<1x10x128xf32>
    %92 = vector.shape_cast %91 : vector<1x10x128xf32> to vector<10x128xf32>
    %cst_68 = arith.constant dense<0.000000e+00> : vector<32x128xf32>
    %93 = tpu.matmul %2, %92, %cst_68 {dimension_numbers = #tpu.dot_dimension_numbers<[1], [0], [0], [1], [0, 0, 1, 1], [], []>} : vector<32x10xf32>, vector<10x128xf32>, vector<32x128xf32> -> vector<32x128xf32>
    %94 = arith.maximumf %90, %93 : vector<32x128xf32>
    %95 = vector.broadcast %3 : vector<32x1xf32> to vector<32x128xf32>
    %96 = arith.addf %94, %95 : vector<32x128xf32>
    %cst_69 = arith.constant 0.000000e+00 : f32
    %97 = vector.broadcast %cst_69 : f32 to vector<32x128xf32>
    %98 = arith.maximumf %96, %97 : vector<32x128xf32>
    %c0_70 = arith.constant 0 : index
    %c896 = arith.constant 896 : index
    %99 = vector.load %arg15[%c0_70, %c896] : memref<32x1024xf32, #tpu.memory_space<vmem>>, vector<32x128xf32>
    tpu.vector_store %arg15[%c0_70, %c896], %98 {strides = array<i32>} : memref<32x1024xf32, #tpu.memory_space<vmem>>, vector<32x128xf32>,
    %c0_71 = arith.constant 0 : index
    %c0_72 = arith.constant 0 : index
    %c0_73 = arith.constant 0 : index
    %100 = vector.load %arg4[%c0_71, %c0_72, %c0_73] : memref<3x32x32xf32, #tpu.memory_space<vmem>>, vector<3x32x32xf32>
    %c0_74 = arith.constant 0 : index
    %c0_75 = arith.constant 0 : index
    %101 = vector.load %arg5[%c0_74, %c0_75] : memref<32x1xf32, #tpu.memory_space<vmem>>, vector<32x1xf32>
    %102 = vector.extract_strided_slice %100 {offsets = [0, 0, 0], sizes = [1, 32, 32], strides = [1, 1, 1]} : vector<3x32x32xf32> to vector<1x32x32xf32>
    %103 = vector.shape_cast %102 : vector<1x32x32xf32> to vector<32x32xf32>
    %c0_76 = arith.constant 0 : index
    %c0_77 = arith.constant 0 : index
    %104 = vector.load %arg15[%c0_76, %c0_77] : memref<32x1024xf32, #tpu.memory_space<vmem>>, vector<32x128xf32>
    %cst_78 = arith.constant dense<0.000000e+00> : vector<32x128xf32>
    %105 = tpu.matmul %103, %104, %cst_78 {dimension_numbers = #tpu.dot_dimension_numbers<[1], [0], [0], [1], [0, 0, 1, 1], [], []>} : vector<32x32xf32>, vector<32x128xf32>, vector<32x128xf32> -> vector<32x128xf32>
    %106 = vector.extract_strided_slice %100 {offsets = [1, 0, 0], sizes = [1, 32, 32], strides = [1, 1, 1]} : vector<3x32x32xf32> to vector<1x32x32xf32>
    %107 = vector.shape_cast %106 : vector<1x32x32xf32> to vector<32x32xf32>
    %c0_79 = arith.constant 0 : index
    %c128_80 = arith.constant 128 : index
    %108 = vector.load %arg15[%c0_79, %c128_80] : memref<32x1024xf32, #tpu.memory_space<vmem>>, vector<32x128xf32>
    %cst_81 = arith.constant dense<0.000000e+00> : vector<32x128xf32>
    %109 = tpu.matmul %107, %108, %cst_81 {dimension_numbers = #tpu.dot_dimension_numbers<[1], [0], [0], [1], [0, 0, 1, 1], [], []>} : vector<32x32xf32>, vector<32x128xf32>, vector<32x128xf32> -> vector<32x128xf32>
    %110 = arith.addf %105, %109 : vector<32x128xf32>
    %111 = vector.extract_strided_slice %100 {offsets = [2, 0, 0], sizes = [1, 32, 32], strides = [1, 1, 1]} : vector<3x32x32xf32> to vector<1x32x32xf32>
    %112 = vector.shape_cast %111 : vector<1x32x32xf32> to vector<32x32xf32>
    %c0_82 = arith.constant 0 : index
    %c256_83 = arith.constant 256 : index
    %113 = vector.load %arg15[%c0_82, %c256_83] : memref<32x1024xf32, #tpu.memory_space<vmem>>, vector<32x128xf32>
    %cst_84 = arith.constant dense<0.000000e+00> : vector<32x128xf32>
    %114 = tpu.matmul %112, %113, %cst_84 {dimension_numbers = #tpu.dot_dimension_numbers<[1], [0], [0], [1], [0, 0, 1, 1], [], []>} : vector<32x32xf32>, vector<32x128xf32>, vector<32x128xf32> -> vector<32x128xf32>
    %115 = arith.addf %110, %114 : vector<32x128xf32>
    %116 = vector.extract_strided_slice %100 {offsets = [0, 0, 0], sizes = [1, 32, 32], strides = [1, 1, 1]} : vector<3x32x32xf32> to vector<1x32x32xf32>
    %117 = vector.shape_cast %116 : vector<1x32x32xf32> to vector<32x32xf32>
    %c0_85 = arith.constant 0 : index
    %c128_86 = arith.constant 128 : index
    %118 = vector.load %arg15[%c0_85, %c128_86] : memref<32x1024xf32, #tpu.memory_space<vmem>>, vector<32x128xf32>
    %cst_87 = arith.constant dense<0.000000e+00> : vector<32x128xf32>
    %119 = tpu.matmul %117, %118, %cst_87 {dimension_numbers = #tpu.dot_dimension_numbers<[1], [0], [0], [1], [0, 0, 1, 1], [], []>} : vector<32x32xf32>, vector<32x128xf32>, vector<32x128xf32> -> vector<32x128xf32>
    %120 = vector.extract_strided_slice %100 {offsets = [1, 0, 0], sizes = [1, 32, 32], strides = [1, 1, 1]} : vector<3x32x32xf32> to vector<1x32x32xf32>
    %121 = vector.shape_cast %120 : vector<1x32x32xf32> to vector<32x32xf32>
    %c0_88 = arith.constant 0 : index
    %c256_89 = arith.constant 256 : index
    %122 = vector.load %arg15[%c0_88, %c256_89] : memref<32x1024xf32, #tpu.memory_space<vmem>>, vector<32x128xf32>
    %cst_90 = arith.constant dense<0.000000e+00> : vector<32x128xf32>
    %123 = tpu.matmul %121, %122, %cst_90 {dimension_numbers = #tpu.dot_dimension_numbers<[1], [0], [0], [1], [0, 0, 1, 1], [], []>} : vector<32x32xf32>, vector<32x128xf32>, vector<32x128xf32> -> vector<32x128xf32>
    %124 = arith.addf %119, %123 : vector<32x128xf32>
    %125 = vector.extract_strided_slice %100 {offsets = [2, 0, 0], sizes = [1, 32, 32], strides = [1, 1, 1]} : vector<3x32x32xf32> to vector<1x32x32xf32>
    %126 = vector.shape_cast %125 : vector<1x32x32xf32> to vector<32x32xf32>
    %c0_91 = arith.constant 0 : index
    %c384_92 = arith.constant 384 : index
    %127 = vector.load %arg15[%c0_91, %c384_92] : memref<32x1024xf32, #tpu.memory_space<vmem>>, vector<32x128xf32>
    %cst_93 = arith.constant dense<0.000000e+00> : vector<32x128xf32>
    %128 = tpu.matmul %126, %127, %cst_93 {dimension_numbers = #tpu.dot_dimension_numbers<[1], [0], [0], [1], [0, 0, 1, 1], [], []>} : vector<32x32xf32>, vector<32x128xf32>, vector<32x128xf32> -> vector<32x128xf32>
    %129 = arith.addf %124, %128 : vector<32x128xf32>
    %130 = arith.maximumf %115, %129 : vector<32x128xf32>
    %131 = vector.broadcast %101 : vector<32x1xf32> to vector<32x128xf32>
    %132 = arith.addf %130, %131 : vector<32x128xf32>
    %cst_94 = arith.constant 0.000000e+00 : f32
    %133 = vector.broadcast %cst_94 : f32 to vector<32x128xf32>
    %134 = arith.maximumf %132, %133 : vector<32x128xf32>
    %c0_95 = arith.constant 0 : index
    %c0_96 = arith.constant 0 : index
    %135 = vector.load %arg16[%c0_95, %c0_96] : memref<32x512xf32, #tpu.memory_space<vmem>>, vector<32x128xf32>
    tpu.vector_store %arg16[%c0_95, %c0_96], %134 {strides = array<i32>} : memref<32x512xf32, #tpu.memory_space<vmem>>, vector<32x128xf32>,
    %136 = vector.extract_strided_slice %100 {offsets = [0, 0, 0], sizes = [1, 32, 32], strides = [1, 1, 1]} : vector<3x32x32xf32> to vector<1x32x32xf32>
    %137 = vector.shape_cast %136 : vector<1x32x32xf32> to vector<32x32xf32>
    %c0_97 = arith.constant 0 : index
    %c256_98 = arith.constant 256 : index
    %138 = vector.load %arg15[%c0_97, %c256_98] : memref<32x1024xf32, #tpu.memory_space<vmem>>, vector<32x128xf32>
    %cst_99 = arith.constant dense<0.000000e+00> : vector<32x128xf32>
    %139 = tpu.matmul %137, %138, %cst_99 {dimension_numbers = #tpu.dot_dimension_numbers<[1], [0], [0], [1], [0, 0, 1, 1], [], []>} : vector<32x32xf32>, vector<32x128xf32>, vector<32x128xf32> -> vector<32x128xf32>
    %140 = vector.extract_strided_slice %100 {offsets = [1, 0, 0], sizes = [1, 32, 32], strides = [1, 1, 1]} : vector<3x32x32xf32> to vector<1x32x32xf32>
    %141 = vector.shape_cast %140 : vector<1x32x32xf32> to vector<32x32xf32>
    %c0_100 = arith.constant 0 : index
    %c384_101 = arith.constant 384 : index
    %142 = vector.load %arg15[%c0_100, %c384_101] : memref<32x1024xf32, #tpu.memory_space<vmem>>, vector<32x128xf32>
    %cst_102 = arith.constant dense<0.000000e+00> : vector<32x128xf32>
    %143 = tpu.matmul %141, %142, %cst_102 {dimension_numbers = #tpu.dot_dimension_numbers<[1], [0], [0], [1], [0, 0, 1, 1], [], []>} : vector<32x32xf32>, vector<32x128xf32>, vector<32x128xf32> -> vector<32x128xf32>
    %144 = arith.addf %139, %143 : vector<32x128xf32>
    %145 = vector.extract_strided_slice %100 {offsets = [2, 0, 0], sizes = [1, 32, 32], strides = [1, 1, 1]} : vector<3x32x32xf32> to vector<1x32x32xf32>
    %146 = vector.shape_cast %145 : vector<1x32x32xf32> to vector<32x32xf32>
    %c0_103 = arith.constant 0 : index
    %c512_104 = arith.constant 512 : index
    %147 = vector.load %arg15[%c0_103, %c512_104] : memref<32x1024xf32, #tpu.memory_space<vmem>>, vector<32x128xf32>
    %cst_105 = arith.constant dense<0.000000e+00> : vector<32x128xf32>
    %148 = tpu.matmul %146, %147, %cst_105 {dimension_numbers = #tpu.dot_dimension_numbers<[1], [0], [0], [1], [0, 0, 1, 1], [], []>} : vector<32x32xf32>, vector<32x128xf32>, vector<32x128xf32> -> vector<32x128xf32>
    %149 = arith.addf %144, %148 : vector<32x128xf32>
    %150 = vector.extract_strided_slice %100 {offsets = [0, 0, 0], sizes = [1, 32, 32], strides = [1, 1, 1]} : vector<3x32x32xf32> to vector<1x32x32xf32>
    %151 = vector.shape_cast %150 : vector<1x32x32xf32> to vector<32x32xf32>
    %c0_106 = arith.constant 0 : index
    %c384_107 = arith.constant 384 : index
    %152 = vector.load %arg15[%c0_106, %c384_107] : memref<32x1024xf32, #tpu.memory_space<vmem>>, vector<32x128xf32>
    %cst_108 = arith.constant dense<0.000000e+00> : vector<32x128xf32>
    %153 = tpu.matmul %151, %152, %cst_108 {dimension_numbers = #tpu.dot_dimension_numbers<[1], [0], [0], [1], [0, 0, 1, 1], [], []>} : vector<32x32xf32>, vector<32x128xf32>, vector<32x128xf32> -> vector<32x128xf32>
    %154 = vector.extract_strided_slice %100 {offsets = [1, 0, 0], sizes = [1, 32, 32], strides = [1, 1, 1]} : vector<3x32x32xf32> to vector<1x32x32xf32>
    %155 = vector.shape_cast %154 : vector<1x32x32xf32> to vector<32x32xf32>
    %c0_109 = arith.constant 0 : index
    %c512_110 = arith.constant 512 : index
    %156 = vector.load %arg15[%c0_109, %c512_110] : memref<32x1024xf32, #tpu.memory_space<vmem>>, vector<32x128xf32>
    %cst_111 = arith.constant dense<0.000000e+00> : vector<32x128xf32>
    %157 = tpu.matmul %155, %156, %cst_111 {dimension_numbers = #tpu.dot_dimension_numbers<[1], [0], [0], [1], [0, 0, 1, 1], [], []>} : vector<32x32xf32>, vector<32x128xf32>, vector<32x128xf32> -> vector<32x128xf32>
    %158 = arith.addf %153, %157 : vector<32x128xf32>
    %159 = vector.extract_strided_slice %100 {offsets = [2, 0, 0], sizes = [1, 32, 32], strides = [1, 1, 1]} : vector<3x32x32xf32> to vector<1x32x32xf32>
    %160 = vector.shape_cast %159 : vector<1x32x32xf32> to vector<32x32xf32>
    %c0_112 = arith.constant 0 : index
    %c640_113 = arith.constant 640 : index
    %161 = vector.load %arg15[%c0_112, %c640_113] : memref<32x1024xf32, #tpu.memory_space<vmem>>, vector<32x128xf32>
    %cst_114 = arith.constant dense<0.000000e+00> : vector<32x128xf32>
    %162 = tpu.matmul %160, %161, %cst_114 {dimension_numbers = #tpu.dot_dimension_numbers<[1], [0], [0], [1], [0, 0, 1, 1], [], []>} : vector<32x32xf32>, vector<32x128xf32>, vector<32x128xf32> -> vector<32x128xf32>
    %163 = arith.addf %158, %162 : vector<32x128xf32>
    %164 = arith.maximumf %149, %163 : vector<32x128xf32>
    %165 = vector.broadcast %101 : vector<32x1xf32> to vector<32x128xf32>
    %166 = arith.addf %164, %165 : vector<32x128xf32>
    %cst_115 = arith.constant 0.000000e+00 : f32
    %167 = vector.broadcast %cst_115 : f32 to vector<32x128xf32>
    %168 = arith.maximumf %166, %167 : vector<32x128xf32>
    %c0_116 = arith.constant 0 : index
    %c128_117 = arith.constant 128 : index
    %169 = vector.load %arg16[%c0_116, %c128_117] : memref<32x512xf32, #tpu.memory_space<vmem>>, vector<32x128xf32>
    tpu.vector_store %arg16[%c0_116, %c128_117], %168 {strides = array<i32>} : memref<32x512xf32, #tpu.memory_space<vmem>>, vector<32x128xf32>,
    %170 = vector.extract_strided_slice %100 {offsets = [0, 0, 0], sizes = [1, 32, 32], strides = [1, 1, 1]} : vector<3x32x32xf32> to vector<1x32x32xf32>
    %171 = vector.shape_cast %170 : vector<1x32x32xf32> to vector<32x32xf32>
    %c0_118 = arith.constant 0 : index
    %c512_119 = arith.constant 512 : index
    %172 = vector.load %arg15[%c0_118, %c512_119] : memref<32x1024xf32, #tpu.memory_space<vmem>>, vector<32x128xf32>
    %cst_120 = arith.constant dense<0.000000e+00> : vector<32x128xf32>
    %173 = tpu.matmul %171, %172, %cst_120 {dimension_numbers = #tpu.dot_dimension_numbers<[1], [0], [0], [1], [0, 0, 1, 1], [], []>} : vector<32x32xf32>, vector<32x128xf32>, vector<32x128xf32> -> vector<32x128xf32>
    %174 = vector.extract_strided_slice %100 {offsets = [1, 0, 0], sizes = [1, 32, 32], strides = [1, 1, 1]} : vector<3x32x32xf32> to vector<1x32x32xf32>
    %175 = vector.shape_cast %174 : vector<1x32x32xf32> to vector<32x32xf32>
    %c0_121 = arith.constant 0 : index
    %c640_122 = arith.constant 640 : index
    %176 = vector.load %arg15[%c0_121, %c640_122] : memref<32x1024xf32, #tpu.memory_space<vmem>>, vector<32x128xf32>
    %cst_123 = arith.constant dense<0.000000e+00> : vector<32x128xf32>
    %177 = tpu.matmul %175, %176, %cst_123 {dimension_numbers = #tpu.dot_dimension_numbers<[1], [0], [0], [1], [0, 0, 1, 1], [], []>} : vector<32x32xf32>, vector<32x128xf32>, vector<32x128xf32> -> vector<32x128xf32>
    %178 = arith.addf %173, %177 : vector<32x128xf32>
    %179 = vector.extract_strided_slice %100 {offsets = [2, 0, 0], sizes = [1, 32, 32], strides = [1, 1, 1]} : vector<3x32x32xf32> to vector<1x32x32xf32>
    %180 = vector.shape_cast %179 : vector<1x32x32xf32> to vector<32x32xf32>
    %c0_124 = arith.constant 0 : index
    %c768_125 = arith.constant 768 : index
    %181 = vector.load %arg15[%c0_124, %c768_125] : memref<32x1024xf32, #tpu.memory_space<vmem>>, vector<32x128xf32>
    %cst_126 = arith.constant dense<0.000000e+00> : vector<32x128xf32>
    %182 = tpu.matmul %180, %181, %cst_126 {dimension_numbers = #tpu.dot_dimension_numbers<[1], [0], [0], [1], [0, 0, 1, 1], [], []>} : vector<32x32xf32>, vector<32x128xf32>, vector<32x128xf32> -> vector<32x128xf32>
    %183 = arith.addf %178, %182 : vector<32x128xf32>
    %184 = vector.extract_strided_slice %100 {offsets = [0, 0, 0], sizes = [1, 32, 32], strides = [1, 1, 1]} : vector<3x32x32xf32> to vector<1x32x32xf32>
    %185 = vector.shape_cast %184 : vector<1x32x32xf32> to vector<32x32xf32>
    %c0_127 = arith.constant 0 : index
    %c640_128 = arith.constant 640 : index
    %186 = vector.load %arg15[%c0_127, %c640_128] : memref<32x1024xf32, #tpu.memory_space<vmem>>, vector<32x128xf32>
    %cst_129 = arith.constant dense<0.000000e+00> : vector<32x128xf32>
    %187 = tpu.matmul %185, %186, %cst_129 {dimension_numbers = #tpu.dot_dimension_numbers<[1], [0], [0], [1], [0, 0, 1, 1], [], []>} : vector<32x32xf32>, vector<32x128xf32>, vector<32x128xf32> -> vector<32x128xf32>
    %188 = vector.extract_strided_slice %100 {offsets = [1, 0, 0], sizes = [1, 32, 32], strides = [1, 1, 1]} : vector<3x32x32xf32> to vector<1x32x32xf32>
    %189 = vector.shape_cast %188 : vector<1x32x32xf32> to vector<32x32xf32>
    %c0_130 = arith.constant 0 : index
    %c768_131 = arith.constant 768 : index
    %190 = vector.load %arg15[%c0_130, %c768_131] : memref<32x1024xf32, #tpu.memory_space<vmem>>, vector<32x128xf32>
    %cst_132 = arith.constant dense<0.000000e+00> : vector<32x128xf32>
    %191 = tpu.matmul %189, %190, %cst_132 {dimension_numbers = #tpu.dot_dimension_numbers<[1], [0], [0], [1], [0, 0, 1, 1], [], []>} : vector<32x32xf32>, vector<32x128xf32>, vector<32x128xf32> -> vector<32x128xf32>
    %192 = arith.addf %187, %191 : vector<32x128xf32>
    %193 = vector.extract_strided_slice %100 {offsets = [2, 0, 0], sizes = [1, 32, 32], strides = [1, 1, 1]} : vector<3x32x32xf32> to vector<1x32x32xf32>
    %194 = vector.shape_cast %193 : vector<1x32x32xf32> to vector<32x32xf32>
    %c0_133 = arith.constant 0 : index
    %c896_134 = arith.constant 896 : index
    %195 = vector.load %arg15[%c0_133, %c896_134] : memref<32x1024xf32, #tpu.memory_space<vmem>>, vector<32x128xf32>
    %cst_135 = arith.constant dense<0.000000e+00> : vector<32x128xf32>
    %196 = tpu.matmul %194, %195, %cst_135 {dimension_numbers = #tpu.dot_dimension_numbers<[1], [0], [0], [1], [0, 0, 1, 1], [], []>} : vector<32x32xf32>, vector<32x128xf32>, vector<32x128xf32> -> vector<32x128xf32>
    %197 = arith.addf %192, %196 : vector<32x128xf32>
    %198 = arith.maximumf %183, %197 : vector<32x128xf32>
    %199 = vector.broadcast %101 : vector<32x1xf32> to vector<32x128xf32>
    %200 = arith.addf %198, %199 : vector<32x128xf32>
    %cst_136 = arith.constant 0.000000e+00 : f32
    %201 = vector.broadcast %cst_136 : f32 to vector<32x128xf32>
    %202 = arith.maximumf %200, %201 : vector<32x128xf32>
    %c0_137 = arith.constant 0 : index
    %c256_138 = arith.constant 256 : index
    %203 = vector.load %arg16[%c0_137, %c256_138] : memref<32x512xf32, #tpu.memory_space<vmem>>, vector<32x128xf32>
    tpu.vector_store %arg16[%c0_137, %c256_138], %202 {strides = array<i32>} : memref<32x512xf32, #tpu.memory_space<vmem>>, vector<32x128xf32>,
    %204 = vector.extract_strided_slice %100 {offsets = [0, 0, 0], sizes = [1, 32, 32], strides = [1, 1, 1]} : vector<3x32x32xf32> to vector<1x32x32xf32>
    %205 = vector.shape_cast %204 : vector<1x32x32xf32> to vector<32x32xf32>
    %c0_139 = arith.constant 0 : index
    %c768_140 = arith.constant 768 : index
    %206 = vector.load %arg15[%c0_139, %c768_140] : memref<32x1024xf32, #tpu.memory_space<vmem>>, vector<32x128xf32>
    %cst_141 = arith.constant dense<0.000000e+00> : vector<32x128xf32>
    %207 = tpu.matmul %205, %206, %cst_141 {dimension_numbers = #tpu.dot_dimension_numbers<[1], [0], [0], [1], [0, 0, 1, 1], [], []>} : vector<32x32xf32>, vector<32x128xf32>, vector<32x128xf32> -> vector<32x128xf32>
    %208 = vector.extract_strided_slice %100 {offsets = [1, 0, 0], sizes = [1, 32, 32], strides = [1, 1, 1]} : vector<3x32x32xf32> to vector<1x32x32xf32>
    %209 = vector.shape_cast %208 : vector<1x32x32xf32> to vector<32x32xf32>
    %c0_142 = arith.constant 0 : index
    %c896_143 = arith.constant 896 : index
    %210 = vector.load %arg15[%c0_142, %c896_143] : memref<32x1024xf32, #tpu.memory_space<vmem>>, vector<32x128xf32>
    %cst_144 = arith.constant dense<0.000000e+00> : vector<32x128xf32>
    %211 = tpu.matmul %209, %210, %cst_144 {dimension_numbers = #tpu.dot_dimension_numbers<[1], [0], [0], [1], [0, 0, 1, 1], [], []>} : vector<32x32xf32>, vector<32x128xf32>, vector<32x128xf32> -> vector<32x128xf32>
    %212 = arith.addf %207, %211 : vector<32x128xf32>
    %213 = vector.extract_strided_slice %100 {offsets = [2, 0, 0], sizes = [1, 32, 32], strides = [1, 1, 1]} : vector<3x32x32xf32> to vector<1x32x32xf32>
    %214 = vector.shape_cast %213 : vector<1x32x32xf32> to vector<32x32xf32>
    %c0_145 = arith.constant 0 : index
    %c1_146 = arith.constant 1 : index
    %215 = vector.load %arg15[%c0_145, %c1_146] : memref<32x1024xf32, #tpu.memory_space<vmem>>, vector<32x128xf32>
    %cst_147 = arith.constant dense<0.000000e+00> : vector<32x128xf32>
    %216 = tpu.matmul %214, %215, %cst_147 {dimension_numbers = #tpu.dot_dimension_numbers<[1], [0], [0], [1], [0, 0, 1, 1], [], []>} : vector<32x32xf32>, vector<32x128xf32>, vector<32x128xf32> -> vector<32x128xf32>
    %217 = arith.addf %212, %216 : vector<32x128xf32>
    %218 = vector.extract_strided_slice %100 {offsets = [0, 0, 0], sizes = [1, 32, 32], strides = [1, 1, 1]} : vector<3x32x32xf32> to vector<1x32x32xf32>
    %219 = vector.shape_cast %218 : vector<1x32x32xf32> to vector<32x32xf32>
    %c0_148 = arith.constant 0 : index
    %c896_149 = arith.constant 896 : index
    %220 = vector.load %arg15[%c0_148, %c896_149] : memref<32x1024xf32, #tpu.memory_space<vmem>>, vector<32x128xf32>
    %cst_150 = arith.constant dense<0.000000e+00> : vector<32x128xf32>
    %221 = tpu.matmul %219, %220, %cst_150 {dimension_numbers = #tpu.dot_dimension_numbers<[1], [0], [0], [1], [0, 0, 1, 1], [], []>} : vector<32x32xf32>, vector<32x128xf32>, vector<32x128xf32> -> vector<32x128xf32>
    %222 = vector.extract_strided_slice %100 {offsets = [1, 0, 0], sizes = [1, 32, 32], strides = [1, 1, 1]} : vector<3x32x32xf32> to vector<1x32x32xf32>
    %223 = vector.shape_cast %222 : vector<1x32x32xf32> to vector<32x32xf32>
    %c0_151 = arith.constant 0 : index
    %c1_152 = arith.constant 1 : index
    %224 = vector.load %arg15[%c0_151, %c1_152] : memref<32x1024xf32, #tpu.memory_space<vmem>>, vector<32x128xf32>
    %cst_153 = arith.constant dense<0.000000e+00> : vector<32x128xf32>
    %225 = tpu.matmul %223, %224, %cst_153 {dimension_numbers = #tpu.dot_dimension_numbers<[1], [0], [0], [1], [0, 0, 1, 1], [], []>} : vector<32x32xf32>, vector<32x128xf32>, vector<32x128xf32> -> vector<32x128xf32>
    %226 = arith.addf %221, %225 : vector<32x128xf32>
    %227 = vector.extract_strided_slice %100 {offsets = [2, 0, 0], sizes = [1, 32, 32], strides = [1, 1, 1]} : vector<3x32x32xf32> to vector<1x32x32xf32>
    %228 = vector.shape_cast %227 : vector<1x32x32xf32> to vector<32x32xf32>
    %c0_154 = arith.constant 0 : index
    %c129 = arith.constant 129 : index
    %229 = vector.load %arg15[%c0_154, %c129] : memref<32x1024xf32, #tpu.memory_space<vmem>>, vector<32x128xf32>
    %cst_155 = arith.constant dense<0.000000e+00> : vector<32x128xf32>
    %230 = tpu.matmul %228, %229, %cst_155 {dimension_numbers = #tpu.dot_dimension_numbers<[1], [0], [0], [1], [0, 0, 1, 1], [], []>} : vector<32x32xf32>, vector<32x128xf32>, vector<32x128xf32> -> vector<32x128xf32>
    %231 = arith.addf %226, %230 : vector<32x128xf32>
    %232 = arith.maximumf %217, %231 : vector<32x128xf32>
    %233 = vector.broadcast %101 : vector<32x1xf32> to vector<32x128xf32>
    %234 = arith.addf %232, %233 : vector<32x128xf32>
    %cst_156 = arith.constant 0.000000e+00 : f32
    %235 = vector.broadcast %cst_156 : f32 to vector<32x128xf32>
    %236 = arith.maximumf %234, %235 : vector<32x128xf32>
    %c0_157 = arith.constant 0 : index
    %c384_158 = arith.constant 384 : index
    %237 = vector.load %arg16[%c0_157, %c384_158] : memref<32x512xf32, #tpu.memory_space<vmem>>, vector<32x128xf32>
    tpu.vector_store %arg16[%c0_157, %c384_158], %236 {strides = array<i32>} : memref<32x512xf32, #tpu.memory_space<vmem>>, vector<32x128xf32>,
    %c0_159 = arith.constant 0 : index
    %c0_160 = arith.constant 0 : index
    %c0_161 = arith.constant 0 : index
    %238 = vector.load %arg6[%c0_159, %c0_160, %c0_161] : memref<3x64x32xf32, #tpu.memory_space<vmem>>, vector<3x64x32xf32>
    %c0_162 = arith.constant 0 : index
    %c0_163 = arith.constant 0 : index
    %239 = vector.load %arg7[%c0_162, %c0_163] : memref<64x1xf32, #tpu.memory_space<vmem>>, vector<64x1xf32>
    %240 = vector.extract_strided_slice %238 {offsets = [0, 0, 0], sizes = [1, 64, 32], strides = [1, 1, 1]} : vector<3x64x32xf32> to vector<1x64x32xf32>
    %241 = vector.shape_cast %240 : vector<1x64x32xf32> to vector<64x32xf32>
    %c0_164 = arith.constant 0 : index
    %c0_165 = arith.constant 0 : index
    %242 = vector.load %arg16[%c0_164, %c0_165] : memref<32x512xf32, #tpu.memory_space<vmem>>, vector<32x128xf32>
    %cst_166 = arith.constant dense<0.000000e+00> : vector<64x128xf32>
    %243 = tpu.matmul %241, %242, %cst_166 {dimension_numbers = #tpu.dot_dimension_numbers<[1], [0], [0], [1], [0, 0, 1, 1], [], []>} : vector<64x32xf32>, vector<32x128xf32>, vector<64x128xf32> -> vector<64x128xf32>
    %244 = vector.extract_strided_slice %238 {offsets = [1, 0, 0], sizes = [1, 64, 32], strides = [1, 1, 1]} : vector<3x64x32xf32> to vector<1x64x32xf32>
    %245 = vector.shape_cast %244 : vector<1x64x32xf32> to vector<64x32xf32>
    %c0_167 = arith.constant 0 : index
    %c128_168 = arith.constant 128 : index
    %246 = vector.load %arg16[%c0_167, %c128_168] : memref<32x512xf32, #tpu.memory_space<vmem>>, vector<32x128xf32>
    %cst_169 = arith.constant dense<0.000000e+00> : vector<64x128xf32>
    %247 = tpu.matmul %245, %246, %cst_169 {dimension_numbers = #tpu.dot_dimension_numbers<[1], [0], [0], [1], [0, 0, 1, 1], [], []>} : vector<64x32xf32>, vector<32x128xf32>, vector<64x128xf32> -> vector<64x128xf32>
    %248 = arith.addf %243, %247 : vector<64x128xf32>
    %249 = vector.extract_strided_slice %238 {offsets = [2, 0, 0], sizes = [1, 64, 32], strides = [1, 1, 1]} : vector<3x64x32xf32> to vector<1x64x32xf32>
    %250 = vector.shape_cast %249 : vector<1x64x32xf32> to vector<64x32xf32>
    %c0_170 = arith.constant 0 : index
    %c256_171 = arith.constant 256 : index
    %251 = vector.load %arg16[%c0_170, %c256_171] : memref<32x512xf32, #tpu.memory_space<vmem>>, vector<32x128xf32>
    %cst_172 = arith.constant dense<0.000000e+00> : vector<64x128xf32>
    %252 = tpu.matmul %250, %251, %cst_172 {dimension_numbers = #tpu.dot_dimension_numbers<[1], [0], [0], [1], [0, 0, 1, 1], [], []>} : vector<64x32xf32>, vector<32x128xf32>, vector<64x128xf32> -> vector<64x128xf32>
    %253 = arith.addf %248, %252 : vector<64x128xf32>
    %254 = vector.extract_strided_slice %238 {offsets = [0, 0, 0], sizes = [1, 64, 32], strides = [1, 1, 1]} : vector<3x64x32xf32> to vector<1x64x32xf32>
    %255 = vector.shape_cast %254 : vector<1x64x32xf32> to vector<64x32xf32>
    %c0_173 = arith.constant 0 : index
    %c128_174 = arith.constant 128 : index
    %256 = vector.load %arg16[%c0_173, %c128_174] : memref<32x512xf32, #tpu.memory_space<vmem>>, vector<32x128xf32>
    %cst_175 = arith.constant dense<0.000000e+00> : vector<64x128xf32>
    %257 = tpu.matmul %255, %256, %cst_175 {dimension_numbers = #tpu.dot_dimension_numbers<[1], [0], [0], [1], [0, 0, 1, 1], [], []>} : vector<64x32xf32>, vector<32x128xf32>, vector<64x128xf32> -> vector<64x128xf32>
    %258 = vector.extract_strided_slice %238 {offsets = [1, 0, 0], sizes = [1, 64, 32], strides = [1, 1, 1]} : vector<3x64x32xf32> to vector<1x64x32xf32>
    %259 = vector.shape_cast %258 : vector<1x64x32xf32> to vector<64x32xf32>
    %c0_176 = arith.constant 0 : index
    %c256_177 = arith.constant 256 : index
    %260 = vector.load %arg16[%c0_176, %c256_177] : memref<32x512xf32, #tpu.memory_space<vmem>>, vector<32x128xf32>
    %cst_178 = arith.constant dense<0.000000e+00> : vector<64x128xf32>
    %261 = tpu.matmul %259, %260, %cst_178 {dimension_numbers = #tpu.dot_dimension_numbers<[1], [0], [0], [1], [0, 0, 1, 1], [], []>} : vector<64x32xf32>, vector<32x128xf32>, vector<64x128xf32> -> vector<64x128xf32>
    %262 = arith.addf %257, %261 : vector<64x128xf32>
    %263 = vector.extract_strided_slice %238 {offsets = [2, 0, 0], sizes = [1, 64, 32], strides = [1, 1, 1]} : vector<3x64x32xf32> to vector<1x64x32xf32>
    %264 = vector.shape_cast %263 : vector<1x64x32xf32> to vector<64x32xf32>
    %c0_179 = arith.constant 0 : index
    %c384_180 = arith.constant 384 : index
    %265 = vector.load %arg16[%c0_179, %c384_180] : memref<32x512xf32, #tpu.memory_space<vmem>>, vector<32x128xf32>
    %cst_181 = arith.constant dense<0.000000e+00> : vector<64x128xf32>
    %266 = tpu.matmul %264, %265, %cst_181 {dimension_numbers = #tpu.dot_dimension_numbers<[1], [0], [0], [1], [0, 0, 1, 1], [], []>} : vector<64x32xf32>, vector<32x128xf32>, vector<64x128xf32> -> vector<64x128xf32>
    %267 = arith.addf %262, %266 : vector<64x128xf32>
    %268 = arith.maximumf %253, %267 : vector<64x128xf32>
    %269 = vector.broadcast %239 : vector<64x1xf32> to vector<64x128xf32>
    %270 = arith.addf %268, %269 : vector<64x128xf32>
    %cst_182 = arith.constant 0.000000e+00 : f32
    %271 = vector.broadcast %cst_182 : f32 to vector<64x128xf32>
    %272 = arith.maximumf %270, %271 : vector<64x128xf32>
    %c0_183 = arith.constant 0 : index
    %c0_184 = arith.constant 0 : index
    %273 = vector.load %arg17[%c0_183, %c0_184] : memref<64x384xf32, #tpu.memory_space<vmem>>, vector<64x128xf32>
    tpu.vector_store %arg17[%c0_183, %c0_184], %272 {strides = array<i32>} : memref<64x384xf32, #tpu.memory_space<vmem>>, vector<64x128xf32>,
    %274 = vector.extract_strided_slice %238 {offsets = [0, 0, 0], sizes = [1, 64, 32], strides = [1, 1, 1]} : vector<3x64x32xf32> to vector<1x64x32xf32>
    %275 = vector.shape_cast %274 : vector<1x64x32xf32> to vector<64x32xf32>
    %c0_185 = arith.constant 0 : index
    %c256_186 = arith.constant 256 : index
    %276 = vector.load %arg16[%c0_185, %c256_186] : memref<32x512xf32, #tpu.memory_space<vmem>>, vector<32x128xf32>
    %cst_187 = arith.constant dense<0.000000e+00> : vector<64x128xf32>
    %277 = tpu.matmul %275, %276, %cst_187 {dimension_numbers = #tpu.dot_dimension_numbers<[1], [0], [0], [1], [0, 0, 1, 1], [], []>} : vector<64x32xf32>, vector<32x128xf32>, vector<64x128xf32> -> vector<64x128xf32>
    %278 = vector.extract_strided_slice %238 {offsets = [1, 0, 0], sizes = [1, 64, 32], strides = [1, 1, 1]} : vector<3x64x32xf32> to vector<1x64x32xf32>
    %279 = vector.shape_cast %278 : vector<1x64x32xf32> to vector<64x32xf32>
    %c0_188 = arith.constant 0 : index
    %c384_189 = arith.constant 384 : index
    %280 = vector.load %arg16[%c0_188, %c384_189] : memref<32x512xf32, #tpu.memory_space<vmem>>, vector<32x128xf32>
    %cst_190 = arith.constant dense<0.000000e+00> : vector<64x128xf32>
    %281 = tpu.matmul %279, %280, %cst_190 {dimension_numbers = #tpu.dot_dimension_numbers<[1], [0], [0], [1], [0, 0, 1, 1], [], []>} : vector<64x32xf32>, vector<32x128xf32>, vector<64x128xf32> -> vector<64x128xf32>
    %282 = arith.addf %277, %281 : vector<64x128xf32>
    %283 = vector.extract_strided_slice %238 {offsets = [2, 0, 0], sizes = [1, 64, 32], strides = [1, 1, 1]} : vector<3x64x32xf32> to vector<1x64x32xf32>
    %284 = vector.shape_cast %283 : vector<1x64x32xf32> to vector<64x32xf32>
    %c0_191 = arith.constant 0 : index
    %c1_192 = arith.constant 1 : index
    %285 = vector.load %arg16[%c0_191, %c1_192] : memref<32x512xf32, #tpu.memory_space<vmem>>, vector<32x128xf32>
    %cst_193 = arith.constant dense<0.000000e+00> : vector<64x128xf32>
    %286 = tpu.matmul %284, %285, %cst_193 {dimension_numbers = #tpu.dot_dimension_numbers<[1], [0], [0], [1], [0, 0, 1, 1], [], []>} : vector<64x32xf32>, vector<32x128xf32>, vector<64x128xf32> -> vector<64x128xf32>
    %287 = arith.addf %282, %286 : vector<64x128xf32>
    %288 = vector.extract_strided_slice %238 {offsets = [0, 0, 0], sizes = [1, 64, 32], strides = [1, 1, 1]} : vector<3x64x32xf32> to vector<1x64x32xf32>
    %289 = vector.shape_cast %288 : vector<1x64x32xf32> to vector<64x32xf32>
    %c0_194 = arith.constant 0 : index
    %c384_195 = arith.constant 384 : index
    %290 = vector.load %arg16[%c0_194, %c384_195] : memref<32x512xf32, #tpu.memory_space<vmem>>, vector<32x128xf32>
    %cst_196 = arith.constant dense<0.000000e+00> : vector<64x128xf32>
    %291 = tpu.matmul %289, %290, %cst_196 {dimension_numbers = #tpu.dot_dimension_numbers<[1], [0], [0], [1], [0, 0, 1, 1], [], []>} : vector<64x32xf32>, vector<32x128xf32>, vector<64x128xf32> -> vector<64x128xf32>
    %292 = vector.extract_strided_slice %238 {offsets = [1, 0, 0], sizes = [1, 64, 32], strides = [1, 1, 1]} : vector<3x64x32xf32> to vector<1x64x32xf32>
    %293 = vector.shape_cast %292 : vector<1x64x32xf32> to vector<64x32xf32>
    %c0_197 = arith.constant 0 : index
    %c1_198 = arith.constant 1 : index
    %294 = vector.load %arg16[%c0_197, %c1_198] : memref<32x512xf32, #tpu.memory_space<vmem>>, vector<32x128xf32>
    %cst_199 = arith.constant dense<0.000000e+00> : vector<64x128xf32>
    %295 = tpu.matmul %293, %294, %cst_199 {dimension_numbers = #tpu.dot_dimension_numbers<[1], [0], [0], [1], [0, 0, 1, 1], [], []>} : vector<64x32xf32>, vector<32x128xf32>, vector<64x128xf32> -> vector<64x128xf32>
    %296 = arith.addf %291, %295 : vector<64x128xf32>
    %297 = vector.extract_strided_slice %238 {offsets = [2, 0, 0], sizes = [1, 64, 32], strides = [1, 1, 1]} : vector<3x64x32xf32> to vector<1x64x32xf32>
    %298 = vector.shape_cast %297 : vector<1x64x32xf32> to vector<64x32xf32>
    %c0_200 = arith.constant 0 : index
    %c129_201 = arith.constant 129 : index
    %299 = vector.load %arg16[%c0_200, %c129_201] : memref<32x512xf32, #tpu.memory_space<vmem>>, vector<32x128xf32>
    %cst_202 = arith.constant dense<0.000000e+00> : vector<64x128xf32>
    %300 = tpu.matmul %298, %299, %cst_202 {dimension_numbers = #tpu.dot_dimension_numbers<[1], [0], [0], [1], [0, 0, 1, 1], [], []>} : vector<64x32xf32>, vector<32x128xf32>, vector<64x128xf32> -> vector<64x128xf32>
    %301 = arith.addf %296, %300 : vector<64x128xf32>
    %302 = arith.maximumf %287, %301 : vector<64x128xf32>
    %303 = vector.broadcast %239 : vector<64x1xf32> to vector<64x128xf32>
    %304 = arith.addf %302, %303 : vector<64x128xf32>
    %cst_203 = arith.constant 0.000000e+00 : f32
    %305 = vector.broadcast %cst_203 : f32 to vector<64x128xf32>
    %306 = arith.maximumf %304, %305 : vector<64x128xf32>
    %c0_204 = arith.constant 0 : index
    %c128_205 = arith.constant 128 : index
    %307 = vector.load %arg17[%c0_204, %c128_205] : memref<64x384xf32, #tpu.memory_space<vmem>>, vector<64x128xf32>
    tpu.vector_store %arg17[%c0_204, %c128_205], %306 {strides = array<i32>} : memref<64x384xf32, #tpu.memory_space<vmem>>, vector<64x128xf32>,
    %c0_206 = arith.constant 0 : index
    %c0_207 = arith.constant 0 : index
    %c0_208 = arith.constant 0 : index
    %308 = vector.load %arg8[%c0_206, %c0_207, %c0_208] : memref<3x64x64xf32, #tpu.memory_space<vmem>>, vector<3x64x64xf32>
    %c0_209 = arith.constant 0 : index
    %c0_210 = arith.constant 0 : index
    %309 = vector.load %arg9[%c0_209, %c0_210] : memref<64x1xf32, #tpu.memory_space<vmem>>, vector<64x1xf32>
    %310 = vector.extract_strided_slice %308 {offsets = [0, 0, 0], sizes = [1, 64, 64], strides = [1, 1, 1]} : vector<3x64x64xf32> to vector<1x64x64xf32>
    %311 = vector.shape_cast %310 : vector<1x64x64xf32> to vector<64x64xf32>
    %c0_211 = arith.constant 0 : index
    %c0_212 = arith.constant 0 : index
    %312 = vector.load %arg17[%c0_211, %c0_212] : memref<64x384xf32, #tpu.memory_space<vmem>>, vector<64x128xf32>
    %cst_213 = arith.constant dense<0.000000e+00> : vector<64x128xf32>
    %313 = tpu.matmul %311, %312, %cst_213 {dimension_numbers = #tpu.dot_dimension_numbers<[1], [0], [0], [1], [0, 0, 1, 1], [], []>} : vector<64x64xf32>, vector<64x128xf32>, vector<64x128xf32> -> vector<64x128xf32>
    %314 = vector.extract_strided_slice %308 {offsets = [1, 0, 0], sizes = [1, 64, 64], strides = [1, 1, 1]} : vector<3x64x64xf32> to vector<1x64x64xf32>
    %315 = vector.shape_cast %314 : vector<1x64x64xf32> to vector<64x64xf32>
    %c0_214 = arith.constant 0 : index
    %c128_215 = arith.constant 128 : index
    %316 = vector.load %arg17[%c0_214, %c128_215] : memref<64x384xf32, #tpu.memory_space<vmem>>, vector<64x128xf32>
    %cst_216 = arith.constant dense<0.000000e+00> : vector<64x128xf32>
    %317 = tpu.matmul %315, %316, %cst_216 {dimension_numbers = #tpu.dot_dimension_numbers<[1], [0], [0], [1], [0, 0, 1, 1], [], []>} : vector<64x64xf32>, vector<64x128xf32>, vector<64x128xf32> -> vector<64x128xf32>
    %318 = arith.addf %313, %317 : vector<64x128xf32>
    %319 = vector.extract_strided_slice %308 {offsets = [2, 0, 0], sizes = [1, 64, 64], strides = [1, 1, 1]} : vector<3x64x64xf32> to vector<1x64x64xf32>
    %320 = vector.shape_cast %319 : vector<1x64x64xf32> to vector<64x64xf32>
    %c0_217 = arith.constant 0 : index
    %c1_218 = arith.constant 1 : index
    %321 = vector.load %arg17[%c0_217, %c1_218] : memref<64x384xf32, #tpu.memory_space<vmem>>, vector<64x128xf32>
    %cst_219 = arith.constant dense<0.000000e+00> : vector<64x128xf32>
    %322 = tpu.matmul %320, %321, %cst_219 {dimension_numbers = #tpu.dot_dimension_numbers<[1], [0], [0], [1], [0, 0, 1, 1], [], []>} : vector<64x64xf32>, vector<64x128xf32>, vector<64x128xf32> -> vector<64x128xf32>
    %323 = arith.addf %318, %322 : vector<64x128xf32>
    %324 = vector.extract_strided_slice %308 {offsets = [0, 0, 0], sizes = [1, 64, 64], strides = [1, 1, 1]} : vector<3x64x64xf32> to vector<1x64x64xf32>
    %325 = vector.shape_cast %324 : vector<1x64x64xf32> to vector<64x64xf32>
    %c0_220 = arith.constant 0 : index
    %c128_221 = arith.constant 128 : index
    %326 = vector.load %arg17[%c0_220, %c128_221] : memref<64x384xf32, #tpu.memory_space<vmem>>, vector<64x128xf32>
    %cst_222 = arith.constant dense<0.000000e+00> : vector<64x128xf32>
    %327 = tpu.matmul %325, %326, %cst_222 {dimension_numbers = #tpu.dot_dimension_numbers<[1], [0], [0], [1], [0, 0, 1, 1], [], []>} : vector<64x64xf32>, vector<64x128xf32>, vector<64x128xf32> -> vector<64x128xf32>
    %328 = vector.extract_strided_slice %308 {offsets = [1, 0, 0], sizes = [1, 64, 64], strides = [1, 1, 1]} : vector<3x64x64xf32> to vector<1x64x64xf32>
    %329 = vector.shape_cast %328 : vector<1x64x64xf32> to vector<64x64xf32>
    %c0_223 = arith.constant 0 : index
    %c1_224 = arith.constant 1 : index
    %330 = vector.load %arg17[%c0_223, %c1_224] : memref<64x384xf32, #tpu.memory_space<vmem>>, vector<64x128xf32>
    %cst_225 = arith.constant dense<0.000000e+00> : vector<64x128xf32>
    %331 = tpu.matmul %329, %330, %cst_225 {dimension_numbers = #tpu.dot_dimension_numbers<[1], [0], [0], [1], [0, 0, 1, 1], [], []>} : vector<64x64xf32>, vector<64x128xf32>, vector<64x128xf32> -> vector<64x128xf32>
    %332 = arith.addf %327, %331 : vector<64x128xf32>
    %333 = vector.extract_strided_slice %308 {offsets = [2, 0, 0], sizes = [1, 64, 64], strides = [1, 1, 1]} : vector<3x64x64xf32> to vector<1x64x64xf32>
    %334 = vector.shape_cast %333 : vector<1x64x64xf32> to vector<64x64xf32>
    %c0_226 = arith.constant 0 : index
    %c129_227 = arith.constant 129 : index
    %335 = vector.load %arg17[%c0_226, %c129_227] : memref<64x384xf32, #tpu.memory_space<vmem>>, vector<64x128xf32>
    %cst_228 = arith.constant dense<0.000000e+00> : vector<64x128xf32>
    %336 = tpu.matmul %334, %335, %cst_228 {dimension_numbers = #tpu.dot_dimension_numbers<[1], [0], [0], [1], [0, 0, 1, 1], [], []>} : vector<64x64xf32>, vector<64x128xf32>, vector<64x128xf32> -> vector<64x128xf32>
    %337 = arith.addf %332, %336 : vector<64x128xf32>
    %338 = arith.maximumf %323, %337 : vector<64x128xf32>
    %339 = vector.broadcast %309 : vector<64x1xf32> to vector<64x128xf32>
    %340 = arith.addf %338, %339 : vector<64x128xf32>
    %cst_229 = arith.constant 0.000000e+00 : f32
    %341 = vector.broadcast %cst_229 : f32 to vector<64x128xf32>
    %342 = arith.maximumf %340, %341 : vector<64x128xf32>
    %c0_230 = arith.constant 0 : index
    %c0_231 = arith.constant 0 : index
    %343 = vector.load %arg18[%c0_230, %c0_231] : memref<64x128xf32, #tpu.memory_space<vmem>>, vector<64x128xf32>
    tpu.vector_store %arg18[%c0_230, %c0_231], %342 {strides = array<i32>} : memref<64x128xf32, #tpu.memory_space<vmem>>, vector<64x128xf32>,
    %c0_232 = arith.constant 0 : index
    %c0_233 = arith.constant 0 : index
    %344 = vector.load %arg18[%c0_232, %c0_233] : memref<64x128xf32, #tpu.memory_space<vmem>>, vector<64x128xf32>
    %345 = tpu.transpose %344, [1, 0] : vector<64x128xf32> -> vector<128x64xf32>
    %c0_234 = arith.constant 0 : index
    %c0_235 = arith.constant 0 : index
    %346 = vector.load %arg19[%c0_234, %c0_235] : memref<128x64xf32, #tpu.memory_space<vmem>>, vector<128x64xf32>
    tpu.vector_store %arg19[%c0_234, %c0_235], %345 {strides = array<i32>} : memref<128x64xf32, #tpu.memory_space<vmem>>, vector<128x64xf32>,
    %c0_236 = arith.constant 0 : index
    %c0_237 = arith.constant 0 : index
    %347 = tpu.strided_load %arg19[%c0_236, %c0_237] {strides = array<i32: 16, 1>} : memref<128x64xf32, #tpu.memory_space<vmem>>, vector<8x64xf32>
    %c0_238 = arith.constant 0 : index
    %c0_239 = arith.constant 0 : index
    %348 = vector.load %arg20[%c0_238, %c0_239] : memref<8x832xf32, #tpu.memory_space<vmem>>, vector<8x64xf32>
    tpu.vector_store %arg20[%c0_238, %c0_239], %347 {strides = array<i32>} : memref<8x832xf32, #tpu.memory_space<vmem>>, vector<8x64xf32>,
    %c1_240 = arith.constant 1 : index
    %c0_241 = arith.constant 0 : index
    %349 = tpu.strided_load %arg19[%c1_240, %c0_241] {strides = array<i32: 16, 1>} : memref<128x64xf32, #tpu.memory_space<vmem>>, vector<8x64xf32>
    %c0_242 = arith.constant 0 : index
    %c64 = arith.constant 64 : index
    %350 = vector.load %arg20[%c0_242, %c64] : memref<8x832xf32, #tpu.memory_space<vmem>>, vector<8x64xf32>
    tpu.vector_store %arg20[%c0_242, %c64], %349 {strides = array<i32>} : memref<8x832xf32, #tpu.memory_space<vmem>>, vector<8x64xf32>,
    %c2_243 = arith.constant 2 : index
    %c0_244 = arith.constant 0 : index
    %351 = tpu.strided_load %arg19[%c2_243, %c0_244] {strides = array<i32: 16, 1>} : memref<128x64xf32, #tpu.memory_space<vmem>>, vector<8x64xf32>
    %c0_245 = arith.constant 0 : index
    %c128_246 = arith.constant 128 : index
    %352 = vector.load %arg20[%c0_245, %c128_246] : memref<8x832xf32, #tpu.memory_space<vmem>>, vector<8x64xf32>
    tpu.vector_store %arg20[%c0_245, %c128_246], %351 {strides = array<i32>} : memref<8x832xf32, #tpu.memory_space<vmem>>, vector<8x64xf32>,
    %c3_247 = arith.constant 3 : index
    %c0_248 = arith.constant 0 : index
    %353 = tpu.strided_load %arg19[%c3_247, %c0_248] {strides = array<i32: 16, 1>} : memref<128x64xf32, #tpu.memory_space<vmem>>, vector<8x64xf32>
    %c0_249 = arith.constant 0 : index
    %c192 = arith.constant 192 : index
    %354 = vector.load %arg20[%c0_249, %c192] : memref<8x832xf32, #tpu.memory_space<vmem>>, vector<8x64xf32>
    tpu.vector_store %arg20[%c0_249, %c192], %353 {strides = array<i32>} : memref<8x832xf32, #tpu.memory_space<vmem>>, vector<8x64xf32>,
    %c4_250 = arith.constant 4 : index
    %c0_251 = arith.constant 0 : index
    %355 = tpu.strided_load %arg19[%c4_250, %c0_251] {strides = array<i32: 16, 1>} : memref<128x64xf32, #tpu.memory_space<vmem>>, vector<8x64xf32>
    %c0_252 = arith.constant 0 : index
    %c256_253 = arith.constant 256 : index
    %356 = vector.load %arg20[%c0_252, %c256_253] : memref<8x832xf32, #tpu.memory_space<vmem>>, vector<8x64xf32>
    tpu.vector_store %arg20[%c0_252, %c256_253], %355 {strides = array<i32>} : memref<8x832xf32, #tpu.memory_space<vmem>>, vector<8x64xf32>,
    %c5_254 = arith.constant 5 : index
    %c0_255 = arith.constant 0 : index
    %357 = tpu.strided_load %arg19[%c5_254, %c0_255] {strides = array<i32: 16, 1>} : memref<128x64xf32, #tpu.memory_space<vmem>>, vector<8x64xf32>
    %c0_256 = arith.constant 0 : index
    %c320 = arith.constant 320 : index
    %358 = vector.load %arg20[%c0_256, %c320] : memref<8x832xf32, #tpu.memory_space<vmem>>, vector<8x64xf32>
    tpu.vector_store %arg20[%c0_256, %c320], %357 {strides = array<i32>} : memref<8x832xf32, #tpu.memory_space<vmem>>, vector<8x64xf32>,
    %c6_257 = arith.constant 6 : index
    %c0_258 = arith.constant 0 : index
    %359 = tpu.strided_load %arg19[%c6_257, %c0_258] {strides = array<i32: 16, 1>} : memref<128x64xf32, #tpu.memory_space<vmem>>, vector<8x64xf32>
    %c0_259 = arith.constant 0 : index
    %c384_260 = arith.constant 384 : index
    %360 = vector.load %arg20[%c0_259, %c384_260] : memref<8x832xf32, #tpu.memory_space<vmem>>, vector<8x64xf32>
    tpu.vector_store %arg20[%c0_259, %c384_260], %359 {strides = array<i32>} : memref<8x832xf32, #tpu.memory_space<vmem>>, vector<8x64xf32>,
    %c7_261 = arith.constant 7 : index
    %c0_262 = arith.constant 0 : index
    %361 = tpu.strided_load %arg19[%c7_261, %c0_262] {strides = array<i32: 16, 1>} : memref<128x64xf32, #tpu.memory_space<vmem>>, vector<8x64xf32>
    %c0_263 = arith.constant 0 : index
    %c448 = arith.constant 448 : index
    %362 = vector.load %arg20[%c0_263, %c448] : memref<8x832xf32, #tpu.memory_space<vmem>>, vector<8x64xf32>
    tpu.vector_store %arg20[%c0_263, %c448], %361 {strides = array<i32>} : memref<8x832xf32, #tpu.memory_space<vmem>>, vector<8x64xf32>,
    %c8_264 = arith.constant 8 : index
    %c0_265 = arith.constant 0 : index
    %363 = tpu.strided_load %arg19[%c8_264, %c0_265] {strides = array<i32: 16, 1>} : memref<128x64xf32, #tpu.memory_space<vmem>>, vector<8x64xf32>
    %c0_266 = arith.constant 0 : index
    %c512_267 = arith.constant 512 : index
    %364 = vector.load %arg20[%c0_266, %c512_267] : memref<8x832xf32, #tpu.memory_space<vmem>>, vector<8x64xf32>
    tpu.vector_store %arg20[%c0_266, %c512_267], %363 {strides = array<i32>} : memref<8x832xf32, #tpu.memory_space<vmem>>, vector<8x64xf32>,
    %c9_268 = arith.constant 9 : index
    %c0_269 = arith.constant 0 : index
    %365 = tpu.strided_load %arg19[%c9_268, %c0_269] {strides = array<i32: 16, 1>} : memref<128x64xf32, #tpu.memory_space<vmem>>, vector<8x64xf32>
    %c0_270 = arith.constant 0 : index
    %c576 = arith.constant 576 : index
    %366 = vector.load %arg20[%c0_270, %c576] : memref<8x832xf32, #tpu.memory_space<vmem>>, vector<8x64xf32>
    tpu.vector_store %arg20[%c0_270, %c576], %365 {strides = array<i32>} : memref<8x832xf32, #tpu.memory_space<vmem>>, vector<8x64xf32>,
    %c10_271 = arith.constant 10 : index
    %c0_272 = arith.constant 0 : index
    %367 = tpu.strided_load %arg19[%c10_271, %c0_272] {strides = array<i32: 16, 1>} : memref<128x64xf32, #tpu.memory_space<vmem>>, vector<8x64xf32>
    %c0_273 = arith.constant 0 : index
    %c640_274 = arith.constant 640 : index
    %368 = vector.load %arg20[%c0_273, %c640_274] : memref<8x832xf32, #tpu.memory_space<vmem>>, vector<8x64xf32>
    tpu.vector_store %arg20[%c0_273, %c640_274], %367 {strides = array<i32>} : memref<8x832xf32, #tpu.memory_space<vmem>>, vector<8x64xf32>,
    %c11_275 = arith.constant 11 : index
    %c0_276 = arith.constant 0 : index
    %369 = tpu.strided_load %arg19[%c11_275, %c0_276] {strides = array<i32: 16, 1>} : memref<128x64xf32, #tpu.memory_space<vmem>>, vector<8x64xf32>
    %c0_277 = arith.constant 0 : index
    %c704 = arith.constant 704 : index
    %370 = vector.load %arg20[%c0_277, %c704] : memref<8x832xf32, #tpu.memory_space<vmem>>, vector<8x64xf32>
    tpu.vector_store %arg20[%c0_277, %c704], %369 {strides = array<i32>} : memref<8x832xf32, #tpu.memory_space<vmem>>, vector<8x64xf32>,
    %c12_278 = arith.constant 12 : index
    %c0_279 = arith.constant 0 : index
    %371 = tpu.strided_load %arg19[%c12_278, %c0_279] {strides = array<i32: 16, 1>} : memref<128x64xf32, #tpu.memory_space<vmem>>, vector<8x64xf32>
    %c0_280 = arith.constant 0 : index
    %c768_281 = arith.constant 768 : index
    %372 = vector.load %arg20[%c0_280, %c768_281] : memref<8x832xf32, #tpu.memory_space<vmem>>, vector<8x64xf32>
    tpu.vector_store %arg20[%c0_280, %c768_281], %371 {strides = array<i32>} : memref<8x832xf32, #tpu.memory_space<vmem>>, vector<8x64xf32>,
    %c0_282 = arith.constant 0 : index
    %c0_283 = arith.constant 0 : index
    %373 = vector.load %arg20[%c0_282, %c0_283] : memref<8x832xf32, #tpu.memory_space<vmem>>, vector<8x832xf32>
    %c0_284 = arith.constant 0 : index
    %c0_285 = arith.constant 0 : index
    %374 = vector.load %arg10[%c0_284, %c0_285] : memref<832x64xf32, #tpu.memory_space<vmem>>, vector<832x64xf32>
    %cst_286 = arith.constant dense<0.000000e+00> : vector<8x64xf32>
    %375 = tpu.matmul %373, %374, %cst_286 {dimension_numbers = #tpu.dot_dimension_numbers<[1], [0], [0], [1], [0, 0, 1, 1], [], []>} : vector<8x832xf32>, vector<832x64xf32>, vector<8x64xf32> -> vector<8x64xf32>
    %c0_287 = arith.constant 0 : index
    %c0_288 = arith.constant 0 : index
    %376 = vector.load %arg11[%c0_287, %c0_288] : memref<1x64xf32, #tpu.memory_space<vmem>>, vector<1x64xf32>
    %377 = vector.broadcast %376 : vector<1x64xf32> to vector<8x64xf32>
    %378 = arith.addf %375, %377 : vector<8x64xf32>
    %cst_289 = arith.constant 0.000000e+00 : f32
    %379 = vector.broadcast %cst_289 : f32 to vector<8x64xf32>
    %380 = arith.maximumf %378, %379 : vector<8x64xf32>
    %c0_290 = arith.constant 0 : index
    %c0_291 = arith.constant 0 : index
    %381 = vector.load %arg12[%c0_290, %c0_291] : memref<64x1024xf32, #tpu.memory_space<vmem>>, vector<64x1024xf32>
    %cst_292 = arith.constant dense<0.000000e+00> : vector<8x1024xf32>
    %382 = tpu.matmul %380, %381, %cst_292 {dimension_numbers = #tpu.dot_dimension_numbers<[1], [0], [0], [1], [0, 0, 1, 1], [], []>} : vector<8x64xf32>, vector<64x1024xf32>, vector<8x1024xf32> -> vector<8x1024xf32>
    %c0_293 = arith.constant 0 : index
    %c0_294 = arith.constant 0 : index
    %383 = vector.load %arg13[%c0_293, %c0_294] : memref<1x1024xf32, #tpu.memory_space<vmem>>, vector<1x1024xf32>
    %384 = vector.broadcast %383 : vector<1x1024xf32> to vector<8x1024xf32>
    %385 = arith.addf %382, %384 : vector<8x1024xf32>
    %c0_295 = arith.constant 0 : index
    %c0_296 = arith.constant 0 : index
    %386 = vector.load %arg14[%c0_295, %c0_296] : memref<8x1024xf32, #tpu.memory_space<vmem>>, vector<8x1024xf32>
    tpu.vector_store %arg14[%c0_295, %c0_296], %385 {strides = array<i32>} : memref<8x1024xf32, #tpu.memory_space<vmem>>, vector<8x1024xf32>,
    return
  }
  func.func @transform_0(%arg0: i32) -> (i32, i32, i32) {
    %c0_i32 = arith.constant 0 : i32
    %c0_i32_0 = arith.constant 0 : i32
    %c0_i32_1 = arith.constant 0 : i32
    return %c0_i32, %c0_i32_0, %arg0 : i32, i32, i32
  }
  func.func @transform_1(%arg0: i32) -> (i32, i32) {
    %c0_i32 = arith.constant 0 : i32
    %c0_i32_0 = arith.constant 0 : i32
    %c0_i32_1 = arith.constant 0 : i32
    return %c0_i32, %c0_i32_0 : i32, i32
  }
  func.func @transform_2(%arg0: i32) -> (i32, i32) {
    %c0_i32 = arith.constant 0 : i32
    %c0_i32_0 = arith.constant 0 : i32
    %c0_i32_1 = arith.constant 0 : i32
    return %c0_i32, %c0_i32_0 : i32, i32
  }
  func.func @transform_3(%arg0: i32) -> (i32, i32, i32) {
    %c0_i32 = arith.constant 0 : i32
    %c0_i32_0 = arith.constant 0 : i32
    %c0_i32_1 = arith.constant 0 : i32
    %c0_i32_2 = arith.constant 0 : i32
    return %c0_i32, %c0_i32_0, %c0_i32_1 : i32, i32, i32
  }
  func.func @transform_4(%arg0: i32) -> (i32, i32) {
    %c0_i32 = arith.constant 0 : i32
    %c0_i32_0 = arith.constant 0 : i32
    %c0_i32_1 = arith.constant 0 : i32
    return %c0_i32, %c0_i32_0 : i32, i32
  }
  func.func @transform_5(%arg0: i32) -> (i32, i32, i32) {
    %c0_i32 = arith.constant 0 : i32
    %c0_i32_0 = arith.constant 0 : i32
    %c0_i32_1 = arith.constant 0 : i32
    %c0_i32_2 = arith.constant 0 : i32
    return %c0_i32, %c0_i32_0, %c0_i32_1 : i32, i32, i32
  }
  func.func @transform_6(%arg0: i32) -> (i32, i32) {
    %c0_i32 = arith.constant 0 : i32
    %c0_i32_0 = arith.constant 0 : i32
    %c0_i32_1 = arith.constant 0 : i32
    return %c0_i32, %c0_i32_0 : i32, i32
  }
  func.func @transform_7(%arg0: i32) -> (i32, i32, i32) {
    %c0_i32 = arith.constant 0 : i32
    %c0_i32_0 = arith.constant 0 : i32
    %c0_i32_1 = arith.constant 0 : i32
    %c0_i32_2 = arith.constant 0 : i32
    return %c0_i32, %c0_i32_0, %c0_i32_1 : i32, i32, i32
  }
  func.func @transform_8(%arg0: i32) -> (i32, i32) {
    %c0_i32 = arith.constant 0 : i32
    %c0_i32_0 = arith.constant 0 : i32
    %c0_i32_1 = arith.constant 0 : i32
    return %c0_i32, %c0_i32_0 : i32, i32
  }
  func.func @transform_9(%arg0: i32) -> (i32, i32) {
    %c0_i32 = arith.constant 0 : i32
    %c0_i32_0 = arith.constant 0 : i32
    %c0_i32_1 = arith.constant 0 : i32
    return %c0_i32, %c0_i32_0 : i32, i32
  }
  func.func @transform_10(%arg0: i32) -> (i32, i32) {
    %c0_i32 = arith.constant 0 : i32
    %c0_i32_0 = arith.constant 0 : i32
    %c0_i32_1 = arith.constant 0 : i32
    return %c0_i32, %c0_i32_0 : i32, i32
  }
  func.func @transform_11(%arg0: i32) -> (i32, i32) {
    %c0_i32 = arith.constant 0 : i32
    %c0_i32_0 = arith.constant 0 : i32
    %c0_i32_1 = arith.constant 0 : i32
    return %c0_i32, %c0_i32_0 : i32, i32
  }
  func.func @transform_12(%arg0: i32) -> (i32, i32) {
    %c0_i32 = arith.constant 0 : i32
    %c0_i32_0 = arith.constant 0 : i32
    %c0_i32_1 = arith.constant 0 : i32
    return %c0_i32, %c0_i32_0 : i32, i32
  }
  func.func @transform_13(%arg0: i32) -> (i32, i32) {
    %c0_i32 = arith.constant 0 : i32
    %c0_i32_0 = arith.constant 0 : i32
    return %arg0, %c0_i32 : i32, i32
  }
}

</mosaic_0001>

<bundles_post_ra>
// kernel: conv_se_cont_forward.1
= control target key start
LH: loop header
LB: loop body
LE: loop exit
PB: predicated region body
PF: predicated region fallthrough
CT: control target
= control target key end

     0   :  { %vm75_vm0 = vcmask 1041408   ;;  %vm62_vm1 = vcmask 80896   ;;  %vm10520_vm2 = vmmov 1   ;;  %v10521_v3 = vmov 0   ;;  %s10522_s16 = smov 127   ;;  %s12768_s0 = inlined_call_operand.vmem [shape: f32[16,10,128], index: 0, kind: input, shape index: {}]   ;;  %s12769_s1 = inlined_call_operand.vmem [shape: f32[32,10], index: 1, kind: input, shape index: {}]   ;;  %s12770_s2 = inlined_call_operand.vmem [shape: f32[32,1], index: 2, kind: input, shape index: {}]   ;;  %s12771_s3 = inlined_call_operand.vmem [shape: f32[3,32,32], index: 3, kind: input, shape index: {}]   ;;  %s12772_s4 = inlined_call_operand.vmem [shape: f32[32,1], index: 4, kind: input, shape index: {}]   ;;  %s12773_s5 = inlined_call_operand.vmem [shape: f32[3,64,32], index: 5, kind: input, shape index: {}]   ;;  %s12774_s6 = inlined_call_operand.vmem [shape: f32[64,1], index: 6, kind: input, shape index: {}]   ;;  %s12775_s7 = inlined_call_operand.vmem [shape: f32[3,64,64], index: 7, kind: input, shape index: {}]   ;;  %s12776_s8 = inlined_call_operand.vmem [shape: f32[64,1], index: 8, kind: input, shape index: {}]   ;;  %s12777_s9 = inlined_call_operand.vmem [shape: f32[832,64], index: 9, kind: input, shape index: {}]   ;;  %s12778_s11 = inlined_call_operand.vmem [shape: f32[64,1024], index: 11, kind: input, shape index: {}]   ;;  %s12779_s10 = inlined_call_operand.vmem [shape: f32[1,64], index: 10, kind: input, shape index: {}]   ;;  %s12780_s12 = inlined_call_operand.vmem [shape: f32[1,1024], index: 12, kind: input, shape index: {}]   ;;  %s12781_s13 = inlined_call_operand.vmem [shape: f32[8,1024], index: 13, kind: output, shape index: {}]  }
   0x1   :  { %v60_v0 = vld [vmem:[%s12768_s0] sm:$0xff]  ;;  %v61_v1 = vld [vmem:[%s12768_s0 + $0x8] sm:$0x3]  ;;  %vm10603_vm3 = vmpackc.low %vm75_vm0, %vm10520_vm2  ;;  %10358 = vset.pattern.permute.xlu0 %v10521_v3  ;;  %10359 = vset.pattern.permute.xlu1 %v10521_v3  ;;  %vm1701_vm4 = vcmask 261120   ;;  %vm3610_vm5 = vcmask 1039360   ;;  %vm5671_vm6 = vcmask 523264  }
   0x2   :  { %v9539_v4 = vpack.c.bf16 %v61_v1, %v60_v0  ;;  %v10610_v5 = vld [vmem:[%s12769_s1] sm:$0xff]  ;;  %v10617_v6 = vld [vmem:[%s12769_s1 + $0x8] sm:$0xff]  ;;  %v7623_v7 = vld [vmem:[%s12768_s0 + $0x10] sm:$0xff]  ;;  %vm6690_vm7 = vcmask 1048064   ;;  %vm10526_vm8 = vmmov 0  }
   0x3   :  { %8620 = vmatprep.mubr.msk.f32.mxu1 %vm62_vm1, %v10610_v5  ;;  %v7624_v8 = vld [vmem:[%s12768_s0 + $0x18] sm:$0x3]  ;;  %8640 = vmatprep.mubr.msk.f32.mxu0 %vm62_vm1, %v10610_v5  ;;  %v7630_v10 = vld [vmem:[%s12768_s0 + $0x20] sm:$0xff]  ;;  %v7631_v11 = vld [vmem:[%s12768_s0 + $0x28] sm:$0x3] }
   0x4   :  { %9541 = vmatprep.subr.msk.bf16.mxu1 %vm10603_vm3, %v9539_v4  ;;  %v9545_v9 = vpack.c.bf16 %v7624_v8, %v7623_v7  ;;  %v7637_v12 = vld [vmem:[%s12768_s0 + $0x30] sm:$0xff]  ;;  %v9551_v13 = vpack.c.bf16 %v7631_v11, %v7630_v10  ;;  %v7638_v14 = vld [vmem:[%s12768_s0 + $0x38] sm:$0x3]  ;;  %v7644_v15 = vld [vmem:[%s12768_s0 + $0x40] sm:$0xff] }
   0x5   :  { %9544 = vmatpush3.bf16.msk.msra.mxu1 %vm10603_vm3, %v9539_v4  ;;  %v7645_v16 = vld [vmem:[%s12768_s0 + $0x48] sm:$0x3]  ;;  %v10652_v17 = vld [vmem:[%s12769_s1 + $0x10] sm:$0xff]  ;;  %v9557_v18 = vpack.c.bf16 %v7638_v14, %v7637_v12  ;;  %v7658_v20 = vld [vmem:[%s12768_s0 + $0x60] sm:$0xff] }
   0x6   :  { %9547 = vmatprep.subr.msk.bf16.mxu1 %vm10603_vm3, %v9545_v9  ;;  %v9563_v19 = vpack.c.bf16 %v7645_v16, %v7644_v15  ;;  %9553 = vmatprep.subr.msk.bf16.mxu0 %vm10603_vm3, %v9551_v13  ;;  %v7659_v21 = vld [vmem:[%s12768_s0 + $0x68] sm:$0x3]  ;;  %v10673_v22 = vld [vmem:[%s12769_s1 + $0x18] sm:$0xff]  ;;  %v7651_v24 = vld [vmem:[%s12768_s0 + $0x50] sm:$0xff] }
   0x7   :  { %9556 = vmatpush3.bf16.msk.msra.mxu0 %vm10603_vm3, %v9551_v13  ;;  %v9575_v23 = vpack.c.bf16 %v7659_v21, %v7658_v20  ;;  %v7652_v25 = vld [vmem:[%s12768_s0 + $0x58] sm:$0x3]  ;;  %v56_v26 = vld [vmem:[%s12770_s2] sm:$0xff]  ;;  %v58_v27 = vld [vmem:[%s12770_s2 + $0x10] sm:$0xff] }
   0x8   :  { %8621 = vmatmul.mubr.msk.f32.vlgmr.msra.gmra.mrb[0].mxu1 %vm62_vm1, %v10617_v6  ;;  %9565 = vmatprep.subr.msk.bf16.mxu0 %vm10603_vm3, %v9563_v19  ;;  %v9569_v28 = vpack.c.bf16 %v7652_v25, %v7651_v24  ;;  %v7672_v29 = vld [vmem:[%s12768_s0 + $0x80] sm:$0xff]  ;;  %v7673_v30 = vld [vmem:[%s12768_s0 + $0x88] sm:$0x3]  ;;  %v59_v32 = vld [vmem:[%s12770_s2 + $0x18] sm:$0xff] }
   0x9   :  { %8623 = vmatprep.mubr.msk.f32.mxu1 %vm62_vm1, %v10652_v17  ;;  %9550 = vmatpush3.bf16.msk.msra.mxu1 %vm10603_vm3, %v9545_v9  ;;  %v57_v31 = vld [vmem:[%s12770_s2 + $0x8] sm:$0xff]  ;;  %v9587_v33 = vpack.c.bf16 %v7673_v30, %v7672_v29  ;;  %v7665_v34 = vld [vmem:[%s12768_s0 + $0x70] sm:$0xff]  ;;  %v7666_v35 = vld [vmem:[%s12768_s0 + $0x78] sm:$0x3] }
   0xa   :  { %9559 = vmatprep.subr.msk.bf16.mxu1 %vm10603_vm3, %v9557_v18  ;;  %8641 = vmatmul.mubr.msk.f32.vlgmr.msra.gmra.mrb[0].mxu0 %vm62_vm1, %v10617_v6  ;;  %v9581_v36 = vpack.c.bf16 %v7666_v35, %v7665_v34  ;;  %v7686_v37 = vld [vmem:[%s12768_s0 + $0xa0] sm:$0xff]  ;;  %v7687_v38 = vld [vmem:[%s12768_s0 + $0xa8] sm:$0x3]  ;;  %v7679_v40 = vld [vmem:[%s12768_s0 + $0x90] sm:$0xff] }
   0xb   :  { %8643 = vmatprep.mubr.msk.f32.mxu0 %vm62_vm1, %v10652_v17  ;;  %9568 = vmatpush3.bf16.msk.msra.mxu0 %vm10603_vm3, %v9563_v19  ;;  %v9599_v39 = vpack.c.bf16 %v7687_v38, %v7686_v37  ;;  %v7680_v41 = vld [vmem:[%s12768_s0 + $0x98] sm:$0x3]  ;;  %v7700_v43 = vld [vmem:[%s12768_s0 + $0xc0] sm:$0xff]  ;;  %v7701_v44 = vld [vmem:[%s12768_s0 + $0xc8] sm:$0x3] }
   0xc   :  { %8624 = vmatmul.mubr.msk.f32.gmra.mrb[2].mxu1 %vm62_vm1, %v10673_v22  ;;  %9577 = vmatprep.subr.msk.bf16.mxu0 %vm10603_vm3, %v9575_v23  ;;  %v9593_v42 = vpack.c.bf16 %v7680_v41, %v7679_v40  ;;  %v9611_v45 = vpack.c.bf16 %v7701_v44, %v7700_v43  ;;  %v7693_v46 = vld [vmem:[%s12768_s0 + $0xb0] sm:$0xff]  ;;  %v7694_v47 = vld [vmem:[%s12768_s0 + $0xb8] sm:$0x3]  ;;  %v7714_v49 = vld [vmem:[%s12768_s0 + $0xe0] sm:$0xff] }
   0xd   :  { %8630 = vmatprep.mubr.msk.f32.mxu1 %vm62_vm1, %v10610_v5  ;;  %261 = vperm.xlu0 %10358, %v56_v26   ;;  %v9605_v48 = vpack.c.bf16 %v7694_v47, %v7693_v46  ;;  %v7715_v50 = vld [vmem:[%s12768_s0 + $0xe8] sm:$0x3]  ;;  %v7707_v52 = vld [vmem:[%s12768_s0 + $0xd0] sm:$0xff]  ;;  %v7708_v53 = vld [vmem:[%s12768_s0 + $0xd8] sm:$0x3] }
   0xe   :  { %8644 = vmatmul.mubr.msk.f32.gmra.mrb[2].mxu0 %vm62_vm1, %v10673_v22  ;;  %271 = vperm.xlu1 %10359, %v58_v27   ;;  %v9623_v51 = vpack.c.bf16 %v7715_v50, %v7714_v49  ;;  %v9617_v54 = vpack.c.bf16 %v7708_v53, %v7707_v52  ;;  %v7721_v55 = vld [vmem:[%s12768_s0 + $0xf0] sm:$0xff]  ;;  %v7722_v56 = vld [vmem:[%s12768_s0 + $0xf8] sm:$0x3]  ;;  %v10924_v58 = vld [vmem:[%s12771_s3 + $0x20] sm:$0xff] }
   0xf   :  { %8660 = vmatprep.mubr.msk.f32.mxu0 %vm62_vm1, %v10610_v5  ;;  %v9629_v57 = vpack.c.bf16 %v7722_v56, %v7721_v55 }
  0x10   :  { %8631 = vmatmul.mubr.msk.f32.vlgmr.msra.gmra.mrb[4].mxu1 %vm62_vm1, %v10617_v6 }
  0x11   :  { %8633 = vmatprep.mubr.msk.f32.mxu1 %vm62_vm1, %v10652_v17  ;;  %9562 = vmatpush3.bf16.msk.msra.mxu1 %vm10603_vm3, %v9557_v18 }
  0x12   :  { %9571 = vmatprep.subr.msk.bf16.mxu1 %vm10603_vm3, %v9569_v28  ;;  %266 = vperm.xlu0 %10358, %v57_v31  }
  0x13   :  { %8661 = vmatmul.mubr.msk.f32.vlgmr.msra.gmra.mrb[4].mxu0 %vm62_vm1, %v10617_v6  ;;  %276 = vperm.xlu1 %10359, %v59_v32  }
  0x14   :  { %8634 = vmatmul.mubr.msk.f32.gmra.mrb[6].mxu1 %vm62_vm1, %v10673_v22  ;;  %8663 = vmatprep.mubr.msk.f32.mxu0 %vm62_vm1, %v10652_v17 }
  0x15   :  { %8650 = vmatprep.mubr.msk.f32.mxu1 %vm62_vm1, %v10610_v5  ;;  %9580 = vmatpush3.bf16.msk.msra.mxu0 %vm10603_vm3, %v9575_v23 }
  0x16   :  { %9589 = vmatprep.subr.msk.bf16.mxu0 %vm10603_vm3, %v9587_v33 }
  0x17   :  { %8664 = vmatmul.mubr.msk.f32.gmra.mrb[6].mxu0 %vm62_vm1, %v10673_v22 }
  0x18   :  { %8651 = vmatmul.mubr.msk.f32.vlgmr.msra.gmra.mrb[8].mxu1 %vm62_vm1, %v10617_v6  ;;  %8680 = vmatprep.mubr.msk.f32.mxu0 %vm62_vm1, %v10610_v5 }
  0x19   :  { %8653 = vmatprep.mubr.msk.f32.mxu1 %vm62_vm1, %v10652_v17  ;;  %9574 = vmatpush3.bf16.msk.msra.mxu1 %vm10603_vm3, %v9569_v28 }
  0x1a   :  { %9583 = vmatprep.subr.msk.bf16.mxu1 %vm10603_vm3, %v9581_v36 }
  0x1b   :  { %8681 = vmatmul.mubr.msk.f32.vlgmr.msra.gmra.mrb[8].mxu0 %vm62_vm1, %v10617_v6 }
  0x1c   :  { %8654 = vmatmul.mubr.msk.f32.gmra.mrb[10].mxu1 %vm62_vm1, %v10673_v22  ;;  %8683 = vmatprep.mubr.msk.f32.mxu0 %vm62_vm1, %v10652_v17 }
  0x1d   :  { %8670 = vmatprep.mubr.msk.f32.mxu1 %vm62_vm1, %v10610_v5  ;;  %9592 = vmatpush3.bf16.msk.msra.mxu0 %vm10603_vm3, %v9587_v33 }
  0x1e   :  { %9601 = vmatprep.subr.msk.bf16.mxu0 %vm10603_vm3, %v9599_v39 }
  0x1f   :  { %8684 = vmatmul.mubr.msk.f32.gmra.mrb[10].mxu0 %vm62_vm1, %v10673_v22 }
  0x20   :  { %8671 = vmatmul.mubr.msk.f32.vlgmr.msra.gmra.mrb[12].mxu1 %vm62_vm1, %v10617_v6  ;;  %8700 = vmatprep.mubr.msk.f32.mxu0 %vm62_vm1, %v10610_v5 }
  0x21   :  { %8673 = vmatprep.mubr.msk.f32.mxu1 %vm62_vm1, %v10652_v17  ;;  %9586 = vmatpush3.bf16.msk.msra.mxu1 %vm10603_vm3, %v9581_v36 }
  0x22   :  { %9595 = vmatprep.subr.msk.bf16.mxu1 %vm10603_vm3, %v9593_v42 }
  0x23   :  { %8701 = vmatmul.mubr.msk.f32.vlgmr.msra.gmra.mrb[12].mxu0 %vm62_vm1, %v10617_v6 }
  0x24   :  { %8674 = vmatmul.mubr.msk.f32.gmra.mrb[14].mxu1 %vm62_vm1, %v10673_v22  ;;  %8703 = vmatprep.mubr.msk.f32.mxu0 %vm62_vm1, %v10652_v17 }
  0x25   :  { %8690 = vmatprep.mubr.msk.f32.mxu1 %vm62_vm1, %v10610_v5  ;;  %9604 = vmatpush3.bf16.msk.msra.mxu0 %vm10603_vm3, %v9599_v39 }
  0x26   :  { %9613 = vmatprep.subr.msk.bf16.mxu0 %vm10603_vm3, %v9611_v45 }
  0x27   :  { %8704 = vmatmul.mubr.msk.f32.gmra.mrb[14].mxu0 %vm62_vm1, %v10673_v22 }
  0x28   :  { %8691 = vmatmul.mubr.msk.f32.vlgmr.msra.gmra.mrb[16].mxu1 %vm62_vm1, %v10617_v6  ;;  %8720 = vmatprep.mubr.msk.f32.mxu0 %vm62_vm1, %v10610_v5 }
  0x29   :  { %8693 = vmatprep.mubr.msk.f32.mxu1 %vm62_vm1, %v10652_v17  ;;  %9598 = vmatpush3.bf16.msk.msra.mxu1 %vm10603_vm3, %v9593_v42 }
  0x2a   :  { %9607 = vmatprep.subr.msk.bf16.mxu1 %vm10603_vm3, %v9605_v48 }
  0x2b   :  { %8721 = vmatmul.mubr.msk.f32.vlgmr.msra.gmra.mrb[16].mxu0 %vm62_vm1, %v10617_v6 }
  0x2c   :  { %8694 = vmatmul.mubr.msk.f32.gmra.mrb[18].mxu1 %vm62_vm1, %v10673_v22  ;;  %8723 = vmatprep.mubr.msk.f32.mxu0 %vm62_vm1, %v10652_v17 }
  0x2d   :  { %8710 = vmatprep.mubr.msk.f32.mxu1 %vm62_vm1, %v10610_v5  ;;  %9616 = vmatpush3.bf16.msk.msra.mxu0 %vm10603_vm3, %v9611_v45 }
  0x2e   :  { %9625 = vmatprep.subr.msk.bf16.mxu0 %vm10603_vm3, %v9623_v51 }
  0x2f   :  { %8724 = vmatmul.mubr.msk.f32.gmra.mrb[18].mxu0 %vm62_vm1, %v10673_v22 }
  0x30   :  { %8711 = vmatmul.mubr.msk.f32.vlgmr.msra.gmra.mrb[20].mxu1 %vm62_vm1, %v10617_v6  ;;  %8740 = vmatprep.mubr.msk.f32.mxu0 %vm62_vm1, %v10610_v5 }
  0x31   :  { %8713 = vmatprep.mubr.msk.f32.mxu1 %vm62_vm1, %v10652_v17  ;;  %9610 = vmatpush3.bf16.msk.msra.mxu1 %vm10603_vm3, %v9605_v48 }
  0x32   :  { %9619 = vmatprep.subr.msk.bf16.mxu1 %vm10603_vm3, %v9617_v54 }
  0x33   :  { %8741 = vmatmul.mubr.msk.f32.vlgmr.msra.gmra.mrb[20].mxu0 %vm62_vm1, %v10617_v6 }
  0x34   :  { %8714 = vmatmul.mubr.msk.f32.gmra.mrb[22].mxu1 %vm62_vm1, %v10673_v22  ;;  %8743 = vmatprep.mubr.msk.f32.mxu0 %vm62_vm1, %v10652_v17 }
  0x35   :  { %8730 = vmatprep.mubr.msk.f32.mxu1 %vm62_vm1, %v10610_v5  ;;  %9628 = vmatpush3.bf16.msk.msra.mxu0 %vm10603_vm3, %v9623_v51 }
  0x37   :  { %8744 = vmatmul.mubr.msk.f32.gmra.mrb[22].mxu0 %vm62_vm1, %v10673_v22 }
  0x38   :  { %8731 = vmatmul.mubr.msk.f32.vlgmr.msra.gmra.mrb[24].mxu1 %vm62_vm1, %v10617_v6  ;;  %8760 = vmatprep.mubr.msk.f32.mxu0 %vm62_vm1, %v10610_v5 }
  0x39   :  { %8733 = vmatprep.mubr.msk.f32.mxu1 %vm62_vm1, %v10652_v17  ;;  %9622 = vmatpush3.bf16.msk.msra.mxu1 %vm10603_vm3, %v9617_v54 }
  0x3a   :  { %9631 = vmatprep.subr.msk.bf16.mxu1 %vm10603_vm3, %v9629_v57 }
  0x3b   :  { %8761 = vmatmul.mubr.msk.f32.vlgmr.msra.gmra.mrb[24].mxu0 %vm62_vm1, %v10617_v6 }
  0x3c   :  { %8734 = vmatmul.mubr.msk.f32.gmra.mrb[26].mxu1 %vm62_vm1, %v10673_v22  ;;  %8763 = vmatprep.mubr.msk.f32.mxu0 %vm62_vm1, %v10652_v17 }
  0x3d   :  { %8750 = vmatprep.mubr.msk.f32.mxu1 %vm62_vm1, %v10610_v5 }
  0x3f   :  { %8764 = vmatmul.mubr.msk.f32.gmra.mrb[26].mxu0 %vm62_vm1, %v10673_v22 }
  0x40   :  { %8751 = vmatmul.mubr.msk.f32.vlgmr.msra.gmra.mrb[28].mxu1 %vm62_vm1, %v10617_v6  ;;  %8784 = vmatprep.mubr.msk.f32.mxu0 %vm1701_vm4, %v10924_v58 }
  0x41   :  { %8753 = vmatprep.mubr.msk.f32.mxu1 %vm62_vm1, %v10652_v17  ;;  %9634 = vmatpush3.bf16.msk.msra.mxu1 %vm10603_vm3, %v9629_v57 }
  0x44   :  { %8754 = vmatmul.mubr.msk.f32.gmra.mrb[30].mxu1 %vm62_vm1, %v10673_v22 }
  0x45   :  { %8770 = vmatprep.mubr.msk.f32.mxu1 %vm62_vm1, %v10610_v5 }
  0x48   :  { %8771 = vmatmul.mubr.msk.f32.vlgmr.msra.gmra.mrb[32].mxu1 %vm62_vm1, %v10617_v6 }
  0x49   :  { %8773 = vmatprep.mubr.msk.f32.mxu1 %vm62_vm1, %v10652_v17 }
  0x4c   :  { %8774 = vmatmul.mubr.msk.f32.gmra.mrb[34].mxu1 %vm62_vm1, %v10673_v22 }
  0x4d   :  { %8826 = vmatprep.mubr.msk.f32.mxu1 %vm1701_vm4, %v10924_v58 }
  0x8c   :  { %v10930_v61 = vpop.permute.xlu0 %261 }
  0x8d   :  { %v10932_v2 = vpop.permute.xlu1 %271 }
  0x91   :  { %v10934_v3 = vpop.permute.xlu0 %266 }
  0x92   :  { %v10936_v10 = vpop.permute.xlu1 %276 }
  0xdb   :  { %v8622_v59 = vpop.f32.mrb[0].mxu1 }
  0xdc   :  { %v145_v60 = vpop.f32.mrb[1].mxu1 }
  0xdd   :  { %v8642_v62 = vpop.f32.mrb[0].mxu0 }
  0xde   :  { %v363_v0 = vpop.f32.mrb[1].mxu0 }
  0xdf   :  { %v8625_v63 = vpop.f32.mrb[2].mxu1 }
  0xe0   :  { %v155_v1 = vpop.f32.mrb[3].mxu1 }
  0xe1   :  { %v8645_v4 = vpop.f32.mrb[2].mxu0 }
  0xe2   :  { %v373_v6 = vpop.f32.mrb[3].mxu0 }
  0xe3   :  { %v8632_v5 = vpop.f32.mrb[4].mxu1 }
  0xe4   :  { %v256_v7 = vmax.f32 %v8622_v59, %v8632_v5  ;;  %v236_v8 = vpop.f32.mrb[5].mxu1 }
  0xe5   :  { %v255_v9 = vmax.f32 %v145_v60, %v236_v8 }
  0xe6   :  { %v8662_v11 = vpop.f32.mrb[4].mxu0  ;;  %v280_v12 = vadd.f32 %v10934_v3, %v256_v7 }
  0xe7   :  { %v279_v13 = vadd.f32 %v10930_v61, %v255_v9  ;;  %v8635_v14 = vpop.f32.mrb[6].mxu1  ;;  %v561_v15 = vpop.f32.mrb[5].mxu0 }
  0xe8   :  { %v258_v16 = vmax.f32 %v8625_v63, %v8635_v14  ;;  %v246_v17 = vpop.f32.mrb[7].mxu1  ;;  %v284_v18 = vmax.f32 %v280_v12, 0.0  ;;  %v10980_v12 = vld [vmem:[%s12771_s3 + $0x28] sm:$0xff] }
  0xe9   :  { %v283_v19 = vmax.f32 %v279_v13, 0.0  ;;  %v257_v20 = vmax.f32 %v155_v1, %v246_v17 }
  0xea   :  { %v8665_v21 = vpop.f32.mrb[6].mxu0  ;;  %v282_v22 = vadd.f32 %v10936_v10, %v258_v16 }
  0xeb   :  { %v281_v23 = vadd.f32 %v10932_v2, %v257_v20  ;;  %v8652_v24 = vpop.f32.mrb[8].mxu1  ;;  %v571_v25 = vpop.f32.mrb[7].mxu0  ;;  %v10942_v26 = vpack.c.bf16 %v284_v18, %v283_v19 }
  0xec   :  { %v474_v27 = vmax.f32 %v8642_v62, %v8652_v24  ;;  %v454_v28 = vpop.f32.mrb[9].mxu1  ;;  %v286_v29 = vmax.f32 %v282_v22, 0.0  ;;  %v10999_v24 = vld [vmem:[%s12771_s3 + $0x30] sm:$0xff] }
  0xed   :  { %v285_v30 = vmax.f32 %v281_v23, 0.0  ;;  %v473_v31 = vmax.f32 %v363_v0, %v454_v28  ;;  %v11007_v28 = vld [vmem:[%s12771_s3 + $0x38] sm:$0xff] }
  0xee   :  { %v478_v32 = vadd.f32 %v474_v27, %v10934_v3  ;;  %v10945_v33 = vpop.f32.mrb[8].mxu0 }
  0xef   :  { %v477_v34 = vadd.f32 %v473_v31, %v10930_v61  ;;  %v8655_v35 = vpop.f32.mrb[10].mxu1  ;;  %v10948_v36 = vpop.f32.mrb[9].mxu0  ;;  %v10950_v37 = vpack.c.bf16 %v286_v29, %v285_v30 }
  0xf0   :  { %v482_v38 = vmax.f32 %v478_v32, 0.0  ;;  %v476_v39 = vmax.f32 %v8645_v4, %v8655_v35  ;;  %v464_v40 = vpop.f32.mrb[11].mxu1 }
  0xf1   :  { %v481_v41 = vmax.f32 %v477_v34, 0.0  ;;  %v475_v42 = vmax.f32 %v373_v6, %v464_v40  ;;  %v1690_v40 = vld [vmem:[%s12772_s4 + $0x8] sm:$0xff] }
  0xf2   :  { %v480_v43 = vadd.f32 %v476_v39, %v10936_v10  ;;  %v10360_v44 = vpack.i.bf16 %v482_v38, %v284_v18  ;;  %v10953_v45 = vpop.f32.mrb[10].mxu0 }
  0xf3   :  { %v479_v46 = vadd.f32 %v475_v42, %v10932_v2  ;;  %v8672_v47 = vpop.f32.mrb[12].mxu1  ;;  %v10365_v48 = vpack.i.bf16 %v481_v41, %v283_v19  ;;  %v10956_v49 = vpack.c.bf16 %v482_v38, %v481_v41  ;;  %v10958_v50 = vpop.f32.mrb[11].mxu0  ;;  %v11035_v42 = vld [vmem:[%s12771_s3] sm:$0xff] }
  0xf4   :  { %v484_v51 = vmax.f32 %v480_v43, 0.0  ;;  %v672_v52 = vmax.f32 %v8662_v11, %v8672_v47  ;;  %10361 = vrot.lane.b32.xlu1 %v10360_v44, %s10522_s16  ;;  %v652_v53 = vpop.f32.mrb[13].mxu1 }
  0xf5   :  { %v483_v54 = vmax.f32 %v479_v46, 0.0  ;;  %v671_v55 = vmax.f32 %v561_v15, %v652_v53  ;;  %10366 = vrot.lane.b32.xlu0 %v10365_v48, %s10522_s16  ;;  %9636 = vmatprep.subr.bf16.mxu0 %v10956_v49 }
  0xf6   :  { %v676_v56 = vadd.f32 %v672_v52, %v10934_v3  ;;  %9638 = vmatpush3.bf16.msra.mxu0 %v10956_v49  ;;  %v10375_v57 = vpack.i.bf16 %v484_v51, %v286_v29  ;;  %v10965_v59 = vpop.f32.mrb[12].mxu0  ;;  %v11054_v52 = vld [vmem:[%s12771_s3 + $0x8] sm:$0xff] }
  0xf7   :  { %v675_v60 = vadd.f32 %v671_v55, %v10930_v61  ;;  %v8675_v62 = vpop.f32.mrb[14].mxu1  ;;  %v10968_v63 = vpack.c.bf16 %v484_v51, %v483_v54  ;;  %v10370_v0 = vpack.i.bf16 %v483_v54, %v285_v30  ;;  %v10970_v1 = vpop.f32.mrb[13].mxu0 }
  0xf8   :  { %v680_v4 = vmax.f32 %v676_v56, 0.0  ;;  %v674_v5 = vmax.f32 %v8665_v21, %v8675_v62  ;;  %10376 = vrot.lane.b32.xlu1 %v10375_v57, %s10522_s16  ;;  %v662_v6 = vpop.f32.mrb[15].mxu1  ;;  %v1692_v56 = vld [vmem:[%s12772_s4 + $0x18] sm:$0xff] }
  0xf9   :  { %v679_v7 = vmax.f32 %v675_v60, 0.0  ;;  %v673_v8 = vmax.f32 %v571_v25, %v662_v6  ;;  %9640 = vmatprep.subr.bf16.mxu0 %v10968_v63  ;;  %10371 = vrot.lane.b32.xlu0 %v10370_v0, %s10522_s16  ;;  %v11076_v0 = vld [vmem:[%s12771_s3 + $0x10] sm:$0xff] }
  0xfa   :  { %v678_v9 = vadd.f32 %v674_v5, %v10936_v10  ;;  %9642 = vmatpush3.bf16.msra.mxu0 %v10968_v63  ;;  %v10380_v11 = vpack.i.bf16 %v680_v4, %v482_v38  ;;  %v10982_v13 = vpop.f32.mrb[14].mxu0 }
  0xfb   :  { %v10984_v14 = vpack.c.bf16 %v680_v4, %v679_v7  ;;  %v677_v15 = vadd.f32 %v673_v8, %v10932_v2  ;;  %v8692_v16 = vpop.f32.mrb[16].mxu1  ;;  %9644 = vmatprep.subr.bf16.mxu0 %v10942_v26  ;;  %v10385_v17 = vpack.i.bf16 %v679_v7, %v481_v41  ;;  %v10988_v18 = vpop.f32.mrb[15].mxu0 }
  0xfc   :  { %v682_v19 = vmax.f32 %v678_v9, 0.0  ;;  %v870_v20 = vmax.f32 %v10945_v33, %v8692_v16  ;;  %10381 = vrot.lane.b32.xlu1 %v10380_v11, %s10522_s16  ;;  %v850_v21 = vpop.f32.mrb[17].mxu1  ;;  %v11091_v9 = vld [vmem:[%s12771_s3 + $0x18] sm:$0xff] }
  0xfd   :  { %v681_v22 = vmax.f32 %v677_v15, 0.0  ;;  %v869_v23 = vmax.f32 %v10948_v36, %v850_v21  ;;  %8785 = vmatmul.mubr.msk.f32.vlgmr.msra.gmra.mrb[28].mxu0 %vm1701_vm4, %v10980_v12  ;;  %9660 = vmatprep.subr.bf16.mxu1 %v10984_v14 }
  0xfe   :  { %v874_v25 = vadd.f32 %v870_v20, %v10934_v3  ;;  %10386 = vrot.lane.b32.xlu0 %v10385_v17, %s10522_s16  ;;  %9646 = vmatpush3.bf16.msra.mxu0 %v10942_v26  ;;  %v10395_v27 = vpack.i.bf16 %v682_v19, %v484_v51  ;;  %v11009_v29 = vpop.f32.mrb[16].mxu0 }
  0xff   :  { %v11011_v30 = vpack.c.bf16 %v682_v19, %v681_v22  ;;  %v873_v31 = vadd.f32 %v869_v23, %v10930_v61  ;;  %9662 = vmatpush3.bf16.msra.mxu1 %v10984_v14  ;;  %v8695_v32 = vpop.f32.mrb[18].mxu1  ;;  %9648 = vmatprep.subr.bf16.mxu0 %v10950_v37  ;;  %v10390_v33 = vpack.i.bf16 %v681_v22, %v483_v54  ;;  %v11016_v34 = vpop.f32.mrb[17].mxu0 }
 0x100   :  { %v878_v26 = vmax.f32 %v874_v25, 0.0  ;;  %v872_v35 = vmax.f32 %v10953_v45, %v8695_v32  ;;  %10396 = vrot.lane.b32.xlu1 %v10395_v27, %s10522_s16  ;;  %v860_v36 = vpop.f32.mrb[19].mxu1  ;;  %8787 = vmatprep.mubr.msk.f32.mxu0 %vm1701_vm4, %v10999_v24  ;;  %v11122_v27 = vld [vmem:[%s12771_s3 + $0x48] sm:$0xff] }
 0x101   :  { %v877_v38 = vmax.f32 %v873_v31, 0.0  ;;  %v871_v39 = vmax.f32 %v10958_v50, %v860_v36  ;;  %8788 = vmatmul.mubr.msk.f32.gmra.mrb[30].mxu0 %vm1701_vm4, %v11007_v28  ;;  %9664 = vmatprep.subr.bf16.mxu1 %v11011_v30 }
 0x102   :  { %v876_v41 = vadd.f32 %v872_v35, %v10936_v10  ;;  %10391 = vrot.lane.b32.xlu0 %v10390_v33, %s10522_s16  ;;  %9650 = vmatpush3.bf16.msra.mxu0 %v10950_v37  ;;  %v11037_v43 = vpop.f32.mrb[18].mxu0  ;;  %v1689_v37 = vld [vmem:[%s12772_s4] sm:$0xff] }
 0x103   :  { %v11039_v44 = vpack.c.bf16 %v878_v26, %v877_v38  ;;  %v875_v45 = vadd.f32 %v871_v39, %v10932_v2  ;;  %9666 = vmatpush3.bf16.msra.mxu1 %v11011_v30  ;;  %v8712_v46 = vpop.f32.mrb[20].mxu1  ;;  %9652 = vmatprep.subr.bf16.mxu0 %v10984_v14  ;;  %v11047_v47 = vpop.f32.mrb[19].mxu0  ;;  %v11145_v38 = vld [vmem:[%s12771_s3 + $0x50] sm:$0xff] }
 0x104   :  { %v880_v48 = vmax.f32 %v876_v41, 0.0  ;;  %v1068_v50 = vmax.f32 %v10965_v59, %v8712_v46  ;;  %9668 = vmatprep.subr.bf16.mxu1 %v10956_v49  ;;  %2275 = vperm.xlu1 %10359, %v1690_v40   ;;  %v1048_v51 = vpop.f32.mrb[21].mxu1  ;;  %v11153_v41 = vld [vmem:[%s12771_s3 + $0x58] sm:$0xff] }
 0x105   :  { %v879_v53 = vmax.f32 %v875_v45, 0.0  ;;  %v1067_v54 = vmax.f32 %v10970_v1, %v1048_v51  ;;  %8798 = vmatprep.mubr.msk.f32.mxu0 %vm1701_vm4, %v11035_v42 }
 0x106   :  { %v1072_v55 = vadd.f32 %v1068_v50, %v10934_v3  ;;  %8827 = vmatmul.mubr.msk.f32.vlgmr.msra.gmra.mrb[36].mxu1 %vm1701_vm4, %v10980_v12  ;;  %2270 = vperm.xlu0 %10358, %v1689_v37   ;;  %v11065_v57 = vpop.f32.mrb[20].mxu0 }
 0x107   :  { %v11067_v59 = vpack.c.bf16 %v880_v48, %v879_v53  ;;  %v1071_v60 = vadd.f32 %v1067_v54, %v10930_v61  ;;  %8799 = vmatmul.mubr.msk.f32.vlgmr.msra.gmra.mrb[28].mxu0 %vm1701_vm4, %v11054_v52  ;;  %9670 = vmatpush3.bf16.msra.mxu1 %v10956_v49  ;;  %v8715_v62 = vpop.f32.mrb[22].mxu1  ;;  %v11078_v1 = vpop.f32.mrb[21].mxu0  ;;  %v1691_v49 = vld [vmem:[%s12772_s4 + $0x10] sm:$0xff] }
 0x108   :  { %v1076_v4 = vmax.f32 %v1072_v55, 0.0  ;;  %9654 = vmatpush3.bf16.msra.mxu0 %v10984_v14  ;;  %v1070_v5 = vmax.f32 %v10982_v13, %v8715_v62  ;;  %9672 = vmatprep.subr.bf16.mxu1 %v10968_v63  ;;  %v1058_v6 = vpop.f32.mrb[23].mxu1 }
 0x109   :  { %v1075_v7 = vmax.f32 %v1071_v60, 0.0  ;;  %9656 = vmatprep.subr.bf16.mxu0 %v11011_v30  ;;  %2285 = vperm.xlu1 %10359, %v1692_v56   ;;  %v1069_v8 = vmax.f32 %v10988_v18, %v1058_v6  ;;  %v11108_v18 = vld [vmem:[%s12771_s3 + $0x40] sm:$0xff] }
 0x10a   :  { %v1074_v11 = vadd.f32 %v1070_v5, %v10936_v10  ;;  %8801 = vmatprep.mubr.msk.f32.mxu0 %vm1701_vm4, %v11076_v0  ;;  %8829 = vmatprep.mubr.msk.f32.mxu1 %vm1701_vm4, %v10999_v24  ;;  %v11098_v13 = vpop.f32.mrb[22].mxu0 }
 0x10b   :  { %v11100_v15 = vpack.c.bf16 %v1076_v4, %v1075_v7  ;;  %v1073_v16 = vadd.f32 %v1069_v8, %v10932_v2  ;;  %8830 = vmatmul.mubr.msk.f32.gmra.mrb[38].mxu1 %vm1701_vm4, %v11007_v28  ;;  %2280 = vperm.xlu0 %10358, %v1691_v49   ;;  %v8732_v17 = vpop.f32.mrb[24].mxu1  ;;  %v11110_v19 = vpop.f32.mrb[23].mxu0 }
 0x10c   :  { %v1078_v20 = vmax.f32 %v1074_v11, 0.0  ;;  %8802 = vmatmul.mubr.msk.f32.gmra.mrb[30].mxu0 %vm1701_vm4, %v11091_v9  ;;  %9674 = vmatpush3.bf16.msra.mxu1 %v10968_v63  ;;  %v1266_v21 = vmax.f32 %v11009_v29, %v8732_v17  ;;  %v1246_v22 = vpop.f32.mrb[25].mxu1 }
 0x10d   :  { %v1077_v23 = vmax.f32 %v1073_v16, 0.0  ;;  %9658 = vmatpush3.bf16.msra.mxu0 %v11011_v30  ;;  %9676 = vmatprep.subr.bf16.mxu1 %v11039_v44  ;;  %v1265_v25 = vmax.f32 %v11016_v34, %v1246_v22 }
 0x10e   :  { %v1270_v31 = vadd.f32 %v1266_v21, %v10934_v3  ;;  %9684 = vmatprep.subr.bf16.mxu0 %v11039_v44  ;;  %8812 = vmatprep.mubr.msk.f32.mxu0 %vm1701_vm4, %v11108_v18  ;;  %v11128_v63 = vpop.f32.mrb[24].mxu0 }
 0x10f   :  { %v11130_v29 = vpack.c.bf16 %v1078_v20, %v1077_v23  ;;  %v1269_v32 = vadd.f32 %v1265_v25, %v10930_v61  ;;  %8840 = vmatprep.mubr.msk.f32.mxu1 %vm1701_vm4, %v11035_v42  ;;  %v8735_v33 = vpop.f32.mrb[26].mxu1  ;;  %v11135_v34 = vpop.f32.mrb[25].mxu0 }
 0x110   :  { %v1274_v26 = vmax.f32 %v1270_v31, 0.0  ;;  %8813 = vmatmul.mubr.msk.f32.vlgmr.msra.gmra.mrb[28].mxu0 %vm1701_vm4, %v11122_v27  ;;  %8841 = vmatmul.mubr.msk.f32.vlgmr.msra.gmra.mrb[36].mxu1 %vm1701_vm4, %v11054_v52  ;;  %v1268_v35 = vmax.f32 %v11037_v43, %v8735_v33  ;;  %v1256_v36 = vpop.f32.mrb[27].mxu1 }
 0x111   :  { %v1273_v39 = vmax.f32 %v1269_v32, 0.0  ;;  %9678 = vmatpush3.bf16.msra.mxu1 %v11039_v44  ;;  %9686 = vmatpush3.bf16.msra.mxu0 %v11039_v44  ;;  %v1267_v40 = vmax.f32 %v11047_v47, %v1256_v36 }
 0x112   :  { %v1272_v43 = vadd.f32 %v1268_v35, %v10936_v10  ;;  %9680 = vmatprep.subr.bf16.mxu1 %v11067_v59  ;;  %9688 = vmatprep.subr.bf16.mxu0 %v11067_v59  ;;  %v11158_v45 = vpop.f32.mrb[26].mxu0 }
 0x113   :  { %v11160_v46 = vpack.c.bf16 %v1274_v26, %v1273_v39  ;;  %v1271_v37 = vadd.f32 %v1267_v40, %v10932_v2  ;;  %8815 = vmatprep.mubr.msk.f32.mxu0 %vm1701_vm4, %v11145_v38  ;;  %8843 = vmatprep.mubr.msk.f32.mxu1 %vm1701_vm4, %v11076_v0  ;;  %v8752_v47 = vpop.f32.mrb[28].mxu1  ;;  %v11167_v48 = vpop.f32.mrb[27].mxu0 }
 0x114   :  { %v1276_v50 = vmax.f32 %v1272_v43, 0.0  ;;  %8816 = vmatmul.mubr.msk.f32.gmra.mrb[30].mxu0 %vm1701_vm4, %v11153_v41  ;;  %8844 = vmatmul.mubr.msk.f32.gmra.mrb[38].mxu1 %vm1701_vm4, %v11091_v9  ;;  %v1464_v51 = vmax.f32 %v11065_v57, %v8752_v47  ;;  %v1444_v53 = vpop.f32.mrb[29].mxu1 }
 0x115   :  { %v1275_v54 = vmax.f32 %v1271_v37, 0.0  ;;  %9682 = vmatpush3.bf16.msra.mxu1 %v11067_v59  ;;  %9690 = vmatpush3.bf16.msra.mxu0 %v11067_v59  ;;  %v1463_v55 = vmax.f32 %v11078_v1, %v1444_v53 }
 0x116   :  { %v1468_v56 = vadd.f32 %v1464_v51, %v10934_v3  ;;  %9692 = vmatprep.subr.bf16.mxu0 %v10984_v14  ;;  %9708 = vmatprep.subr.bf16.mxu1 %v11100_v15 }
 0x117   :  { %v11180_v60 = vpack.c.bf16 %v1276_v50, %v1275_v54  ;;  %v1467_v62 = vadd.f32 %v1463_v55, %v10930_v61  ;;  %8854 = vmatprep.mubr.msk.f32.mxu1 %vm1701_vm4, %v11108_v18  ;;  %8868 = vmatprep.mubr.msk.f32.mxu0 %vm1701_vm4, %v10924_v58  ;;  %v8755_v57 = vpop.f32.mrb[30].mxu1 }
 0x118   :  { %v1472_v4 = vmax.f32 %v1468_v56, 0.0  ;;  %8855 = vmatmul.mubr.msk.f32.vlgmr.msra.gmra.mrb[36].mxu1 %vm1701_vm4, %v11122_v27  ;;  %8869 = vmatmul.mubr.msk.f32.vlgmr.msra.gmra.mrb[32].mxu0 %vm1701_vm4, %v10980_v12  ;;  %v1466_v1 = vmax.f32 %v11098_v13, %v8755_v57  ;;  %v1454_v5 = vpop.f32.mrb[31].mxu1 }
 0x119   :  { %v1471_v6 = vmax.f32 %v1467_v62, 0.0  ;;  %9694 = vmatpush3.bf16.msra.mxu0 %v10984_v14  ;;  %9710 = vmatpush3.bf16.msra.mxu1 %v11100_v15  ;;  %v1465_v49 = vmax.f32 %v11110_v19, %v1454_v5 }
 0x11a   :  { %v1470_v7 = vadd.f32 %v1466_v1, %v10936_v10  ;;  %9696 = vmatprep.subr.bf16.mxu0 %v11011_v30  ;;  %9712 = vmatprep.subr.bf16.mxu1 %v11130_v29 }
 0x11b   :  { %v11198_v8 = vpack.c.bf16 %v1472_v4, %v1471_v6  ;;  %v1469_v11 = vadd.f32 %v1465_v49, %v10932_v2  ;;  %8857 = vmatprep.mubr.msk.f32.mxu1 %vm1701_vm4, %v11145_v38  ;;  %8871 = vmatprep.mubr.msk.f32.mxu0 %vm1701_vm4, %v10999_v24  ;;  %v8772_v14 = vpop.f32.mrb[32].mxu1 }
 0x11c   :  { %v1474_v13 = vmax.f32 %v1470_v7, 0.0  ;;  %8858 = vmatmul.mubr.msk.f32.gmra.mrb[38].mxu1 %vm1701_vm4, %v11153_v41  ;;  %8872 = vmatmul.mubr.msk.f32.gmra.mrb[34].mxu0 %vm1701_vm4, %v11007_v28  ;;  %v1662_v16 = vmax.f32 %v11128_v63, %v8772_v14  ;;  %v1642_v17 = vpop.f32.mrb[33].mxu1 }
 0x11d   :  { %v1473_v19 = vmax.f32 %v1469_v11, 0.0  ;;  %9698 = vmatpush3.bf16.msra.mxu0 %v11011_v30  ;;  %9714 = vmatpush3.bf16.msra.mxu1 %v11130_v29  ;;  %v1661_v20 = vmax.f32 %v11135_v34, %v1642_v17 }
 0x11e   :  { %v1666_v21 = vadd.f32 %v1662_v16, %v10934_v3  ;;  %9700 = vmatprep.subr.bf16.mxu0 %v11100_v15  ;;  %9716 = vmatprep.subr.bf16.mxu1 %v11039_v44 }
 0x11f   :  { %v11216_v22 = vpack.c.bf16 %v1474_v13, %v1473_v19  ;;  %v1665_v23 = vadd.f32 %v1661_v20, %v10930_v61  ;;  %8882 = vmatprep.mubr.msk.f32.mxu0 %vm1701_vm4, %v11035_v42  ;;  %8910 = vmatprep.mubr.msk.f32.mxu1 %vm1701_vm4, %v10924_v58  ;;  %v8775_v30 = vpop.f32.mrb[34].mxu1 }
 0x120   :  { %v1670_v25 = vmax.f32 %v1666_v21, 0.0  ;;  %8883 = vmatmul.mubr.msk.f32.vlgmr.msra.gmra.mrb[32].mxu0 %vm1701_vm4, %v11054_v52  ;;  %8911 = vmatmul.mubr.msk.f32.vlgmr.msra.gmra.mrb[40].mxu1 %vm1701_vm4, %v10980_v12  ;;  %v1664_v3 = vmax.f32 %v11158_v45, %v8775_v30  ;;  %v1652_v31 = vpop.f32.mrb[35].mxu1 }
 0x121   :  { %v1669_v63 = vmax.f32 %v1665_v23, 0.0  ;;  %9702 = vmatpush3.bf16.msra.mxu0 %v11100_v15  ;;  %9718 = vmatpush3.bf16.msra.mxu1 %v11039_v44  ;;  %v1663_v61 = vmax.f32 %v11167_v48, %v1652_v31 }
 0x122   :  { %v1668_v32 = vadd.f32 %v1664_v3, %v10936_v10  ;;  %9704 = vmatprep.subr.bf16.mxu0 %v11130_v29  ;;  %9720 = vmatprep.subr.bf16.mxu1 %v11067_v59 }
 0x123   :  { %v11234_v33 = vpack.c.bf16 %v1670_v25, %v1669_v63  ;;  %v1667_v34 = vadd.f32 %v1663_v61, %v10932_v2  ;;  %8885 = vmatprep.mubr.msk.f32.mxu0 %vm1701_vm4, %v11076_v0  ;;  %8913 = vmatprep.mubr.msk.f32.mxu1 %vm1701_vm4, %v10999_v24 }
 0x124   :  { %v1672_v26 = vmax.f32 %v1668_v32, 0.0  ;;  %8886 = vmatmul.mubr.msk.f32.gmra.mrb[34].mxu0 %vm1701_vm4, %v11091_v9  ;;  %8914 = vmatmul.mubr.msk.f32.gmra.mrb[42].mxu1 %vm1701_vm4, %v11007_v28 }
 0x125   :  { %v1671_v10 = vmax.f32 %v1667_v34, 0.0  ;;  %9706 = vmatpush3.bf16.msra.mxu0 %v11130_v29  ;;  %9722 = vmatpush3.bf16.msra.mxu1 %v11067_v59 }
 0x126   :  { %9724 = vmatprep.subr.bf16.mxu1 %v11160_v46  ;;  %9732 = vmatprep.subr.bf16.mxu0 %v11160_v46 }
 0x127   :  { %v11249_v2 = vpack.c.bf16 %v1672_v26, %v1671_v10  ;;  %8896 = vmatprep.mubr.msk.f32.mxu0 %vm1701_vm4, %v11108_v18  ;;  %8924 = vmatprep.mubr.msk.f32.mxu1 %vm1701_vm4, %v11035_v42 }
 0x128   :  { %8897 = vmatmul.mubr.msk.f32.vlgmr.msra.gmra.mrb[32].mxu0 %vm1701_vm4, %v11122_v27  ;;  %8925 = vmatmul.mubr.msk.f32.vlgmr.msra.gmra.mrb[40].mxu1 %vm1701_vm4, %v11054_v52 }
 0x129   :  { %9726 = vmatpush3.bf16.msra.mxu1 %v11160_v46  ;;  %9734 = vmatpush3.bf16.msra.mxu0 %v11160_v46 }
 0x12a   :  { %9728 = vmatprep.subr.bf16.mxu1 %v11180_v60  ;;  %9736 = vmatprep.subr.bf16.mxu0 %v11180_v60 }
 0x12b   :  { %8899 = vmatprep.mubr.msk.f32.mxu0 %vm1701_vm4, %v11145_v38  ;;  %8927 = vmatprep.mubr.msk.f32.mxu1 %vm1701_vm4, %v11076_v0 }
 0x12c   :  { %8900 = vmatmul.mubr.msk.f32.gmra.mrb[34].mxu0 %vm1701_vm4, %v11153_v41  ;;  %8928 = vmatmul.mubr.msk.f32.gmra.mrb[42].mxu1 %vm1701_vm4, %v11091_v9 }
 0x12d   :  { %9730 = vmatpush3.bf16.msra.mxu1 %v11180_v60  ;;  %9738 = vmatpush3.bf16.msra.mxu0 %v11180_v60 }
 0x12e   :  { %9740 = vmatprep.subr.bf16.mxu0 %v11100_v15  ;;  %9756 = vmatprep.subr.bf16.mxu1 %v11198_v8 }
 0x12f   :  { %8938 = vmatprep.mubr.msk.f32.mxu1 %vm1701_vm4, %v11108_v18  ;;  %8952 = vmatprep.mubr.msk.f32.mxu0 %vm1701_vm4, %v10924_v58 }
 0x130   :  { %8939 = vmatmul.mubr.msk.f32.vlgmr.msra.gmra.mrb[40].mxu1 %vm1701_vm4, %v11122_v27  ;;  %8953 = vmatmul.mubr.msk.f32.vlgmr.msra.gmra.mrb[36].mxu0 %vm1701_vm4, %v10980_v12 }
 0x131   :  { %9742 = vmatpush3.bf16.msra.mxu0 %v11100_v15  ;;  %9758 = vmatpush3.bf16.msra.mxu1 %v11198_v8 }
 0x132   :  { %9744 = vmatprep.subr.bf16.mxu0 %v11130_v29  ;;  %9760 = vmatprep.subr.bf16.mxu1 %v11216_v22 }
 0x133   :  { %8941 = vmatprep.mubr.msk.f32.mxu1 %vm1701_vm4, %v11145_v38  ;;  %8955 = vmatprep.mubr.msk.f32.mxu0 %vm1701_vm4, %v10999_v24 }
 0x134   :  { %8942 = vmatmul.mubr.msk.f32.gmra.mrb[42].mxu1 %vm1701_vm4, %v11153_v41  ;;  %8956 = vmatmul.mubr.msk.f32.gmra.mrb[38].mxu0 %vm1701_vm4, %v11007_v28 }
 0x135   :  { %9746 = vmatpush3.bf16.msra.mxu0 %v11130_v29  ;;  %9762 = vmatpush3.bf16.msra.mxu1 %v11216_v22 }
 0x136   :  { %9748 = vmatprep.subr.bf16.mxu0 %v11198_v8  ;;  %9764 = vmatprep.subr.bf16.mxu1 %v11160_v46 }
 0x137   :  { %8966 = vmatprep.mubr.msk.f32.mxu0 %vm1701_vm4, %v11035_v42  ;;  %8994 = vmatprep.mubr.msk.f32.mxu1 %vm1701_vm4, %v10924_v58 }
 0x138   :  { %8967 = vmatmul.mubr.msk.f32.vlgmr.msra.gmra.mrb[36].mxu0 %vm1701_vm4, %v11054_v52  ;;  %8995 = vmatmul.mubr.msk.f32.vlgmr.msra.gmra.mrb[44].mxu1 %vm1701_vm4, %v10980_v12 }
 0x139   :  { %9750 = vmatpush3.bf16.msra.mxu0 %v11198_v8  ;;  %9766 = vmatpush3.bf16.msra.mxu1 %v11160_v46 }
 0x13a   :  { %9752 = vmatprep.subr.bf16.mxu0 %v11216_v22  ;;  %9768 = vmatprep.subr.bf16.mxu1 %v11180_v60 }
 0x13b   :  { %8969 = vmatprep.mubr.msk.f32.mxu0 %vm1701_vm4, %v11076_v0  ;;  %8997 = vmatprep.mubr.msk.f32.mxu1 %vm1701_vm4, %v10999_v24 }
 0x13c   :  { %8970 = vmatmul.mubr.msk.f32.gmra.mrb[38].mxu0 %vm1701_vm4, %v11091_v9  ;;  %8998 = vmatmul.mubr.msk.f32.gmra.mrb[46].mxu1 %vm1701_vm4, %v11007_v28 }
 0x13d   :  { %9754 = vmatpush3.bf16.msra.mxu0 %v11216_v22  ;;  %9770 = vmatpush3.bf16.msra.mxu1 %v11180_v60 }
 0x13e   :  { %9772 = vmatprep.subr.bf16.mxu1 %v11234_v33  ;;  %9780 = vmatprep.subr.bf16.mxu0 %v11234_v33 }
 0x13f   :  { %8980 = vmatprep.mubr.msk.f32.mxu0 %vm1701_vm4, %v11108_v18  ;;  %9008 = vmatprep.mubr.msk.f32.mxu1 %vm1701_vm4, %v11035_v42 }
 0x140   :  { %8981 = vmatmul.mubr.msk.f32.vlgmr.msra.gmra.mrb[36].mxu0 %vm1701_vm4, %v11122_v27  ;;  %9009 = vmatmul.mubr.msk.f32.vlgmr.msra.gmra.mrb[44].mxu1 %vm1701_vm4, %v11054_v52 }
 0x141   :  { %9774 = vmatpush3.bf16.msra.mxu1 %v11234_v33  ;;  %9782 = vmatpush3.bf16.msra.mxu0 %v11234_v33 }
 0x142   :  { %9776 = vmatprep.subr.bf16.mxu1 %v11249_v2  ;;  %9784 = vmatprep.subr.bf16.mxu0 %v11249_v2 }
 0x143   :  { %8983 = vmatprep.mubr.msk.f32.mxu0 %vm1701_vm4, %v11145_v38  ;;  %9011 = vmatprep.mubr.msk.f32.mxu1 %vm1701_vm4, %v11076_v0 }
 0x144   :  { %8984 = vmatmul.mubr.msk.f32.gmra.mrb[38].mxu0 %vm1701_vm4, %v11153_v41  ;;  %9012 = vmatmul.mubr.msk.f32.gmra.mrb[46].mxu1 %vm1701_vm4, %v11091_v9 }
 0x145   :  { %9778 = vmatpush3.bf16.msra.mxu1 %v11249_v2  ;;  %9786 = vmatpush3.bf16.msra.mxu0 %v11249_v2 }
 0x146   :  { %9788 = vmatprep.subr.bf16.mxu0 %v11198_v8  ;;  %9022 = vmatprep.mubr.msk.f32.mxu1 %vm1701_vm4, %v11108_v18 }
 0x147   :  { %9036 = vmatprep.mubr.msk.f32.mxu0 %vm1701_vm4, %v10924_v58 }
 0x148   :  { %9023 = vmatmul.mubr.msk.f32.vlgmr.msra.gmra.mrb[44].mxu1 %vm1701_vm4, %v11122_v27  ;;  %9037 = vmatmul.mubr.msk.f32.vlgmr.msra.gmra.mrb[40].mxu0 %vm1701_vm4, %v10980_v12 }
 0x149   :  { %9790 = vmatpush3.bf16.msra.mxu0 %v11198_v8  ;;  %9025 = vmatprep.mubr.msk.f32.mxu1 %vm1701_vm4, %v11145_v38 }
 0x14a   :  { %9792 = vmatprep.subr.bf16.mxu0 %v11216_v22  ;;  %9039 = vmatprep.mubr.msk.f32.mxu0 %vm1701_vm4, %v10999_v24 }
 0x14c   :  { %9026 = vmatmul.mubr.msk.f32.gmra.mrb[46].mxu1 %vm1701_vm4, %v11153_v41  ;;  %9040 = vmatmul.mubr.msk.f32.gmra.mrb[42].mxu0 %vm1701_vm4, %v11007_v28 }
 0x14d   :  { %9794 = vmatpush3.bf16.msra.mxu0 %v11216_v22  ;;  %9050 = vmatprep.mubr.msk.f32.mxu0 %vm1701_vm4, %v11035_v42 }
 0x14e   :  { %9078 = vmatprep.mubr.msk.f32.mxu1 %vm1701_vm4, %v10924_v58 }
 0x150   :  { %9051 = vmatmul.mubr.msk.f32.vlgmr.msra.gmra.mrb[40].mxu0 %vm1701_vm4, %v11054_v52 }
 0x151   :  { %9053 = vmatprep.mubr.msk.f32.mxu0 %vm1701_vm4, %v11076_v0 }
 0x154   :  { %9054 = vmatmul.mubr.msk.f32.gmra.mrb[42].mxu0 %vm1701_vm4, %v11091_v9 }
 0x155   :  { %9064 = vmatprep.mubr.msk.f32.mxu0 %vm1701_vm4, %v11108_v18 }
 0x166   :  { %v10362_v44 = vpop.permute.xlu1 %10361 }
 0x167   :  { %v10364_v59 = vunpack.i.h.bf16 %v10362_v44  ;;  %v10363_v15 = vunpack.i.l.bf16 %v10362_v44  ;;  %v10367_v29 = vpop.permute.xlu0 %10366 }
 0x168   :  { %v10369_v35 = vunpack.i.h.bf16 %v10367_v29  ;;  %v10368_v36 = vunpack.i.l.bf16 %v10367_v29 }
 0x169   :  { %v3612_v58 = vsel %vm3610_vm5, %v10363_v15, %v10364_v59 }
 0x16a   :  { %v3611_v39 = vsel %vm3610_vm5, %v10368_v36, %v10369_v35  ;;  %v10377_v40 = vpop.permute.xlu1 %10376 }
 0x16b   :  { %v9795_v43 = vpack.c.bf16 %v3612_v58, %v3611_v39  ;;  %v10379_v45 = vunpack.i.h.bf16 %v10377_v40  ;;  %v10378_v46 = vunpack.i.l.bf16 %v10377_v40  ;;  %v10372_v37 = vpop.permute.xlu0 %10371 }
 0x16c   :  { %v10374_v47 = vunpack.i.h.bf16 %v10372_v37  ;;  %v10373_v48 = vunpack.i.l.bf16 %v10372_v37 }
 0x16d   :  { %v3614_v50 = vsel %vm3610_vm5, %v10378_v46, %v10379_v45  ;;  %9796 = vmatprep.subr.bf16.mxu0 %v9795_v43  ;;  %9804 = vmatprep.subr.bf16.mxu1 %v9795_v43 }
 0x16e   :  { %v3613_v51 = vsel %vm3610_vm5, %v10373_v48, %v10374_v47  ;;  %v10382_v53 = vpop.permute.xlu1 %10381  ;;  %9798 = vmatpush3.bf16.msra.mxu0 %v9795_v43  ;;  %9806 = vmatpush3.bf16.msra.mxu1 %v9795_v43 }
 0x16f   :  { %v9799_v54 = vpack.c.bf16 %v3614_v50, %v3613_v51  ;;  %v10384_v56 = vunpack.i.h.bf16 %v10382_v53  ;;  %v10383_v60 = vunpack.i.l.bf16 %v10382_v53 }
 0x170   :  { %v10387_v55 = vpop.permute.xlu0 %10386 }
 0x171   :  { %9800 = vmatprep.subr.bf16.mxu0 %v9799_v54  ;;  %9808 = vmatprep.subr.bf16.mxu1 %v9799_v54  ;;  %v10389_v62 = vunpack.i.h.bf16 %v10387_v55  ;;  %v10388_v57 = vunpack.i.l.bf16 %v10387_v55  ;;  %v3911_v6 = vsel %vm3610_vm5, %v10383_v60, %v10384_v56 }
 0x172   :  { %v10397_v4 = vpop.permute.xlu1 %10396  ;;  %9802 = vmatpush3.bf16.msra.mxu0 %v9799_v54  ;;  %9810 = vmatpush3.bf16.msra.mxu1 %v9799_v54 }
 0x173   :  { %9812 = vmatprep.subr.bf16.mxu1 %v11234_v33  ;;  %v10399_v5 = vunpack.i.h.bf16 %v10397_v4  ;;  %v10398_v49 = vunpack.i.l.bf16 %v10397_v4  ;;  %v3910_v11 = vsel %vm3610_vm5, %v10388_v57, %v10389_v62 }
 0x174   :  { %v10392_v1 = vpop.permute.xlu0 %10391 }
 0x175   :  { %9079 = vmatmul.mubr.msk.f32.vlgmr.msra.gmra.mrb[48].mxu1 %vm1701_vm4, %v10980_v12  ;;  %9065 = vmatmul.mubr.msk.f32.vlgmr.msra.gmra.mrb[40].mxu0 %vm1701_vm4, %v11122_v27  ;;  %v10394_v7 = vunpack.i.h.bf16 %v10392_v1  ;;  %v10393_v8 = vunpack.i.l.bf16 %v10392_v1  ;;  %v9819_v12 = vpack.c.bf16 %v3911_v6, %v3910_v11  ;;  %v3913_v14 = vsel %vm3610_vm5, %v10398_v49, %v10399_v5  ;;  %v11465_v1 = vld [vmem:[%s12773_s5 + $0x48] sm:$0xff]  ;;  %v11470_v6 = vld [vmem:[%s12773_s5 + $0x50] sm:$0xff]  ;;  %v11484_v11 = vld [vmem:[%s12773_s5 + $0x60] sm:$0xff] }
 0x176   :  { %9814 = vmatpush3.bf16.msra.mxu1 %v11234_v33  ;;  %9081 = vmatprep.mubr.msk.f32.mxu1 %vm1701_vm4, %v10999_v24 }
 0x177   :  { %9816 = vmatprep.subr.bf16.mxu1 %v11249_v2  ;;  %9067 = vmatprep.mubr.msk.f32.mxu0 %vm1701_vm4, %v11145_v38  ;;  %v3912_v24 = vsel %vm3610_vm5, %v10393_v8, %v10394_v7  ;;  %v11479_v7 = vld [vmem:[%s12773_s5 + $0x58] sm:$0xff] }
 0x178   :  { %v9823_v13 = vpack.c.bf16 %v3913_v14, %v3912_v24  ;;  %v11493_v24 = vld [vmem:[%s12773_s5 + $0x68] sm:$0xff] }
 0x179   :  { %9082 = vmatmul.mubr.msk.f32.gmra.mrb[50].mxu1 %vm1701_vm4, %v11007_v28  ;;  %9068 = vmatmul.mubr.msk.f32.gmra.mrb[42].mxu0 %vm1701_vm4, %v11153_v41  ;;  %v11420_v28 = vld [vmem:[%s12773_s5 + $0x40] sm:$0xff] }
 0x17a   :  { %9818 = vmatpush3.bf16.msra.mxu1 %v11249_v2  ;;  %9092 = vmatprep.mubr.msk.f32.mxu1 %vm1701_vm4, %v11035_v42 }
 0x17b   :  { %9820 = vmatprep.subr.bf16.mxu1 %v9819_v12  ;;  %9120 = vmatprep.mubr.msk.f32.mxu0 %vm1701_vm4, %v11420_v28 }
 0x17d   :  { %9093 = vmatmul.mubr.msk.f32.vlgmr.msra.gmra.mrb[48].mxu1 %vm1701_vm4, %v11054_v52 }
 0x17e   :  { %9822 = vmatpush3.bf16.msra.mxu1 %v9819_v12  ;;  %9095 = vmatprep.mubr.msk.f32.mxu1 %vm1701_vm4, %v11076_v0 }
 0x17f   :  { %9824 = vmatprep.subr.bf16.mxu1 %v9823_v13 }
 0x181   :  { %9096 = vmatmul.mubr.msk.f32.gmra.mrb[50].mxu1 %vm1701_vm4, %v11091_v9 }
 0x182   :  { %9826 = vmatpush3.bf16.msra.mxu1 %v9823_v13  ;;  %9106 = vmatprep.mubr.msk.f32.mxu1 %vm1701_vm4, %v11108_v18  ;;  %v11498_v13 = vld [vmem:[%s12773_s5 + $0x70] sm:$0xff] }
 0x183   :  { %v11426_v18 = vpop.permute.xlu1 %2275 }
 0x185   :  { %9107 = vmatmul.mubr.msk.f32.vlgmr.msra.gmra.mrb[48].mxu1 %vm1701_vm4, %v11122_v27 }
 0x186   :  { %9109 = vmatprep.mubr.msk.f32.mxu1 %vm1701_vm4, %v11145_v38  ;;  %v11428_v38 = vpop.permute.xlu0 %2270 }
 0x188   :  { %v11432_v25 = vpop.permute.xlu1 %2285 }
 0x189   :  { %9110 = vmatmul.mubr.msk.f32.gmra.mrb[50].mxu1 %vm1701_vm4, %v11153_v41 }
 0x18a   :  { %9180 = vmatprep.mubr.msk.f32.mxu1 %vm1701_vm4, %v11420_v28  ;;  %v11434_v63 = vpop.permute.xlu0 %2280 }
 0x1e3   :  { %v8814_v42 = vpop.f32.mrb[28].mxu0 }
 0x1e4   :  { %v1978_v52 = vpop.f32.mrb[29].mxu0 }
 0x1e7   :  { %v8817_v0 = vpop.f32.mrb[30].mxu0 }
 0x1e8   :  { %v1988_v9 = vpop.f32.mrb[31].mxu0 }
 0x1eb   :  { %v8856_v27 = vpop.f32.mrb[36].mxu1 }
 0x1ec   :  { %v2265_v41 = vmax.f32 %v8814_v42, %v8856_v27  ;;  %v2241_v16 = vpop.f32.mrb[37].mxu1  ;;  %v11508_v27 = vld [vmem:[%s12773_s5 + $0x78] sm:$0xff] }
 0x1ed   :  { %v2264_v17 = vmax.f32 %v1978_v52, %v2241_v16 }
 0x1ee   :  { %v2289_v19 = vadd.f32 %v11426_v18, %v2265_v41 }
 0x1ef   :  { %v2288_v20 = vadd.f32 %v11428_v38, %v2264_v17  ;;  %v8859_v21 = vpop.f32.mrb[38].mxu1  ;;  %v11514_v17 = vld [vmem:[%s12773_s5] sm:$0xff] }
 0x1f0   :  { %v2293_v22 = vmax.f32 %v2289_v19, 0.0  ;;  %v2267_v23 = vmax.f32 %v8817_v0, %v8859_v21  ;;  %v2251_v30 = vpop.f32.mrb[39].mxu1 }
 0x1f1   :  { %v2292_v3 = vmax.f32 %v2288_v20, 0.0  ;;  %v2266_v31 = vmax.f32 %v1988_v9, %v2251_v30 }
 0x1f2   :  { %v2291_v61 = vadd.f32 %v11432_v25, %v2267_v23 }
 0x1f3   :  { %v2290_v32 = vadd.f32 %v11434_v63, %v2266_v31  ;;  %v9835_v33 = vpack.c.bf16 %v2293_v22, %v2292_v3 }
 0x1f4   :  { %v2295_v34 = vmax.f32 %v2291_v61, 0.0 }
 0x1f5   :  { %v2294_v26 = vmax.f32 %v2290_v32, 0.0 }
 0x1f7   :  { %v9839_v10 = vpack.c.bf16 %v2295_v34, %v2294_v26 }
 0x1fb   :  { %v8898_v2 = vpop.f32.mrb[32].mxu0 }
 0x1fc   :  { %v2548_v44 = vpop.f32.mrb[33].mxu0 }
 0x1ff   :  { %v8901_v59 = vpop.f32.mrb[34].mxu0 }
 0x200   :  { %v2558_v15 = vpop.f32.mrb[35].mxu0 }
 0x203   :  { %v8940_v29 = vpop.f32.mrb[40].mxu1 }
 0x204   :  { %v2835_v35 = vmax.f32 %v8898_v2, %v8940_v29  ;;  %v2811_v36 = vpop.f32.mrb[41].mxu1  ;;  %v4048_v29 = vld [vmem:[%s12774_s6 + $0x8] sm:$0xff] }
 0x205   :  { %v2834_v58 = vmax.f32 %v2548_v44, %v2811_v36  ;;  %v11568_v36 = vld [vmem:[%s12773_s5 + $0x20] sm:$0xff] }
 0x206   :  { %v2839_v39 = vadd.f32 %v2835_v35, %v11426_v18  ;;  %v4047_v35 = vld [vmem:[%s12774_s6] sm:$0xff] }
 0x207   :  { %v2838_v40 = vadd.f32 %v2834_v58, %v11428_v38  ;;  %v8943_v43 = vpop.f32.mrb[42].mxu1  ;;  %v11575_v58 = vld [vmem:[%s12773_s5 + $0x28] sm:$0xff] }
 0x208   :  { %v2843_v45 = vmax.f32 %v2839_v39, 0.0  ;;  %v2837_v46 = vmax.f32 %v8901_v59, %v8943_v43  ;;  %v2821_v37 = vpop.f32.mrb[43].mxu1  ;;  %v4050_v39 = vld [vmem:[%s12774_s6 + $0x18] sm:$0xff]  ;;  %v11593_v43 = vld [vmem:[%s12773_s5 + $0x30] sm:$0xff] }
 0x209   :  { %v2842_v47 = vmax.f32 %v2838_v40, 0.0  ;;  %v2836_v48 = vmax.f32 %v2558_v15, %v2821_v37  ;;  %v11549_v15 = vld [vmem:[%s12773_s5 + $0x18] sm:$0xff]  ;;  %v4049_v40 = vld [vmem:[%s12774_s6 + $0x10] sm:$0xff]  ;;  %v11612_v37 = vld [vmem:[%s12773_s5 + $0x80] sm:$0xff] }
 0x20a   :  { %v2841_v50 = vadd.f32 %v2837_v46, %v11432_v25  ;;  %v10400_v51 = vpack.i.bf16 %v2843_v45, %v2293_v22  ;;  %v4052_v46 = vld [vmem:[%s12774_s6 + $0x28] sm:$0xff] }
 0x20b   :  { %v2840_v53 = vadd.f32 %v2836_v48, %v11434_v63  ;;  %v10405_v54 = vpack.i.bf16 %v2842_v47, %v2292_v3  ;;  %v11442_v55 = vpack.c.bf16 %v2843_v45, %v2842_v47  ;;  %v11627_v48 = vld [vmem:[%s12773_s5 + $0x88] sm:$0xff] }
 0x20c   :  { %v11444_v56 = vmax.f32 %v2841_v50, 0.0  ;;  %10401 = vrot.lane.b32.xlu1 %v10400_v51, %s10522_s16  ;;  %v11634_v50 = vld [vmem:[%s12773_s5 + $0x90] sm:$0xff]  ;;  %v4054_v51 = vld [vmem:[%s12774_s6 + $0x38] sm:$0xff] }
 0x20d   :  { %v11447_v60 = vmax.f32 %v2840_v53, 0.0  ;;  %10406 = vrot.lane.b32.xlu0 %v10405_v54, %s10522_s16  ;;  %9828 = vmatprep.subr.bf16.mxu0 %v11442_v55  ;;  %v4053_v53 = vld [vmem:[%s12774_s6 + $0x30] sm:$0xff]  ;;  %v11653_v54 = vld [vmem:[%s12773_s5 + $0x98] sm:$0xff] }
 0x20e   :  { %9830 = vmatpush3.bf16.msra.mxu0 %v11442_v55  ;;  %v10415_v62 = vpack.i.bf16 %v11444_v56, %v2295_v34 }
 0x20f   :  { %v11455_v57 = vpack.c.bf16 %v11444_v56, %v11447_v60  ;;  %v10410_v4 = vpack.i.bf16 %v11447_v60, %v2294_v26 }
 0x210   :  { %10416 = vrot.lane.b32.xlu1 %v10415_v62, %s10522_s16  ;;  %v11689_v62 = vld [vmem:[%s12773_s5 + $0xb8] sm:$0xff] }
 0x211   :  { %9832 = vmatprep.subr.bf16.mxu0 %v11455_v57  ;;  %10411 = vrot.lane.b32.xlu0 %v10410_v4, %s10522_s16 }
 0x212   :  { %9834 = vmatpush3.bf16.msra.mxu0 %v11455_v57 }
 0x213   :  { %v8982_v5 = vpop.f32.mrb[36].mxu0  ;;  %9836 = vmatprep.subr.bf16.mxu0 %v9835_v33 }
 0x214   :  { %v3098_v49 = vpop.f32.mrb[37].mxu0 }
 0x215   :  { %9121 = vmatmul.mubr.msk.f32.vlgmr.msra.gmra.mrb[44].mxu0 %vm1701_vm4, %v11465_v1 }
 0x216   :  { %9838 = vmatpush3.bf16.msra.mxu0 %v9835_v33  ;;  %9123 = vmatprep.mubr.msk.f32.mxu0 %vm1701_vm4, %v11470_v6  ;;  %v11527_v33 = vld [vmem:[%s12773_s5 + $0x8] sm:$0xff] }
 0x217   :  { %v8985_v8 = vpop.f32.mrb[38].mxu0  ;;  %9840 = vmatprep.subr.bf16.mxu0 %v9839_v10 }
 0x218   :  { %v3108_v12 = vpop.f32.mrb[39].mxu0 }
 0x219   :  { %9124 = vmatmul.mubr.msk.f32.gmra.mrb[46].mxu0 %vm1701_vm4, %v11479_v7 }
 0x21a   :  { %9842 = vmatpush3.bf16.msra.mxu0 %v9839_v10  ;;  %9126 = vmatprep.mubr.msk.f32.mxu0 %vm1701_vm4, %v11484_v11  ;;  %v11535_v10 = vld [vmem:[%s12773_s5 + $0x10] sm:$0xff] }
 0x21b   :  { %v9024_v14 = vpop.f32.mrb[44].mxu1 }
 0x21c   :  { %v3385_v42 = vmax.f32 %v8982_v5, %v9024_v14  ;;  %v3361_v52 = vpop.f32.mrb[45].mxu1 }
 0x21d   :  { %v3384_v0 = vmax.f32 %v3098_v49, %v3361_v52  ;;  %9127 = vmatmul.mubr.msk.f32.gmra.mrb[48].mxu0 %vm1701_vm4, %v11493_v24 }
 0x21e   :  { %v3389_v9 = vadd.f32 %v3385_v42, %v11426_v18  ;;  %9129 = vmatprep.mubr.msk.f32.mxu0 %vm1701_vm4, %v11498_v13 }
 0x21f   :  { %v3388_v41 = vadd.f32 %v3384_v0, %v11428_v38  ;;  %v9027_v16 = vpop.f32.mrb[46].mxu1 }
 0x220   :  { %v3393_v19 = vmax.f32 %v3389_v9, 0.0  ;;  %v3387_v20 = vmax.f32 %v8985_v8, %v9027_v16  ;;  %v3371_v21 = vpop.f32.mrb[47].mxu1 }
 0x221   :  { %v3392_v22 = vmax.f32 %v3388_v41, 0.0  ;;  %v3386_v23 = vmax.f32 %v3108_v12, %v3371_v21  ;;  %9130 = vmatmul.mubr.msk.f32.gmra.mrb[50].mxu0 %vm1701_vm4, %v11508_v27 }
 0x222   :  { %v3391_v30 = vadd.f32 %v3387_v20, %v11432_v25  ;;  %v10420_v3 = vpack.i.bf16 %v3393_v19, %v2843_v45  ;;  %9140 = vmatprep.mubr.msk.f32.mxu0 %vm1701_vm4, %v11514_v17  ;;  %v11601_v45 = vld [vmem:[%s12773_s5 + $0x38] sm:$0xff] }
 0x223   :  { %v11521_v31 = vpack.c.bf16 %v3393_v19, %v3392_v22  ;;  %v3390_v61 = vadd.f32 %v3386_v23, %v11434_v63  ;;  %v10425_v32 = vpack.i.bf16 %v3392_v22, %v2842_v47  ;;  %v4051_v47 = vld [vmem:[%s12774_s6 + $0x20] sm:$0xff] }
 0x224   :  { %v3395_v34 = vmax.f32 %v3391_v30, 0.0  ;;  %10421 = vrot.lane.b32.xlu1 %v10420_v3, %s10522_s16 }
 0x225   :  { %v3394_v26 = vmax.f32 %v3390_v61, 0.0  ;;  %9852 = vmatprep.subr.bf16.mxu1 %v11521_v31  ;;  %10426 = vrot.lane.b32.xlu0 %v10425_v32, %s10522_s16 }
 0x226   :  { %9844 = vmatprep.subr.bf16.mxu0 %v11521_v31  ;;  %9141 = vmatmul.mubr.msk.f32.vlgmr.msra.gmra.mrb[44].mxu0 %vm1701_vm4, %v11527_v33  ;;  %v10435_v2 = vpack.i.bf16 %v3395_v34, %v11444_v56  ;;  %v11671_v56 = vld [vmem:[%s12773_s5 + $0xa8] sm:$0xff] }
 0x227   :  { %v11541_v44 = vpack.c.bf16 %v3395_v34, %v3394_v26  ;;  %9846 = vmatpush3.bf16.msra.mxu0 %v11521_v31  ;;  %9854 = vmatpush3.bf16.msra.mxu1 %v11521_v31  ;;  %v10430_v59 = vpack.i.bf16 %v3394_v26, %v11447_v60  ;;  %v11676_v60 = vld [vmem:[%s12773_s5 + $0xb0] sm:$0xff] }
 0x228   :  { %10436 = vrot.lane.b32.xlu1 %v10435_v2, %s10522_s16  ;;  %9143 = vmatprep.mubr.msk.f32.mxu0 %vm1701_vm4, %v11535_v10 }
 0x229   :  { %9856 = vmatprep.subr.bf16.mxu1 %v11541_v44  ;;  %10431 = vrot.lane.b32.xlu0 %v10430_v59, %s10522_s16 }
 0x22a   :  { %9848 = vmatprep.subr.bf16.mxu0 %v11541_v44  ;;  %9144 = vmatmul.mubr.msk.f32.gmra.mrb[46].mxu0 %vm1701_vm4, %v11549_v15 }
 0x22b   :  { %9850 = vmatpush3.bf16.msra.mxu0 %v11541_v44  ;;  %9858 = vmatpush3.bf16.msra.mxu1 %v11541_v44 }
 0x22c   :  { %9860 = vmatprep.subr.bf16.mxu1 %v11442_v55  ;;  %4804 = vperm.xlu1 %10359, %v4048_v29  }
 0x22d   :  { %4799 = vperm.xlu0 %10358, %v4047_v35   ;;  %9146 = vmatprep.mubr.msk.f32.mxu0 %vm1701_vm4, %v11568_v36 }
 0x22e   :  { %9181 = vmatmul.mubr.msk.f32.vlgmr.msra.gmra.mrb[52].mxu1 %vm1701_vm4, %v11465_v1  ;;  %9147 = vmatmul.mubr.msk.f32.gmra.mrb[48].mxu0 %vm1701_vm4, %v11575_v58 }
 0x22f   :  { %9862 = vmatpush3.bf16.msra.mxu1 %v11442_v55  ;;  %9183 = vmatprep.mubr.msk.f32.mxu1 %vm1701_vm4, %v11470_v6  ;;  %v11658_v55 = vld [vmem:[%s12773_s5 + $0xa0] sm:$0xff] }
 0x230   :  { %9864 = vmatprep.subr.bf16.mxu1 %v11455_v57  ;;  %4814 = vperm.xlu1 %10359, %v4050_v39  }
 0x231   :  { %4809 = vperm.xlu0 %10358, %v4049_v40   ;;  %9149 = vmatprep.mubr.msk.f32.mxu0 %vm1701_vm4, %v11593_v43 }
 0x232   :  { %9184 = vmatmul.mubr.msk.f32.gmra.mrb[54].mxu1 %vm1701_vm4, %v11479_v7  ;;  %9150 = vmatmul.mubr.msk.f32.gmra.mrb[50].mxu0 %vm1701_vm4, %v11601_v45 }
 0x233   :  { %9866 = vmatpush3.bf16.msra.mxu1 %v11455_v57  ;;  %9186 = vmatprep.mubr.msk.f32.mxu1 %vm1701_vm4, %v11484_v11 }
 0x234   :  { %4824 = vperm.xlu1 %10359, %v4052_v46   ;;  %9160 = vmatprep.mubr.msk.f32.mxu0 %vm1701_vm4, %v11612_v37 }
 0x235   :  { %4819 = vperm.xlu0 %10358, %v4051_v47  }
 0x236   :  { %9187 = vmatmul.mubr.msk.f32.gmra.mrb[56].mxu1 %vm1701_vm4, %v11493_v24  ;;  %9161 = vmatmul.mubr.msk.f32.vlgmr.msra.gmra.mrb[44].mxu0 %vm1701_vm4, %v11627_v48 }
 0x237   :  { %9189 = vmatprep.mubr.msk.f32.mxu1 %vm1701_vm4, %v11498_v13  ;;  %9163 = vmatprep.mubr.msk.f32.mxu0 %vm1701_vm4, %v11634_v50 }
 0x238   :  { %4834 = vperm.xlu1 %10359, %v4054_v51  }
 0x239   :  { %4829 = vperm.xlu0 %10358, %v4053_v53  }
 0x23a   :  { %9190 = vmatmul.mubr.msk.f32.gmra.mrb[58].mxu1 %vm1701_vm4, %v11508_v27  ;;  %9164 = vmatmul.mubr.msk.f32.gmra.mrb[46].mxu0 %vm1701_vm4, %v11653_v54 }
 0x23b   :  { %9200 = vmatprep.mubr.msk.f32.mxu1 %vm1701_vm4, %v11514_v17  ;;  %9166 = vmatprep.mubr.msk.f32.mxu0 %vm1701_vm4, %v11658_v55 }
 0x23e   :  { %9201 = vmatmul.mubr.msk.f32.vlgmr.msra.gmra.mrb[52].mxu1 %vm1701_vm4, %v11527_v33  ;;  %9167 = vmatmul.mubr.msk.f32.gmra.mrb[48].mxu0 %vm1701_vm4, %v11671_v56 }
 0x23f   :  { %9203 = vmatprep.mubr.msk.f32.mxu1 %vm1701_vm4, %v11535_v10  ;;  %9169 = vmatprep.mubr.msk.f32.mxu0 %vm1701_vm4, %v11676_v60 }
 0x242   :  { %9204 = vmatmul.mubr.msk.f32.gmra.mrb[54].mxu1 %vm1701_vm4, %v11549_v15  ;;  %9170 = vmatmul.mubr.msk.f32.gmra.mrb[50].mxu0 %vm1701_vm4, %v11689_v62 }
 0x243   :  { %9206 = vmatprep.mubr.msk.f32.mxu1 %vm1701_vm4, %v11568_v36  ;;  %9240 = vmatprep.mubr.msk.f32.mxu0 %vm1701_vm4, %v11420_v28 }
 0x246   :  { %9207 = vmatmul.mubr.msk.f32.gmra.mrb[56].mxu1 %vm1701_vm4, %v11575_v58 }
 0x247   :  { %9209 = vmatprep.mubr.msk.f32.mxu1 %vm1701_vm4, %v11593_v43 }
 0x248   :  { %v9066_v57 = vpop.f32.mrb[40].mxu0 }
 0x249   :  { %v3685_v4 = vpop.f32.mrb[41].mxu0 }
 0x24a   :  { %9210 = vmatmul.mubr.msk.f32.gmra.mrb[58].mxu1 %vm1701_vm4, %v11601_v45 }
 0x24b   :  { %9220 = vmatprep.mubr.msk.f32.mxu1 %vm1701_vm4, %v11612_v37 }
 0x24c   :  { %v9069_v5 = vpop.f32.mrb[42].mxu0 }
 0x24d   :  { %v3695_v49 = vpop.f32.mrb[43].mxu0 }
 0x258   :  { %v9108_v8 = vpop.f32.mrb[48].mxu1 }
 0x259   :  { %v4008_v12 = vmax.f32 %v9066_v57, %v9108_v8  ;;  %v3984_v14 = vpop.f32.mrb[49].mxu1 }
 0x25a   :  { %v4007_v42 = vmax.f32 %v3685_v4, %v3984_v14 }
 0x25b   :  { %v4012_v52 = vadd.f32 %v4008_v12, %v11426_v18 }
 0x25c   :  { %v4011_v0 = vadd.f32 %v4007_v42, %v11428_v38  ;;  %v9111_v9 = vpop.f32.mrb[50].mxu1 }
 0x25d   :  { %v4016_v41 = vmax.f32 %v4012_v52, 0.0  ;;  %v4010_v16 = vmax.f32 %v9069_v5, %v9111_v9  ;;  %v3994_v19 = vpop.f32.mrb[51].mxu1 }
 0x25e   :  { %v4015_v20 = vmax.f32 %v4011_v0, 0.0  ;;  %v4009_v21 = vmax.f32 %v3695_v49, %v3994_v19 }
 0x25f   :  { %v4014_v22 = vadd.f32 %v4010_v16, %v11432_v25 }
 0x260   :  { %v11710_v23 = vpack.c.bf16 %v4016_v41, %v4015_v20  ;;  %v4013_v30 = vadd.f32 %v4009_v21, %v11434_v63 }
 0x261   :  { %v4018_v3 = vmax.f32 %v4014_v22, 0.0 }
 0x262   :  { %v4017_v61 = vmax.f32 %v4013_v30, 0.0  ;;  %9868 = vmatprep.subr.bf16.mxu1 %v11710_v23  ;;  %9876 = vmatprep.subr.bf16.mxu0 %v11710_v23 }
 0x263   :  { %9870 = vmatpush3.bf16.msra.mxu1 %v11710_v23  ;;  %9878 = vmatpush3.bf16.msra.mxu0 %v11710_v23 }
 0x264   :  { %v11717_v18 = vpack.c.bf16 %v4018_v3, %v4017_v61 }
 0x266   :  { %9872 = vmatprep.subr.bf16.mxu1 %v11717_v18  ;;  %9880 = vmatprep.subr.bf16.mxu0 %v11717_v18 }
 0x267   :  { %9874 = vmatpush3.bf16.msra.mxu1 %v11717_v18  ;;  %9882 = vmatpush3.bf16.msra.mxu0 %v11717_v18 }
 0x268   :  { %9884 = vmatprep.subr.bf16.mxu0 %v11521_v31 }
 0x26a   :  { %9221 = vmatmul.mubr.msk.f32.vlgmr.msra.gmra.mrb[52].mxu1 %vm1701_vm4, %v11627_v48  ;;  %9241 = vmatmul.mubr.msk.f32.vlgmr.msra.gmra.mrb[52].mxu0 %vm1701_vm4, %v11465_v1 }
 0x26b   :  { %9886 = vmatpush3.bf16.msra.mxu0 %v11521_v31  ;;  %9223 = vmatprep.mubr.msk.f32.mxu1 %vm1701_vm4, %v11634_v50 }
 0x26c   :  { %9888 = vmatprep.subr.bf16.mxu0 %v11541_v44  ;;  %9243 = vmatprep.mubr.msk.f32.mxu0 %vm1701_vm4, %v11470_v6 }
 0x26e   :  { %9224 = vmatmul.mubr.msk.f32.gmra.mrb[54].mxu1 %vm1701_vm4, %v11653_v54  ;;  %9244 = vmatmul.mubr.msk.f32.gmra.mrb[54].mxu0 %vm1701_vm4, %v11479_v7 }
 0x26f   :  { %9890 = vmatpush3.bf16.msra.mxu0 %v11541_v44  ;;  %9226 = vmatprep.mubr.msk.f32.mxu1 %vm1701_vm4, %v11658_v55 }
 0x270   :  { %9246 = vmatprep.mubr.msk.f32.mxu0 %vm1701_vm4, %v11484_v11 }
 0x272   :  { %9227 = vmatmul.mubr.msk.f32.gmra.mrb[56].mxu1 %vm1701_vm4, %v11671_v56  ;;  %9247 = vmatmul.mubr.msk.f32.gmra.mrb[56].mxu0 %vm1701_vm4, %v11493_v24 }
 0x273   :  { %9229 = vmatprep.mubr.msk.f32.mxu1 %vm1701_vm4, %v11676_v60  ;;  %9249 = vmatprep.mubr.msk.f32.mxu0 %vm1701_vm4, %v11498_v13 }
 0x276   :  { %9230 = vmatmul.mubr.msk.f32.gmra.mrb[58].mxu1 %vm1701_vm4, %v11689_v62  ;;  %9250 = vmatmul.mubr.msk.f32.gmra.mrb[58].mxu0 %vm1701_vm4, %v11508_v27 }
 0x277   :  { %9260 = vmatprep.mubr.msk.f32.mxu0 %vm1701_vm4, %v11514_v17  ;;  %9300 = vmatprep.mubr.msk.f32.mxu1 %vm1701_vm4, %v11420_v28 }
 0x27a   :  { %9261 = vmatmul.mubr.msk.f32.vlgmr.msra.gmra.mrb[52].mxu0 %vm1701_vm4, %v11527_v33 }
 0x27b   :  { %9263 = vmatprep.mubr.msk.f32.mxu0 %vm1701_vm4, %v11535_v10 }
 0x27e   :  { %v10402_v38 = vpop.permute.xlu1 %10401  ;;  %9264 = vmatmul.mubr.msk.f32.gmra.mrb[54].mxu0 %vm1701_vm4, %v11549_v15 }
 0x27f   :  { %v10404_v25 = vunpack.i.h.bf16 %v10402_v38  ;;  %v10403_v63 = vunpack.i.l.bf16 %v10402_v38  ;;  %v10407_v31 = vpop.permute.xlu0 %10406  ;;  %9266 = vmatprep.mubr.msk.f32.mxu0 %vm1701_vm4, %v11568_v36 }
 0x280   :  { %v10409_v32 = vunpack.i.h.bf16 %v10407_v31  ;;  %v10408_v34 = vunpack.i.l.bf16 %v10407_v31 }
 0x281   :  { %v5112_v28 = vsel %vm3610_vm5, %v10403_v63, %v10404_v25 }
 0x282   :  { %v5111_v26 = vsel %vm3610_vm5, %v10408_v34, %v10409_v32  ;;  %v10417_v2 = vpop.permute.xlu1 %10416  ;;  %9267 = vmatmul.mubr.msk.f32.gmra.mrb[56].mxu0 %vm1701_vm4, %v11575_v58 }
 0x283   :  { %v9891_v44 = vpack.c.bf16 %v5112_v28, %v5111_v26  ;;  %v10419_v59 = vunpack.i.h.bf16 %v10417_v2  ;;  %v10418_v29 = vunpack.i.l.bf16 %v10417_v2  ;;  %v10412_v35 = vpop.permute.xlu0 %10411  ;;  %9269 = vmatprep.mubr.msk.f32.mxu0 %vm1701_vm4, %v11593_v43 }
 0x284   :  { %v10414_v39 = vunpack.i.h.bf16 %v10412_v35  ;;  %v10413_v40 = vunpack.i.l.bf16 %v10412_v35 }
 0x285   :  { %v5114_v46 = vsel %vm3610_vm5, %v10418_v29, %v10419_v59  ;;  %9892 = vmatprep.subr.bf16.mxu0 %v9891_v44  ;;  %9900 = vmatprep.subr.bf16.mxu1 %v9891_v44 }
 0x286   :  { %v5113_v47 = vsel %vm3610_vm5, %v10413_v40, %v10414_v39  ;;  %9894 = vmatpush3.bf16.msra.mxu0 %v9891_v44  ;;  %9902 = vmatpush3.bf16.msra.mxu1 %v9891_v44 }
 0x287   :  { %v9895_v51 = vpack.c.bf16 %v5114_v46, %v5113_v47  ;;  %9270 = vmatmul.mubr.msk.f32.gmra.mrb[58].mxu0 %vm1701_vm4, %v11601_v45 }
 0x288   :  { %9280 = vmatprep.mubr.msk.f32.mxu0 %vm1701_vm4, %v11612_v37 }
 0x289   :  { %9896 = vmatprep.subr.bf16.mxu0 %v9895_v51  ;;  %9904 = vmatprep.subr.bf16.mxu1 %v9895_v51 }
 0x28a   :  { %9898 = vmatpush3.bf16.msra.mxu0 %v9895_v51  ;;  %9906 = vmatpush3.bf16.msra.mxu1 %v9895_v51 }
 0x28b   :  { %9908 = vmatprep.subr.bf16.mxu1 %v11710_v23 }
 0x28d   :  { %9301 = vmatmul.mubr.msk.f32.vlgmr.msra.gmra.mrb[60].mxu1 %vm1701_vm4, %v11465_v1  ;;  %9281 = vmatmul.mubr.msk.f32.vlgmr.msra.gmra.mrb[52].mxu0 %vm1701_vm4, %v11627_v48 }
 0x28e   :  { %9910 = vmatpush3.bf16.msra.mxu1 %v11710_v23  ;;  %9303 = vmatprep.mubr.msk.f32.mxu1 %vm1701_vm4, %v11470_v6 }
 0x28f   :  { %9912 = vmatprep.subr.bf16.mxu1 %v11717_v18  ;;  %9283 = vmatprep.mubr.msk.f32.mxu0 %vm1701_vm4, %v11634_v50 }
 0x291   :  { %9304 = vmatmul.mubr.msk.f32.gmra.mrb[62].mxu1 %vm1701_vm4, %v11479_v7  ;;  %9284 = vmatmul.mubr.msk.f32.gmra.mrb[54].mxu0 %vm1701_vm4, %v11653_v54 }
 0x292   :  { %9914 = vmatpush3.bf16.msra.mxu1 %v11717_v18  ;;  %9306 = vmatprep.mubr.msk.f32.mxu1 %vm1701_vm4, %v11484_v11 }
 0x293   :  { %9286 = vmatprep.mubr.msk.f32.mxu0 %vm1701_vm4, %v11658_v55 }
 0x295   :  { %9307 = vmatmul.mubr.msk.f32.gmra.mrb[64].mxu1 %vm1701_vm4, %v11493_v24  ;;  %9287 = vmatmul.mubr.msk.f32.gmra.mrb[56].mxu0 %vm1701_vm4, %v11671_v56 }
 0x296   :  { %v10422_v1 = vpop.permute.xlu1 %10421  ;;  %9309 = vmatprep.mubr.msk.f32.mxu1 %vm1701_vm4, %v11498_v13  ;;  %9289 = vmatprep.mubr.msk.f32.mxu0 %vm1701_vm4, %v11676_v60 }
 0x297   :  { %v10424_v6 = vunpack.i.h.bf16 %v10422_v1  ;;  %v10423_v7 = vunpack.i.l.bf16 %v10422_v1  ;;  %v10427_v53 = vpop.permute.xlu0 %10426 }
 0x298   :  { %v10429_v11 = vunpack.i.h.bf16 %v10427_v53  ;;  %v10428_v57 = vunpack.i.l.bf16 %v10427_v53 }
 0x299   :  { %9310 = vmatmul.mubr.msk.f32.gmra.mrb[66].mxu1 %vm1701_vm4, %v11508_v27  ;;  %v5471_v24 = vsel %vm3610_vm5, %v10423_v7, %v10424_v6  ;;  %9290 = vmatmul.mubr.msk.f32.gmra.mrb[58].mxu0 %vm1701_vm4, %v11689_v62 }
 0x29a   :  { %v10437_v4 = vpop.permute.xlu1 %10436  ;;  %9320 = vmatprep.mubr.msk.f32.mxu1 %vm1701_vm4, %v11514_v17  ;;  %v5470_v13 = vsel %vm3610_vm5, %v10428_v57, %v10429_v11 }
 0x29b   :  { %v10439_v5 = vunpack.i.h.bf16 %v10437_v4  ;;  %v10438_v49 = vunpack.i.l.bf16 %v10437_v4  ;;  %v10432_v8 = vpop.permute.xlu0 %10431  ;;  %v9915_v12 = vpack.c.bf16 %v5471_v24, %v5470_v13 }
 0x29c   :  { %v10434_v14 = vunpack.i.h.bf16 %v10432_v8  ;;  %v10433_v42 = vunpack.i.l.bf16 %v10432_v8 }
 0x29d   :  { %9321 = vmatmul.mubr.msk.f32.vlgmr.msra.gmra.mrb[60].mxu1 %vm1701_vm4, %v11527_v33  ;;  %9916 = vmatprep.subr.bf16.mxu1 %v9915_v12  ;;  %v5473_v27 = vsel %vm3610_vm5, %v10438_v49, %v10439_v5 }
 0x29e   :  { %9918 = vmatpush3.bf16.msra.mxu1 %v9915_v12  ;;  %9323 = vmatprep.mubr.msk.f32.mxu1 %vm1701_vm4, %v11535_v10  ;;  %v5472_v17 = vsel %vm3610_vm5, %v10433_v42, %v10434_v14 }
 0x29f   :  { %v9919_v52 = vpack.c.bf16 %v5473_v27, %v5472_v17 }
 0x2a1   :  { %9324 = vmatmul.mubr.msk.f32.gmra.mrb[62].mxu1 %vm1701_vm4, %v11549_v15  ;;  %9920 = vmatprep.subr.bf16.mxu1 %v9919_v52 }
 0x2a2   :  { %9922 = vmatpush3.bf16.msra.mxu1 %v9919_v52  ;;  %9326 = vmatprep.mubr.msk.f32.mxu1 %vm1701_vm4, %v11568_v36 }
 0x2a5   :  { %9327 = vmatmul.mubr.msk.f32.gmra.mrb[64].mxu1 %vm1701_vm4, %v11575_v58 }
 0x2a6   :  { %9329 = vmatprep.mubr.msk.f32.mxu1 %vm1701_vm4, %v11593_v43 }
 0x2a9   :  { %9330 = vmatmul.mubr.msk.f32.gmra.mrb[66].mxu1 %vm1701_vm4, %v11601_v45 }
 0x2aa   :  { %9340 = vmatprep.mubr.msk.f32.mxu1 %vm1701_vm4, %v11612_v37 }
 0x2ad   :  { %9341 = vmatmul.mubr.msk.f32.vlgmr.msra.gmra.mrb[60].mxu1 %vm1701_vm4, %v11627_v48  ;;  %v5631_v48 = vld [vmem:[%s12775_s7 + $0x40] sm:$0xff] }
 0x2ae   :  { %9343 = vmatprep.mubr.msk.f32.mxu1 %vm1701_vm4, %v11634_v50  ;;  %9368 = vmatprep.mubr.msk.f32.mxu0 %vm5671_vm6, %v5631_v48  ;;  %v4805_v50 = vpop.permute.xlu1 %4804 }
 0x2b1   :  { %9344 = vmatmul.mubr.msk.f32.gmra.mrb[62].mxu1 %vm1701_vm4, %v11653_v54  ;;  %v4800_v54 = vpop.permute.xlu0 %4799 }
 0x2b2   :  { %9346 = vmatprep.mubr.msk.f32.mxu1 %vm1701_vm4, %v11658_v55 }
 0x2b5   :  { %9347 = vmatmul.mubr.msk.f32.gmra.mrb[64].mxu1 %vm1701_vm4, %v11671_v56  ;;  %v4810_v9 = vpop.permute.xlu0 %4809 }
 0x2b6   :  { %9349 = vmatprep.mubr.msk.f32.mxu1 %vm1701_vm4, %v11676_v60 }
 0x2b9   :  { %9350 = vmatmul.mubr.msk.f32.gmra.mrb[66].mxu1 %vm1701_vm4, %v11689_v62  ;;  %v4815_v62 = vpop.permute.xlu1 %4814  ;;  %v4820_v63 = vpop.permute.xlu0 %4819 }
 0x2ba   :  { %9452 = vmatprep.mubr.msk.f32.mxu1 %vm5671_vm6, %v5631_v48 }
 0x2bd   :  { %v4825_v61 = vpop.permute.xlu1 %4824  ;;  %v4830_v1 = vpop.permute.xlu0 %4829 }
 0x2c1   :  { %v4835_v46 = vpop.permute.xlu1 %4834 }
 0x309   :  { %v9162_v33 = vpop.f32.mrb[44].mxu0 }
 0x30a   :  { %v4415_v10 = vpop.f32.mrb[45].mxu0 }
 0x30d   :  { %v9165_v15 = vpop.f32.mrb[46].mxu0 }
 0x30e   :  { %v4425_v36 = vpop.f32.mrb[47].mxu0 }
 0x311   :  { %v9168_v58 = vpop.f32.mrb[48].mxu0 }
 0x312   :  { %v4435_v43 = vpop.f32.mrb[49].mxu0 }
 0x315   :  { %v9171_v45 = vpop.f32.mrb[50].mxu0 }
 0x316   :  { %v4445_v37 = vpop.f32.mrb[51].mxu0 }
 0x33d   :  { %v9222_v55 = vpop.f32.mrb[52].mxu1 }
 0x33e   :  { %v4790_v56 = vmax.f32 %v9162_v33, %v9222_v55  ;;  %v4742_v60 = vpop.f32.mrb[53].mxu1 }
 0x33f   :  { %v4789_v0 = vmax.f32 %v4415_v10, %v4742_v60 }
 0x340   :  { %v4838_v41 = vadd.f32 %v4805_v50, %v4790_v56 }
 0x341   :  { %v4837_v16 = vadd.f32 %v4800_v54, %v4789_v0  ;;  %v9225_v19 = vpop.f32.mrb[54].mxu1 }
 0x342   :  { %v4846_v20 = vmax.f32 %v4838_v41, 0.0  ;;  %v4792_v21 = vmax.f32 %v9165_v15, %v9225_v19  ;;  %v4752_v22 = vpop.f32.mrb[55].mxu1 }
 0x343   :  { %v4845_v23 = vmax.f32 %v4837_v16, 0.0  ;;  %v4791_v30 = vmax.f32 %v4425_v36, %v4752_v22 }
 0x344   :  { %v11852_v3 = vadd.f32 %v4815_v62, %v4792_v21 }
 0x345   :  { %v11854_v18 = vadd.f32 %v4810_v9, %v4791_v30  ;;  %v9228_v38 = vpop.f32.mrb[56].mxu1  ;;  %v11856_v25 = vpack.c.bf16 %v4846_v20, %v4845_v23 }
 0x346   :  { %v4848_v31 = vmax.f32 %v11852_v3, 0.0  ;;  %v4794_v32 = vmax.f32 %v9168_v58, %v9228_v38  ;;  %v4762_v34 = vpop.f32.mrb[57].mxu1 }
 0x347   :  { %v4847_v28 = vmax.f32 %v11854_v18, 0.0  ;;  %v4793_v26 = vmax.f32 %v4435_v43, %v4762_v34 }
 0x348   :  { %v11860_v2 = vadd.f32 %v4825_v61, %v4794_v32 }
 0x349   :  { %v11862_v44 = vadd.f32 %v4820_v63, %v4793_v26  ;;  %v9231_v59 = vpop.f32.mrb[58].mxu1  ;;  %v11864_v29 = vpack.c.bf16 %v4848_v31, %v4847_v28 }
 0x34a   :  { %v4850_v35 = vmax.f32 %v11860_v2, 0.0  ;;  %v4796_v39 = vmax.f32 %v9171_v45, %v9231_v59  ;;  %v4772_v40 = vpop.f32.mrb[59].mxu1 }
 0x34b   :  { %v4849_v47 = vmax.f32 %v11862_v44, 0.0  ;;  %v4795_v51 = vmax.f32 %v4445_v37, %v4772_v40 }
 0x34c   :  { %v11868_v6 = vadd.f32 %v4835_v46, %v4796_v39 }
 0x34d   :  { %v11870_v7 = vadd.f32 %v4830_v1, %v4795_v51  ;;  %v11874_v53 = vpack.c.bf16 %v4850_v35, %v4849_v47  ;;  %v11918_v51 = vld [vmem:[%s12775_s7 + $0x48] sm:$0xff] }
 0x34e   :  { %v4852_v11 = vmax.f32 %v11868_v6, 0.0  ;;  %v11925_v6 = vld [vmem:[%s12775_s7 + $0x50] sm:$0xff] }
 0x34f   :  { %v4851_v57 = vmax.f32 %v11870_v7, 0.0 }
 0x351   :  { %v11882_v24 = vpack.c.bf16 %v4852_v11, %v4851_v57 }
 0x360   :  { %v9282_v4 = vpop.f32.mrb[52].mxu0 }
 0x361   :  { %v5185_v13 = vpop.f32.mrb[53].mxu0 }
 0x364   :  { %v9285_v5 = vpop.f32.mrb[54].mxu0 }
 0x365   :  { %v5195_v49 = vpop.f32.mrb[55].mxu0 }
 0x368   :  { %v9288_v8 = vpop.f32.mrb[56].mxu0 }
 0x369   :  { %v5205_v12 = vpop.f32.mrb[57].mxu0 }
 0x36c   :  { %v9291_v14 = vpop.f32.mrb[58].mxu0 }
 0x36d   :  { %v5215_v42 = vpop.f32.mrb[59].mxu0 }
 0x380   :  { %v9342_v27 = vpop.f32.mrb[60].mxu1 }
 0x381   :  { %v5592_v17 = vmax.f32 %v9282_v4, %v9342_v27  ;;  %v5544_v52 = vpop.f32.mrb[61].mxu1  ;;  %v11945_v4 = vld [vmem:[%s12775_s7 + $0x60] sm:$0xff]  ;;  %v12003_v27 = vld [vmem:[%s12775_s7 + $0x8] sm:$0xff] }
 0x382   :  { %v5591_v33 = vmax.f32 %v5185_v13, %v5544_v52  ;;  %v11958_v13 = vld [vmem:[%s12775_s7 + $0x68] sm:$0xff]  ;;  %v5649_v52 = vld [vmem:[%s12776_s8 + $0x10] sm:$0xff] }
 0x383   :  { %v5600_v10 = vadd.f32 %v5592_v17, %v4805_v50  ;;  %v12008_v17 = vld [vmem:[%s12775_s7 + $0x10] sm:$0xff] }
 0x384   :  { %v5599_v15 = vadd.f32 %v5591_v33, %v4800_v54  ;;  %v9345_v36 = vpop.f32.mrb[62].mxu1  ;;  %v12023_v33 = vld [vmem:[%s12775_s7 + $0x18] sm:$0xff] }
 0x385   :  { %v5608_v58 = vmax.f32 %v5600_v10, 0.0  ;;  %v5594_v43 = vmax.f32 %v9285_v5, %v9345_v36  ;;  %v5554_v45 = vpop.f32.mrb[63].mxu1  ;;  %v12028_v10 = vld [vmem:[%s12775_s7 + $0x20] sm:$0xff] }
 0x386   :  { %v5607_v37 = vmax.f32 %v5599_v15, 0.0  ;;  %v5593_v48 = vmax.f32 %v5195_v49, %v5554_v45  ;;  %v11965_v49 = vld [vmem:[%s12775_s7 + $0x70] sm:$0xff]  ;;  %v5652_v15 = vld [vmem:[%s12776_s8 + $0x28] sm:$0xff]  ;;  %v5651_v36 = vld [vmem:[%s12776_s8 + $0x20] sm:$0xff] }
 0x387   :  { %v5602_v55 = vadd.f32 %v5594_v43, %v4815_v62  ;;  %v10440_v56 = vpack.i.bf16 %v5608_v58, %v4846_v20  ;;  %v12048_v43 = vld [vmem:[%s12775_s7 + $0x30] sm:$0xff]  ;;  %v5654_v45 = vld [vmem:[%s12776_s8 + $0x38] sm:$0xff] }
 0x388   :  { %v5601_v60 = vadd.f32 %v5593_v48, %v4810_v9  ;;  %v9348_v0 = vpop.f32.mrb[64].mxu1  ;;  %v10445_v41 = vpack.i.bf16 %v5607_v37, %v4845_v23  ;;  %v11884_v16 = vpack.c.bf16 %v5608_v58, %v5607_v37  ;;  %v12063_v48 = vld [vmem:[%s12775_s7 + $0x38] sm:$0xff] }
 0x389   :  { %v5610_v19 = vmax.f32 %v5602_v55, 0.0  ;;  %v5596_v21 = vmax.f32 %v9288_v8, %v9348_v0  ;;  %v5564_v22 = vpop.f32.mrb[65].mxu1  ;;  %10441 = vrot.lane.b32.xlu1 %v10440_v56, %s10522_s16  ;;  %v11978_v8 = vld [vmem:[%s12775_s7 + $0x78] sm:$0xff]  ;;  %v12068_v55 = vld [vmem:[%s12775_s7 + $0x80] sm:$0xff] }
 0x38a   :  { %v5609_v50 = vmax.f32 %v5601_v60, 0.0  ;;  %v5595_v54 = vmax.f32 %v5205_v12, %v5564_v22  ;;  %10446 = vrot.lane.b32.xlu0 %v10445_v41, %s10522_s16  ;;  %9924 = vmatprep.subr.bf16.mxu0 %v11884_v16 }
 0x38b   :  { %v5604_v30 = vadd.f32 %v5596_v21, %v4825_v61  ;;  %9926 = vmatpush3.bf16.msra.mxu0 %v11884_v16  ;;  %v10450_v62 = vpack.i.bf16 %v5610_v19, %v4848_v31 }
 0x38c   :  { %v5603_v9 = vadd.f32 %v5595_v54, %v4820_v63  ;;  %v9351_v20 = vpop.f32.mrb[66].mxu1  ;;  %v10455_v23 = vpack.i.bf16 %v5609_v50, %v4847_v28  ;;  %v11890_v3 = vpack.c.bf16 %v5610_v19, %v5609_v50 }
 0x38d   :  { %v5612_v18 = vmax.f32 %v5604_v30, 0.0  ;;  %v5598_v38 = vmax.f32 %v9291_v14, %v9351_v20  ;;  %v5574_v32 = vpop.f32.mrb[67].mxu1  ;;  %10451 = vrot.lane.b32.xlu1 %v10450_v62, %s10522_s16  ;;  %v11985_v14 = vld [vmem:[%s12775_s7] sm:$0xff] }
 0x38e   :  { %v5611_v34 = vmax.f32 %v5603_v9, 0.0  ;;  %v5597_v26 = vmax.f32 %v5215_v42, %v5574_v32  ;;  %10456 = vrot.lane.b32.xlu0 %v10455_v23, %s10522_s16  ;;  %9928 = vmatprep.subr.bf16.mxu0 %v11890_v3  ;;  %v5647_v42 = vld [vmem:[%s12776_s8] sm:$0xff] }
 0x38f   :  { %v5606_v61 = vadd.f32 %v5598_v38, %v4835_v46  ;;  %9930 = vmatpush3.bf16.msra.mxu0 %v11890_v3  ;;  %v10460_v63 = vpack.i.bf16 %v5612_v18, %v4850_v35  ;;  %v10523_v35 = vmov 0.0  }
 0x390   :  { %v5605_v31 = vadd.f32 %v5597_v26, %v4830_v1  ;;  %v10465_v28 = vpack.i.bf16 %v5611_v34, %v4849_v47  ;;  %v11898_v44 = vpack.c.bf16 %v5612_v18, %v5611_v34  ;;  %v10485_v47 = vpack.i.bf16 %v10523_v35, %v5608_v58  ;;  %v12043_v58 = vld [vmem:[%s12775_s7 + $0x28] sm:$0xff] }
 0x391   :  { %v5614_v59 = vmax.f32 %v5606_v61, 0.0  ;;  %10461 = vrot.lane.b32.xlu1 %v10460_v63, %s10522_s16  ;;  %v10480_v1 = vpack.i.bf16 %v10523_v35, %v5607_v37  ;;  %v10495_v7 = vpack.i.bf16 %v10523_v35, %v5610_v19  ;;  %v10500_v5 = vpack.i.bf16 %v10523_v35, %v5611_v34  ;;  %v5653_v37 = vld [vmem:[%s12776_s8 + $0x30] sm:$0xff] }
 0x392   :  { %v5613_v39 = vmax.f32 %v5605_v31, 0.0  ;;  %10466 = vrot.lane.b32.xlu0 %v10465_v28, %s10522_s16  ;;  %9932 = vmatprep.subr.bf16.mxu0 %v11898_v44 }
 0x393   :  { %9934 = vmatpush3.bf16.msra.mxu0 %v11898_v44  ;;  %v10475_v40 = vpack.i.bf16 %v5614_v59, %v4852_v11  ;;  %v11938_v11 = vld [vmem:[%s12775_s7 + $0x58] sm:$0xff] }
 0x394   :  { %v11906_v46 = vpack.c.bf16 %v5614_v59, %v5613_v39  ;;  %v10470_v2 = vpack.i.bf16 %v5613_v39, %v4851_v57  ;;  %v10490_v57 = vpack.i.bf16 %v10523_v35, %v5609_v50  ;;  %v10510_v12 = vpack.i.bf16 %v10523_v35, %v5613_v39 }
 0x395   :  { %10476 = vrot.lane.b32.xlu1 %v10475_v40, %s10522_s16 }
 0x396   :  { %9936 = vmatprep.subr.bf16.mxu0 %v11906_v46  ;;  %10471 = vrot.lane.b32.xlu0 %v10470_v2, %s10522_s16 }
 0x397   :  { %9938 = vmatpush3.bf16.msra.mxu0 %v11906_v46 }
 0x398   :  { %9940 = vmatprep.subr.bf16.mxu0 %v11856_v25 }
 0x399   :  { %10486 = vrot.lane.b32.xlu1 %v10485_v47, %s10522_s16 }
 0x39a   :  { %10481 = vrot.lane.b32.xlu0 %v10480_v1, %s10522_s16  ;;  %9369 = vmatmul.mubr.msk.f32.vlgmr.msra.gmra.mrb[60].mxu0 %vm5671_vm6, %v11918_v51 }
 0x39b   :  { %9942 = vmatpush3.bf16.msra.mxu0 %v11856_v25  ;;  %9371 = vmatprep.mubr.msk.f32.mxu0 %vm5671_vm6, %v11925_v6  ;;  %v10505_v25 = vpack.i.bf16 %v10523_v35, %v5612_v18 }
 0x39c   :  { %9944 = vmatprep.subr.bf16.mxu0 %v11864_v29 }
 0x39d   :  { %10496 = vrot.lane.b32.xlu1 %v10495_v7, %s10522_s16 }
 0x39e   :  { %10491 = vrot.lane.b32.xlu0 %v10490_v57, %s10522_s16  ;;  %9372 = vmatmul.mubr.msk.f32.gmra.mrb[62].mxu0 %vm5671_vm6, %v11938_v11 }
 0x39f   :  { %9946 = vmatpush3.bf16.msra.mxu0 %v11864_v29  ;;  %9374 = vmatprep.mubr.msk.f32.mxu0 %vm5671_vm6, %v11945_v4  ;;  %v10515_v29 = vpack.i.bf16 %v10523_v35, %v5614_v59 }
 0x3a0   :  { %9948 = vmatprep.subr.bf16.mxu0 %v11874_v53 }
 0x3a1   :  { %10506 = vrot.lane.b32.xlu1 %v10505_v25, %s10522_s16 }
 0x3a2   :  { %10501 = vrot.lane.b32.xlu0 %v10500_v5, %s10522_s16  ;;  %9375 = vmatmul.mubr.msk.f32.gmra.mrb[64].mxu0 %vm5671_vm6, %v11958_v13 }
 0x3a3   :  { %9950 = vmatpush3.bf16.msra.mxu0 %v11874_v53  ;;  %9377 = vmatprep.mubr.msk.f32.mxu0 %vm5671_vm6, %v11965_v49  ;;  %v5648_v53 = vld [vmem:[%s12776_s8 + $0x8] sm:$0xff] }
 0x3a4   :  { %9952 = vmatprep.subr.bf16.mxu0 %v11882_v24 }
 0x3a5   :  { %10516 = vrot.lane.b32.xlu1 %v10515_v29, %s10522_s16 }
 0x3a6   :  { %10511 = vrot.lane.b32.xlu0 %v10510_v12, %s10522_s16  ;;  %9378 = vmatmul.mubr.msk.f32.gmra.mrb[66].mxu0 %vm5671_vm6, %v11978_v8 }
 0x3a7   :  { %9954 = vmatpush3.bf16.msra.mxu0 %v11882_v24  ;;  %9396 = vmatprep.mubr.msk.f32.mxu0 %vm5671_vm6, %v11985_v14  ;;  %v5650_v24 = vld [vmem:[%s12776_s8 + $0x18] sm:$0xff]  ;;  %s10524_s8 = smov 64  }
 0x3a9   :  { %6557 = vperm.xlu1 %10359, %v5648_v53  }
 0x3aa   :  { %6552 = vperm.xlu0 %10358, %v5647_v42   ;;  %9397 = vmatmul.mubr.msk.f32.vlgmr.msra.gmra.mrb[60].mxu0 %vm5671_vm6, %v12003_v27 }
 0x3ab   :  { %9399 = vmatprep.mubr.msk.f32.mxu0 %vm5671_vm6, %v12008_v17 }
 0x3ad   :  { %6567 = vperm.xlu1 %10359, %v5650_v24  }
 0x3ae   :  { %6562 = vperm.xlu0 %10358, %v5649_v52   ;;  %9400 = vmatmul.mubr.msk.f32.gmra.mrb[62].mxu0 %vm5671_vm6, %v12023_v33  ;;  %v12085_v52 = vld [vmem:[%s12775_s7 + $0x88] sm:$0xff] }
 0x3af   :  { %9402 = vmatprep.mubr.msk.f32.mxu0 %vm5671_vm6, %v12028_v10 }
 0x3b1   :  { %6577 = vperm.xlu1 %10359, %v5652_v15   ;;  %v12091_v15 = vld [vmem:[%s12775_s7 + $0x90] sm:$0xff] }
 0x3b2   :  { %6572 = vperm.xlu0 %10358, %v5651_v36   ;;  %9403 = vmatmul.mubr.msk.f32.gmra.mrb[64].mxu0 %vm5671_vm6, %v12043_v58  ;;  %v12103_v36 = vld [vmem:[%s12775_s7 + $0x98] sm:$0xff] }
 0x3b3   :  { %9405 = vmatprep.mubr.msk.f32.mxu0 %vm5671_vm6, %v12048_v43 }
 0x3b5   :  { %6587 = vperm.xlu1 %10359, %v5654_v45  }
 0x3b6   :  { %6582 = vperm.xlu0 %10358, %v5653_v37   ;;  %9406 = vmatmul.mubr.msk.f32.gmra.mrb[66].mxu0 %vm5671_vm6, %v12063_v48 }
 0x3b7   :  { %9424 = vmatprep.mubr.msk.f32.mxu0 %vm5671_vm6, %v12068_v55 }
 0x3fb   :  { %v10442_v56 = vpop.permute.xlu1 %10441 }
 0x3fc   :  { %v10444_v60 = vunpack.i.h.bf16 %v10442_v56  ;;  %v10443_v0 = vunpack.i.l.bf16 %v10442_v56  ;;  %v10447_v41 = vpop.permute.xlu0 %10446 }
 0x3fd   :  { %v10449_v19 = vunpack.i.h.bf16 %v10447_v41  ;;  %v10448_v21 = vunpack.i.l.bf16 %v10447_v41 }
 0x3fe   :  { %v5987_v22 = vsel %vm3610_vm5, %v10443_v0, %v10444_v60  ;;  %v12123_v0 = vld [vmem:[%s12775_s7 + $0xa8] sm:$0xff] }
 0x3ff   :  { %v5986_v50 = vsel %vm3610_vm5, %v10448_v21, %v10449_v19  ;;  %v10452_v54 = vpop.permute.xlu1 %10451 }
 0x400   :  { %v9955_v30 = vpack.c.bf16 %v5987_v22, %v5986_v50  ;;  %v10454_v62 = vunpack.i.h.bf16 %v10452_v54  ;;  %v10453_v9 = vunpack.i.l.bf16 %v10452_v54  ;;  %v10457_v20 = vpop.permute.xlu0 %10456 }
 0x401   :  { %v10459_v23 = vunpack.i.h.bf16 %v10457_v20  ;;  %v10458_v18 = vunpack.i.l.bf16 %v10457_v20 }
 0x402   :  { %v5989_v38 = vsel %vm3610_vm5, %v10453_v9, %v10454_v62  ;;  %9956 = vmatprep.subr.bf16.mxu0 %v9955_v30  ;;  %9972 = vmatprep.subr.bf16.mxu1 %v9955_v30 }
 0x403   :  { %v5988_v32 = vsel %vm3610_vm5, %v10458_v18, %v10459_v23  ;;  %9974 = vmatpush3.bf16.msra.mxu1 %v9955_v30  ;;  %v10462_v34 = vpop.permute.xlu1 %10461  ;;  %9958 = vmatpush3.bf16.msra.mxu0 %v9955_v30 }
 0x404   :  { %v9959_v26 = vpack.c.bf16 %v5989_v38, %v5988_v32  ;;  %v10464_v61 = vunpack.i.h.bf16 %v10462_v34  ;;  %v10463_v63 = vunpack.i.l.bf16 %v10462_v34  ;;  %v10467_v31 = vpop.permute.xlu0 %10466 }
 0x405   :  { %v10469_v28 = vunpack.i.h.bf16 %v10467_v31  ;;  %v10468_v59 = vunpack.i.l.bf16 %v10467_v31 }
 0x406   :  { %v5991_v39 = vsel %vm3610_vm5, %v10463_v63, %v10464_v61  ;;  %9960 = vmatprep.subr.bf16.mxu0 %v9959_v26  ;;  %9976 = vmatprep.subr.bf16.mxu1 %v9959_v26 }
 0x407   :  { %v5990_v40 = vsel %vm3610_vm5, %v10468_v59, %v10469_v28  ;;  %9978 = vmatpush3.bf16.msra.mxu1 %v9959_v26  ;;  %v10477_v2 = vpop.permute.xlu1 %10476  ;;  %9962 = vmatpush3.bf16.msra.mxu0 %v9959_v26 }
 0x408   :  { %v9963_v47 = vpack.c.bf16 %v5991_v39, %v5990_v40  ;;  %v10479_v1 = vunpack.i.h.bf16 %v10477_v2  ;;  %v10478_v7 = vunpack.i.l.bf16 %v10477_v2  ;;  %v10472_v57 = vpop.permute.xlu0 %10471 }
 0x409   :  { %v10474_v25 = vunpack.i.h.bf16 %v10472_v57  ;;  %v10473_v5 = vunpack.i.l.bf16 %v10472_v57 }
 0x40a   :  { %v5993_v29 = vsel %vm3610_vm5, %v10478_v7, %v10479_v1  ;;  %9964 = vmatprep.subr.bf16.mxu0 %v9963_v47  ;;  %9980 = vmatprep.subr.bf16.mxu1 %v9963_v47 }
 0x40b   :  { %v5992_v12 = vsel %vm3610_vm5, %v10473_v5, %v10474_v25  ;;  %9982 = vmatpush3.bf16.msra.mxu1 %v9963_v47  ;;  %9966 = vmatpush3.bf16.msra.mxu0 %v9963_v47  ;;  %v10487_v42 = vpop.permute.xlu1 %10486 }
 0x40c   :  { %v9967_v53 = vpack.c.bf16 %v5993_v29, %v5992_v12  ;;  %v10482_v24 = vpop.permute.xlu0 %10481  ;;  %v10488_v56 = vunpack.i.l.bf16 %v10487_v42 }
 0x40d   :  { %v10483_v60 = vunpack.i.l.bf16 %v10482_v24 }
 0x40e   :  { %9968 = vmatprep.subr.bf16.mxu0 %v9967_v53  ;;  %9984 = vmatprep.subr.bf16.mxu1 %v9967_v53 }
 0x40f   :  { %9970 = vmatpush3.bf16.msra.mxu0 %v9967_v53  ;;  %9986 = vmatpush3.bf16.msra.mxu1 %v9967_v53  ;;  %v10497_v45 = vpop.permute.xlu1 %10496 }
 0x410   :  { %9988 = vmatprep.subr.bf16.mxu1 %v11884_v16  ;;  %v10492_v37 = vpop.permute.xlu0 %10491  ;;  %v10499_v21 = vunpack.i.h.bf16 %v10497_v45  ;;  %v10498_v22 = vunpack.i.l.bf16 %v10497_v45 }
 0x411   :  { %v10494_v50 = vunpack.i.h.bf16 %v10492_v37  ;;  %v10493_v54 = vunpack.i.l.bf16 %v10492_v37 }
 0x412   :  { %9453 = vmatmul.mubr.msk.f32.vlgmr.msra.gmra.mrb[68].mxu1 %vm5671_vm6, %v11918_v51  ;;  %9425 = vmatmul.mubr.msk.f32.vlgmr.msra.gmra.mrb[60].mxu0 %vm5671_vm6, %v12085_v52  ;;  %v12111_v51 = vld [vmem:[%s12775_s7 + $0xa0] sm:$0xff] }
 0x413   :  { %9990 = vmatpush3.bf16.msra.mxu1 %v11884_v16  ;;  %9455 = vmatprep.mubr.msk.f32.mxu1 %vm5671_vm6, %v11925_v6  ;;  %v10489_v16 = vunpack.i.h.bf16 %v10487_v42  ;;  %v10484_v6 = vunpack.i.h.bf16 %v10482_v24  ;;  %v10507_v41 = vpop.permute.xlu1 %10506 }
 0x414   :  { %9992 = vmatprep.subr.bf16.mxu1 %v11890_v3  ;;  %9427 = vmatprep.mubr.msk.f32.mxu0 %vm5671_vm6, %v12091_v15  ;;  %v10502_v19 = vpop.permute.xlu0 %10501  ;;  %v10509_v62 = vunpack.i.h.bf16 %v10507_v41  ;;  %v10508_v9 = vunpack.i.l.bf16 %v10507_v41 }
 0x415   :  { %v10504_v20 = vunpack.i.h.bf16 %v10502_v19  ;;  %v10503_v23 = vunpack.i.l.bf16 %v10502_v19 }
 0x416   :  { %9456 = vmatmul.mubr.msk.f32.gmra.mrb[70].mxu1 %vm5671_vm6, %v11938_v11  ;;  %9428 = vmatmul.mubr.msk.f32.gmra.mrb[62].mxu0 %vm5671_vm6, %v12103_v36  ;;  %v5645_v11 = vld [vmem:[%s12775_s7 + $0xb0] sm:$0xff]  ;;  %v6418_v34 = vsel %vm3610_vm5, %v10508_v9, %v10509_v62 }
 0x417   :  { %9994 = vmatpush3.bf16.msra.mxu1 %v11890_v3  ;;  %9458 = vmatprep.mubr.msk.f32.mxu1 %vm5671_vm6, %v11945_v4  ;;  %v6413_v3 = vsel %vm3610_vm5, %v10483_v60, %v10484_v6  ;;  %v6414_v4 = vsel %vm3610_vm5, %v10488_v56, %v10489_v16  ;;  %v10517_v18 = vpop.permute.xlu1 %10516 }
 0x418   :  { %9996 = vmatprep.subr.bf16.mxu1 %v11898_v44  ;;  %9430 = vmatprep.mubr.msk.f32.mxu0 %vm5671_vm6, %v12111_v51  ;;  %v10003_v30 = vpack.c.bf16 %v6414_v4, %v6413_v3  ;;  %v10512_v38 = vpop.permute.xlu0 %10511  ;;  %v10519_v26 = vunpack.i.h.bf16 %v10517_v18 }
 0x419   :  { %v10514_v61 = vunpack.i.h.bf16 %v10512_v38  ;;  %v10513_v63 = vunpack.i.l.bf16 %v10512_v38 }
 0x41a   :  { %9459 = vmatmul.mubr.msk.f32.gmra.mrb[72].mxu1 %vm5671_vm6, %v11958_v13  ;;  %9431 = vmatmul.mubr.msk.f32.gmra.mrb[64].mxu0 %vm5671_vm6, %v12123_v0  ;;  %v5646_v13 = vld [vmem:[%s12775_s7 + $0xb8] sm:$0xff] }
 0x41b   :  { %9998 = vmatpush3.bf16.msra.mxu1 %v11898_v44  ;;  %9461 = vmatprep.mubr.msk.f32.mxu1 %vm5671_vm6, %v11965_v49  ;;  %v6415_v44 = vsel %vm3610_vm5, %v10493_v54, %v10494_v50  ;;  %v6416_v49 = vsel %vm3610_vm5, %v10498_v22, %v10499_v21 }
 0x41c   :  { %10000 = vmatprep.subr.bf16.mxu1 %v11906_v46  ;;  %9433 = vmatprep.mubr.msk.f32.mxu0 %vm5671_vm6, %v5645_v11  ;;  %v10007_v32 = vpack.c.bf16 %v6416_v49, %v6415_v44  ;;  %v6834_v44 = vld [vmem:[%s12777_s9 + $0x80] sm:$0xff]  ;;  %v6835_v49 = vld [vmem:[%s12777_s9 + $0x88] sm:$0xff] }
 0x41d   :  { %v10019_v38 = vpack.c.bf16 %v6835_v49, %v6834_v44 }
 0x41e   :  { %9462 = vmatmul.mubr.msk.f32.gmra.mrb[74].mxu1 %vm5671_vm6, %v11978_v8  ;;  %9434 = vmatmul.mubr.msk.f32.gmra.mrb[66].mxu0 %vm5671_vm6, %v5646_v13  ;;  %v6417_v8 = vsel %vm3610_vm5, %v10503_v23, %v10504_v20 }
 0x41f   :  { %10002 = vmatpush3.bf16.msra.mxu1 %v11906_v46  ;;  %9480 = vmatprep.mubr.msk.f32.mxu1 %vm5671_vm6, %v11985_v14  ;;  %v10518_v46 = vunpack.i.l.bf16 %v10517_v18  ;;  %v10011_v14 = vpack.c.bf16 %v6418_v34, %v6417_v8  ;;  %v6818_v18 = vld [vmem:[%s12777_s9] sm:$0xff]  ;;  %v6836_v8 = vld [vmem:[%s12777_s9 + $0x90] sm:$0xff]  ;;  %v6837_v34 = vld [vmem:[%s12777_s9 + $0x98] sm:$0xff] }
 0x420   :  { %10004 = vmatprep.subr.bf16.mxu1 %v10003_v30  ;;  %10020 = vmatprep.subr.bf16.mxu0 %v10019_v38 }
 0x421   :  { %v6420_v31 = vsel %vm3610_vm5, %v10518_v46, %v10519_v26  ;;  %v10023_v46 = vpack.c.bf16 %v6837_v34, %v6836_v8  ;;  %v6828_v8 = vld [vmem:[%s12777_s9 + $0x50] sm:$0xff]  ;;  %v6829_v34 = vld [vmem:[%s12777_s9 + $0x58] sm:$0xff] }
 0x422   :  { %9481 = vmatmul.mubr.msk.f32.vlgmr.msra.gmra.mrb[68].mxu1 %vm5671_vm6, %v12003_v27  ;;  %v6419_v27 = vsel %vm3610_vm5, %v10513_v63, %v10514_v61  ;;  %v6820_v61 = vld [vmem:[%s12777_s9 + $0x10] sm:$0xff]  ;;  %v6821_v63 = vld [vmem:[%s12777_s9 + $0x18] sm:$0xff] }
 0x423   :  { %10006 = vmatpush3.bf16.msra.mxu1 %v10003_v30  ;;  %9483 = vmatprep.mubr.msk.f32.mxu1 %vm5671_vm6, %v12008_v17  ;;  %v10015_v28 = vpack.c.bf16 %v6420_v31, %v6419_v27  ;;  %v6839_v27 = vld [vmem:[%s12777_s9 + $0xa8] sm:$0xff]  ;;  %v6866_v31 = vld [vmem:[%s12777_s9 + $0x180] sm:$0xff] }
 0x424   :  { %10008 = vmatprep.subr.bf16.mxu1 %v10007_v32 }
 0x426   :  { %9484 = vmatmul.mubr.msk.f32.gmra.mrb[70].mxu1 %vm5671_vm6, %v12023_v33 }
 0x427   :  { %10010 = vmatpush3.bf16.msra.mxu1 %v10007_v32  ;;  %9486 = vmatprep.mubr.msk.f32.mxu1 %vm5671_vm6, %v12028_v10  ;;  %v6819_v32 = vld [vmem:[%s12777_s9 + $0x8] sm:$0xff] }
 0x428   :  { %10012 = vmatprep.subr.bf16.mxu1 %v10011_v14  ;;  %v6558_v25 = vpop.permute.xlu1 %6557  ;;  %v10021_v26 = vpack.c.bf16 %v6819_v32, %v6818_v18 }
 0x429   :  { %v6553_v1 = vpop.permute.xlu0 %6552 }
 0x42a   :  { %9487 = vmatmul.mubr.msk.f32.gmra.mrb[72].mxu1 %vm5671_vm6, %v12043_v58  ;;  %10022 = vmatpush3.bf16.msra.mxu0 %v10021_v26  ;;  %v10041_v26 = vpack.c.bf16 %v6829_v34, %v6828_v8 }
 0x42b   :  { %10014 = vmatpush3.bf16.msra.mxu1 %v10011_v14  ;;  %9489 = vmatprep.mubr.msk.f32.mxu1 %vm5671_vm6, %v12048_v43  ;;  %v6838_v14 = vld [vmem:[%s12777_s9 + $0xa0] sm:$0xff] }
 0x42c   :  { %10016 = vmatprep.subr.bf16.mxu1 %v10015_v28  ;;  %v6568_v56 = vpop.permute.xlu1 %6567  ;;  %10024 = vmatprep.subr.bf16.mxu0 %v10023_v46  ;;  %v6856_v46 = vld [vmem:[%s12777_s9 + $0x130] sm:$0xff] }
 0x42e   :  { %9490 = vmatmul.mubr.msk.f32.gmra.mrb[74].mxu1 %vm5671_vm6, %v12063_v48 }
 0x42f   :  { %10018 = vmatpush3.bf16.msra.mxu1 %v10015_v28  ;;  %9508 = vmatprep.mubr.msk.f32.mxu1 %vm5671_vm6, %v12068_v55  ;;  %v6867_v28 = vld [vmem:[%s12777_s9 + $0x188] sm:$0xff] }
 0x430   :  { %v6578_v21 = vpop.permute.xlu1 %6577 }
 0x432   :  { %9509 = vmatmul.mubr.msk.f32.vlgmr.msra.gmra.mrb[68].mxu1 %vm5671_vm6, %v12085_v52  ;;  %v6563_v52 = vpop.permute.xlu0 %6562 }
 0x433   :  { %9511 = vmatprep.mubr.msk.f32.mxu1 %vm5671_vm6, %v12091_v15 }
 0x434   :  { %v6588_v62 = vpop.permute.xlu1 %6587 }
 0x436   :  { %9512 = vmatmul.mubr.msk.f32.gmra.mrb[70].mxu1 %vm5671_vm6, %v12103_v36  ;;  %v6573_v19 = vpop.permute.xlu0 %6572 }
 0x437   :  { %9514 = vmatprep.mubr.msk.f32.mxu1 %vm5671_vm6, %v12111_v51 }
 0x43a   :  { %9515 = vmatmul.mubr.msk.f32.gmra.mrb[72].mxu1 %vm5671_vm6, %v12123_v0  ;;  %v6583_v54 = vpop.permute.xlu0 %6582 }
 0x43b   :  { %9517 = vmatprep.mubr.msk.f32.mxu1 %vm5671_vm6, %v5645_v11 }
 0x43e   :  { %9518 = vmatmul.mubr.msk.f32.gmra.mrb[74].mxu1 %vm5671_vm6, %v5646_v13 }
 0x4e5   :  { %v9426_v17 = vpop.f32.mrb[60].mxu0 }
 0x4e6   :  { %v6092_v33 = vpop.f32.mrb[61].mxu0 }
 0x4e9   :  { %v9429_v10 = vpop.f32.mrb[62].mxu0 }
 0x4ea   :  { %v6102_v58 = vpop.f32.mrb[63].mxu0 }
 0x4ed   :  { %v9432_v43 = vpop.f32.mrb[64].mxu0 }
 0x4ee   :  { %v6112_v48 = vpop.f32.mrb[65].mxu0 }
 0x4f1   :  { %v9435_v55 = vpop.f32.mrb[66].mxu0 }
 0x4f2   :  { %v6122_v59 = vpop.f32.mrb[67].mxu0 }
 0x505   :  { %v9510_v39 = vpop.f32.mrb[68].mxu1 }
 0x506   :  { %v6543_v40 = vmax.f32 %v9426_v17, %v9510_v39  ;;  %v6495_v2 = vpop.f32.mrb[69].mxu1  ;;  %v10025_v17 = vpack.c.bf16 %v6821_v63, %v6820_v61  ;;  %v6857_v61 = vld [vmem:[%s12777_s9 + $0x138] sm:$0xff]  ;;  %v6846_v63 = vld [vmem:[%s12777_s9 + $0xe0] sm:$0xff] }
 0x507   :  { %v6542_v47 = vmax.f32 %v6092_v33, %v6495_v2  ;;  %v10051_v33 = vpack.c.bf16 %v6867_v28, %v6866_v31  ;;  %v6868_v2 = vld [vmem:[%s12777_s9 + $0x190] sm:$0xff]  ;;  %v6874_v31 = vld [vmem:[%s12777_s9 + $0x1c0] sm:$0xff]  ;;  %v6875_v28 = vld [vmem:[%s12777_s9 + $0x1c8] sm:$0xff] }
 0x508   :  { %v6591_v12 = vadd.f32 %v6558_v25, %v6543_v40  ;;  %v6841_v40 = vld [vmem:[%s12777_s9 + $0xb8] sm:$0xff]  ;;  %10026 = vmatpush3.bf16.msra.mxu0 %v10025_v17 }
 0x509   :  { %v6590_v7 = vadd.f32 %v6553_v1, %v6542_v47  ;;  %v9513_v57 = vpop.f32.mrb[70].mxu1  ;;  %10052 = vmatprep.subr.bf16.mxu1 %v10051_v33  ;;  %v6869_v47 = vld [vmem:[%s12777_s9 + $0x198] sm:$0xff] }
 0x50a   :  { %v6545_v5 = vmax.f32 %v9429_v10, %v9513_v57  ;;  %v6505_v29 = vpop.f32.mrb[71].mxu1  ;;  %v6599_v45 = vmax.f32 %v6591_v12, 0.0  ;;  %v6822_v10 = vld [vmem:[%s12777_s9 + $0x20] sm:$0xff]  ;;  %v10055_v1 = vpack.c.bf16 %v6869_v47, %v6868_v2  ;;  %v6853_v57 = vld [vmem:[%s12777_s9 + $0x118] sm:$0xff]  ;;  %v6859_v47 = vld [vmem:[%s12777_s9 + $0x148] sm:$0xff] }
 0x50b   :  { %v6598_v53 = vmax.f32 %v6590_v7, 0.0  ;;  %v6544_v42 = vmax.f32 %v6102_v58, %v6505_v29  ;;  %v6850_v58 = vld [vmem:[%s12777_s9 + $0x100] sm:$0xff]  ;;  %v6852_v7 = vld [vmem:[%s12777_s9 + $0x110] sm:$0xff] }
 0x50c   :  { %v6593_v0 = vadd.f32 %v6568_v56, %v6545_v5  ;;  %v6824_v5 = vld [vmem:[%s12777_s9 + $0x30] sm:$0xff]  ;;  %v10057_v29 = vpack.c.bf16 %v6853_v57, %v6852_v7  ;;  %v6870_v12 = vld [vmem:[%s12777_s9 + $0x1a0] sm:$0xff]  ;;  %v6849_v7 = vld [vmem:[%s12777_s9 + $0xf8] sm:$0xff] }
 0x50d   :  { %v9516_v24 = vpop.f32.mrb[72].mxu1  ;;  %6622 = vxpose.xlu0.b32.start [1/8] (short) %v6598_v53, 128  ;;  %v6592_v37 = vadd.f32 %v6563_v52, %v6544_v42  ;;  %v6825_v42 = vld [vmem:[%s12777_s9 + $0x38] sm:$0xff]  ;;  %v6871_v52 = vld [vmem:[%s12777_s9 + $0x1a8] sm:$0xff] }
 0x50e   :  { %v6547_v15 = vmax.f32 %v9432_v43, %v9516_v24  ;;  %v6515_v36 = vpop.f32.mrb[73].mxu1  ;;  %v6601_v3 = vmax.f32 %v6593_v0, 0.0  ;;  %v10027_v43 = vpack.c.bf16 %v6839_v27, %v6838_v14  ;;  %v6842_v24 = vld [vmem:[%s12777_s9 + $0xc0] sm:$0xff]  ;;  %v10033_v56 = vpack.c.bf16 %v6825_v42, %v6824_v5  ;;  %v6847_v27 = vld [vmem:[%s12777_s9 + $0xe8] sm:$0xff] }
 0x50f   :  { %v6546_v51 = vmax.f32 %v6112_v48, %v6515_v36  ;;  %v6600_v11 = vmax.f32 %v6592_v37, 0.0  ;;  %v6823_v48 = vld [vmem:[%s12777_s9 + $0x28] sm:$0xff]  ;;  %v10059_v36 = vpack.c.bf16 %v6871_v52, %v6870_v12  ;;  %v6826_v0 = vld [vmem:[%s12777_s9 + $0x40] sm:$0xff]  ;;  %v10065_v14 = vpack.c.bf16 %v6857_v61, %v6856_v46  ;;  %v6877_v12 = vld [vmem:[%s12777_s9 + $0x1d8] sm:$0xff] }
 0x510   :  { %v6595_v22 = vadd.f32 %v6578_v21, %v6547_v15  ;;  %v10029_v25 = vpack.c.bf16 %v6823_v48, %v6822_v10  ;;  %10028 = vmatprep.subr.bf16.mxu0 %v10027_v43  ;;  %v6843_v15 = vld [vmem:[%s12777_s9 + $0xc8] sm:$0xff]  ;;  %v10043_v10 = vpack.c.bf16 %v6847_v27, %v6846_v63  ;;  %v6830_v43 = vld [vmem:[%s12777_s9 + $0x60] sm:$0xff] }
 0x511   :  { %v9519_v16 = vpop.f32.mrb[74].mxu1  ;;  %6623 = vxpose.xlu0.b32.cont [2/8] (short) %v6599_v45, 128  ;;  %v6594_v4 = vadd.f32 %v6573_v19, %v6546_v51  ;;  %v6854_v45 = vld [vmem:[%s12777_s9 + $0x120] sm:$0xff]  ;;  %v6855_v37 = vld [vmem:[%s12777_s9 + $0x128] sm:$0xff]  ;;  %v6872_v51 = vld [vmem:[%s12777_s9 + $0x1b0] sm:$0xff] }
 0x512   :  { %v6549_v6 = vmax.f32 %v9435_v55, %v9519_v16  ;;  %v6525_v60 = vpop.f32.mrb[75].mxu1  ;;  %v6603_v13 = vmax.f32 %v6595_v22, 0.0  ;;  %v6851_v55 = vld [vmem:[%s12777_s9 + $0x108] sm:$0xff]  ;;  %v6873_v16 = vld [vmem:[%s12777_s9 + $0x1b8] sm:$0xff]  ;;  %10030 = vmatpush3.bf16.msra.mxu0 %v10029_v25  ;;  %v6844_v19 = vld [vmem:[%s12777_s9 + $0xd0] sm:$0xff] }
 0x513   :  { %v6548_v41 = vmax.f32 %v6122_v59, %v6525_v60  ;;  %v6602_v50 = vmax.f32 %v6594_v4, 0.0  ;;  %v6840_v59 = vld [vmem:[%s12777_s9 + $0xb0] sm:$0xff]  ;;  %v10053_v39 = vpack.c.bf16 %v6851_v55, %v6850_v58  ;;  %v10035_v60 = vpack.c.bf16 %v6843_v15, %v6842_v24  ;;  %v6831_v48 = vld [vmem:[%s12777_s9 + $0x68] sm:$0xff]  ;;  %v6858_v55 = vld [vmem:[%s12777_s9 + $0x140] sm:$0xff] }
 0x514   :  { %v6597_v9 = vadd.f32 %v6588_v62, %v6549_v6  ;;  %v10031_v53 = vpack.c.bf16 %v6841_v40, %v6840_v59  ;;  %v10061_v6 = vpack.c.bf16 %v6855_v37, %v6854_v45  ;;  %v10067_v58 = vpack.c.bf16 %v6875_v28, %v6874_v31 }
 0x515   :  { %6624 = vxpose.xlu0.b32.cont [3/8] (short) %v6600_v11, 128  ;;  %v6596_v30 = vadd.f32 %v6583_v54, %v6548_v41  ;;  %10054 = vmatpush3.bf16.msra.mxu1 %v10053_v39  ;;  %v6827_v11 = vld [vmem:[%s12777_s9 + $0x48] sm:$0xff]  ;;  %v10063_v41 = vpack.c.bf16 %v6873_v16, %v6872_v51  ;;  %v10045_v2 = vpack.c.bf16 %v6831_v48, %v6830_v43 }
 0x516   :  { %v6605_v23 = vmax.f32 %v6597_v9, 0.0  ;;  %10056 = vmatprep.subr.bf16.mxu1 %v10055_v1  ;;  %10032 = vmatprep.subr.bf16.mxu0 %v10031_v53  ;;  %v10037_v4 = vpack.c.bf16 %v6827_v11, %v6826_v0  ;;  %v6848_v1 = vld [vmem:[%s12777_s9 + $0xf0] sm:$0xff]  ;;  %v10069_v25 = vpack.c.bf16 %v6859_v47, %v6858_v55 }
 0x517   :  { %v6604_v20 = vmax.f32 %v6596_v30, 0.0  ;;  %10034 = vmatpush3.bf16.msra.mxu0 %v10033_v56  ;;  %v10047_v5 = vpack.c.bf16 %v6849_v7, %v6848_v1 }
 0x518   :  { %10036 = vmatprep.subr.bf16.mxu0 %v10035_v60 }
 0x519   :  { %6625 = vxpose.xlu0.b32.cont [4/8] (short) %v6601_v3, 128  ;;  %10058 = vmatpush3.bf16.msra.mxu1 %v10057_v29  ;;  %v6845_v3 = vld [vmem:[%s12777_s9 + $0xd8] sm:$0xff]  ;;  %v6876_v29 = vld [vmem:[%s12777_s9 + $0x1d0] sm:$0xff] }
 0x51a   :  { %10060 = vmatprep.subr.bf16.mxu1 %v10059_v36  ;;  %v10039_v21 = vpack.c.bf16 %v6845_v3, %v6844_v19  ;;  %v10071_v37 = vpack.c.bf16 %v6877_v12, %v6876_v29  ;;  %v6832_v19 = vld [vmem:[%s12777_s9 + $0x70] sm:$0xff]  ;;  %v6833_v3 = vld [vmem:[%s12777_s9 + $0x78] sm:$0xff] }
 0x51b   :  { %10038 = vmatpush3.bf16.msra.mxu0 %v10037_v4  ;;  %v6860_v4 = vld [vmem:[%s12777_s9 + $0x150] sm:$0xff] }
 0x51c   :  { %10040 = vmatprep.subr.bf16.mxu0 %v10039_v21 }
 0x51d   :  { %6626 = vxpose.xlu0.b32.cont [5/8] (short) %v6602_v50, 128  ;;  %10062 = vmatpush3.bf16.msra.mxu1 %v10061_v6 }
 0x51e   :  { %10064 = vmatprep.subr.bf16.mxu1 %v10063_v41 }
 0x51f   :  { %10042 = vmatpush3.bf16.msra.mxu0 %v10041_v26 }
 0x520   :  { %10044 = vmatprep.subr.bf16.mxu0 %v10043_v10 }
 0x521   :  { %6627 = vxpose.xlu0.b32.cont [6/8] (short) %v6603_v13, 128  ;;  %10066 = vmatpush3.bf16.msra.mxu1 %v10065_v14 }
 0x522   :  { %10068 = vmatprep.subr.bf16.mxu1 %v10067_v58 }
 0x523   :  { %10046 = vmatpush3.bf16.msra.mxu0 %v10045_v2  ;;  %v6899_v2 = vld [vmem:[%s12777_s9 + $0x288] sm:$0xff] }
 0x524   :  { %10048 = vmatprep.subr.bf16.mxu0 %v10047_v5 }
 0x525   :  { %6628 = vxpose.xlu0.b32.cont [7/8] (short) %v6604_v20, 128  ;;  %10070 = vmatpush3.bf16.msra.mxu1 %v10069_v25 }
 0x526   :  { %10072 = vmatprep.subr.bf16.mxu1 %v10071_v37 }
 0x529   :  { %6629 = vxpose.xlu0.b32.end [8/8] (short) %v6605_v23, 128 }
 0x58d   :  { %v6638_v22 = vpop.trf.xlu0 }
 0x58e   :  { %6654 = vst.msk [vmem:[#allocation6] sm:$0xff] %vm5671_vm6, %v6638_v22 }
 0x591   :  { %v6639_v50 = vpop.trf.xlu0 }
 0x592   :  { %6655 = vst.msk [vmem:[#allocation6 + $0x8] sm:$0xff] %vm5671_vm6, %v6639_v50 }
 0x595   :  { %v6640_v54 = vpop.trf.xlu0 }
 0x596   :  { %6656 = vst.msk [vmem:[#allocation6 + $0x10] sm:$0xff] %vm5671_vm6, %v6640_v54  ;;  %v10049_v54 = vpack.c.bf16 %v6833_v3, %v6832_v19 }
 0x598   :  { %10050 = vmatpush3.bf16.msra.mxu0 %v10049_v54 }
 0x599   :  { %v6641_v13 = vpop.trf.xlu0 }
 0x59a   :  { %6657 = vst.msk [vmem:[#allocation6 + $0x18] sm:$0xff] %vm5671_vm6, %v6641_v13  ;;  %v6861_v13 = vld [vmem:[%s12777_s9 + $0x158] sm:$0xff] }
 0x59d   :  { %v6642_v30 = vpop.trf.xlu0  ;;  %v6702_v59 = vld [vmem:[#allocation6 + $0x3] ss:$16 sm:$0x3]  ;;  %v6693_v15 = vld [vmem:[#allocation6 + $0x2] ss:$16 sm:$0x3] }
 0x59e   :  { %6658 = vst.msk [vmem:[#allocation6 + $0x20] sm:$0xff] %vm5671_vm6, %v6642_v30  ;;  %v6670_v45 = vld [vmem:[#allocation6] ss:$16 sm:$0x3] }
 0x59f   :  { %v6679_v16 = vld [vmem:[#allocation6 + $0x1] ss:$16 sm:$0x3]  ;;  %v6737_v60 = vld [vmem:[#allocation6 + $0x6] ss:$16 sm:$0x3] }
 0x5a0   :  { %v6878_v30 = vld [vmem:[%s12777_s9 + $0x1e0] sm:$0xff] }
 0x5a1   :  { %v6643_v62 = vpop.trf.xlu0  ;;  %v6803_v41 = vld [vmem:[#allocation6 + $0xc] ss:$16 sm:$0x3]  ;;  %v6746_v31 = vld [vmem:[#allocation6 + $0x7] ss:$16 sm:$0x3] }
 0x5a2   :  { %6659 = vst.msk [vmem:[#allocation6 + $0x28] sm:$0xff] %vm5671_vm6, %v6643_v62  ;;  %v6879_v62 = vld [vmem:[%s12777_s9 + $0x1e8] sm:$0xff] }
 0x5a3   :  { %v6781_v43 = vld [vmem:[#allocation6 + $0xa] ss:$16 sm:$0x3] }
 0x5a5   :  { %v6644_v9 = vpop.trf.xlu0 }
 0x5a6   :  { %6660 = vst.msk [vmem:[#allocation6 + $0x30] sm:$0xff] %vm5671_vm6, %v6644_v9  ;;  %v6715_v9 = vld [vmem:[#allocation6 + $0x4] ss:$16 sm:$0x3] }
 0x5a9   :  { %v6645_v20 = vpop.trf.xlu0 }
 0x5aa   :  { %6661 = vst.msk [vmem:[#allocation6 + $0x38] sm:$0xff] %vm5671_vm6, %v6645_v20 }
 0x5ad   :  { %v6646_v23 = vpop.trf.xlu0  ;;  %v6703_v33 = vld [vmem:[#allocation6 + $0x3] ss:$16 sm:$0xc]  ;;  %v6694_v39 = vld [vmem:[#allocation6 + $0x2] ss:$16 sm:$0xc] }
 0x5ae   :  { %6662 = vst.msk [vmem:[#allocation6 + $0x40] sm:$0xff] %vm5671_vm6, %v6646_v23  ;;  %v6671_v40 = vld [vmem:[#allocation6] ss:$16 sm:$0xc]  ;;  %v6704_v51 = vor.u32 %v6703_v33, %v6702_v59  ;;  %v6695_v22 = vor.u32 %v6694_v39, %v6693_v15 }
 0x5af   :  { %v6680_v57 = vld [vmem:[#allocation6 + $0x1] ss:$16 sm:$0xc]  ;;  %v6738_v53 = vld [vmem:[#allocation6 + $0x6] ss:$16 sm:$0xc]  ;;  %v6672_v50 = vor.u32 %v6671_v40, %v6670_v45 }
 0x5b0   :  { %v6716_v11 = vld [vmem:[#allocation6 + $0x4] ss:$16 sm:$0xc]  ;;  %v6725_v1 = vld [vmem:[#allocation6 + $0x5] ss:$16 sm:$0xc] }
 0x5b1   :  { %v6647_v44 = vpop.trf.xlu0  ;;  %v6804_v42 = vld [vmem:[#allocation6 + $0xc] ss:$16 sm:$0xc]  ;;  %v6782_v8 = vld [vmem:[#allocation6 + $0xa] ss:$16 sm:$0xc]  ;;  %v6717_v58 = vor.u32 %v6716_v11, %v6715_v9 }
 0x5b2   :  { %6663 = vst.msk [vmem:[#allocation6 + $0x48] sm:$0xff] %vm5671_vm6, %v6647_v44  ;;  %v6681_v44 = vor.u32 %v6680_v57, %v6679_v16  ;;  %v6805_v34 = vor.u32 %v6804_v42, %v6803_v41  ;;  %v6898_v40 = vld [vmem:[%s12777_s9 + $0x280] sm:$0xff]  ;;  %v6760_v15 = vld [vmem:[#allocation6 + $0x8] ss:$16 sm:$0xc] }
 0x5b3   :  { %v10083_v57 = vpack.c.bf16 %v6899_v2, %v6898_v40  ;;  %v6724_v45 = vld [vmem:[#allocation6 + $0x5] ss:$16 sm:$0x3]  ;;  %v6863_v16 = vld [vmem:[%s12777_s9 + $0x168] sm:$0xff]  ;;  %v6901_v2 = vld [vmem:[%s12777_s9 + $0x298] sm:$0xff] }
 0x5b4   :  { %v6791_v9 = vld [vmem:[#allocation6 + $0xb] ss:$16 sm:$0xc]  ;;  %v6900_v40 = vld [vmem:[%s12777_s9 + $0x290] sm:$0xff] }
 0x5b5   :  { %v6648_v49 = vpop.trf.xlu0  ;;  %10084 = vmatprep.subr.bf16.mxu0 %v10083_v57  ;;  %v6885_v57 = vld [vmem:[%s12777_s9 + $0x218] sm:$0xff] }
 0x5b6   :  { %6664 = vst.msk [vmem:[#allocation6 + $0x50] sm:$0xff] %vm5671_vm6, %v6648_v49  ;;  %v6747_v49 = vld [vmem:[#allocation6 + $0x7] ss:$16 sm:$0xc] }
 0x5b9   :  { %v6649_v18 = vpop.trf.xlu0 }
 0x5ba   :  { %6665 = vst.msk [vmem:[#allocation6 + $0x58] sm:$0xff] %vm5671_vm6, %v6649_v18  ;;  %v6739_v18 = vor.u32 %v6738_v53, %v6737_v60  ;;  %v6748_v53 = vor.u32 %v6747_v49, %v6746_v31  ;;  %v6880_v60 = vld [vmem:[%s12777_s9 + $0x1f0] sm:$0xff] }
 0x5bd   :  { %v6650_v38 = vpop.trf.xlu0  ;;  %v6705_v52 = vld [vmem:[#allocation6 + $0x3] ss:$16 sm:$0x30]  ;;  %v6696_v36 = vld [vmem:[#allocation6 + $0x2] ss:$16 sm:$0x30] }
 0x5be   :  { %6666 = vst.msk [vmem:[#allocation6 + $0x60] sm:$0xff] %vm5671_vm6, %v6650_v38  ;;  %v6682_v56 = vld [vmem:[#allocation6 + $0x1] ss:$16 sm:$0x30]  ;;  %v6706_v21 = vor.u32 %v6705_v52, %v6704_v51  ;;  %v10073_v38 = vpack.c.bf16 %v6861_v13, %v6860_v4  ;;  %v6697_v61 = vor.u32 %v6696_v36, %v6695_v22 }
 0x5bf   :  { %v6673_v6 = vld [vmem:[#allocation6] ss:$16 sm:$0x30]  ;;  %v6740_v0 = vld [vmem:[#allocation6 + $0x6] ss:$16 sm:$0x30]  ;;  %v6683_v27 = vor.u32 %v6682_v56, %v6681_v44 }
 0x5c0   :  { %v6674_v63 = vor.u32 %v6673_v6, %v6672_v50  ;;  %v6718_v14 = vld [vmem:[#allocation6 + $0x4] ss:$16 sm:$0x30]  ;;  %v6749_v28 = vld [vmem:[#allocation6 + $0x7] ss:$16 sm:$0x30]  ;;  %v6741_v10 = vor.u32 %v6740_v0, %v6739_v18  ;;  %10074 = vmatpush3.bf16.msra.mxu1 %v10073_v38  ;;  %v6726_v50 = vor.u32 %v6725_v1, %v6724_v45  ;;  %v10087_v1 = vpack.c.bf16 %v6901_v2, %v6900_v40 }
 0x5c1   :  { %v6651_v32 = vpop.trf.xlu0  ;;  %v6806_v20 = vld [vmem:[#allocation6 + $0xc] ss:$16 sm:$0x30]  ;;  %v6719_v25 = vor.u32 %v6718_v14, %v6717_v58  ;;  %v6784_v5 = vld [vmem:[#allocation6 + $0xa] ss:$16 sm:$0x30]  ;;  %v6750_v56 = vor.u32 %v6749_v28, %v6748_v53 }
 0x5c2   :  { %6667 = vst.msk [vmem:[#allocation6 + $0x68] sm:$0xff] %vm5671_vm6, %v6651_v32  ;;  %v10075_v32 = vpack.c.bf16 %v6879_v62, %v6878_v30  ;;  %v6807_v48 = vor.u32 %v6806_v20, %v6805_v34  ;;  %v6759_v52 = vld [vmem:[#allocation6 + $0x8] ss:$16 sm:$0x3]  ;;  %v6862_v51 = vld [vmem:[%s12777_s9 + $0x160] sm:$0xff]  ;;  %v6864_v13 = vld [vmem:[%s12777_s9 + $0x170] sm:$0xff] }
 0x5c3   :  { %v10077_v6 = vpack.c.bf16 %v6863_v16, %v6862_v51  ;;  %v6881_v0 = vld [vmem:[%s12777_s9 + $0x1f8] sm:$0xff]  ;;  %v6727_v19 = vld [vmem:[#allocation6 + $0x5] ss:$16 sm:$0x30]  ;;  %v7214_v2 = vld [vmem:[%s12778_s11 + $0x8] sm:$0xff] }
 0x5c4   :  { %10076 = vmatprep.subr.bf16.mxu1 %v10075_v32  ;;  %v6762_v41 = vld [vmem:[#allocation6 + $0x8] ss:$16 sm:$0x30]  ;;  %v10079_v3 = vpack.c.bf16 %v6881_v0, %v6880_v60  ;;  %v6728_v44 = vor.u32 %v6727_v19, %v6726_v50  ;;  %v6790_v18 = vld [vmem:[#allocation6 + $0xb] ss:$16 sm:$0x3] }
 0x5c5   :  { %v6652_v17 = vpop.trf.xlu0  ;;  %10078 = vmatpush3.bf16.msra.mxu1 %v10077_v6  ;;  %v6865_v30 = vld [vmem:[%s12777_s9 + $0x178] sm:$0xff]  ;;  %v6792_v34 = vor.u32 %v6791_v9, %v6790_v18  ;;  %v6904_v51 = vld [vmem:[%s12777_s9 + $0x2b0] sm:$0xff]  ;;  %v6918_v9 = vld [vmem:[%s12777_s9 + $0x320] sm:$0xff] }
 0x5c6   :  { %6668 = vst.msk [vmem:[#allocation6 + $0x70] sm:$0xff] %vm5671_vm6, %v6652_v17  ;;  %10080 = vmatprep.subr.bf16.mxu1 %v10079_v3  ;;  %v10081_v20 = vpack.c.bf16 %v6865_v30, %v6864_v13  ;;  %v6793_v38 = vld [vmem:[#allocation6 + $0xb] ss:$16 sm:$0x30]  ;;  %v6888_v60 = vld [vmem:[%s12777_s9 + $0x230] sm:$0xff]  ;;  %v6890_v13 = vld [vmem:[%s12777_s9 + $0x240] sm:$0xff] }
 0x5c7   :  { %v6768_v14 = vld [vmem:[#allocation6 + $0x9] ss:$16 sm:$0x3] }
 0x5c8   :  { %v6905_v16 = vld [vmem:[%s12777_s9 + $0x2b8] sm:$0xff] }
 0x5c9   :  { %v6653_v24 = vpop.trf.xlu0  ;;  %10082 = vmatpush3.bf16.msra.mxu1 %v10081_v20  ;;  %v10095_v0 = vpack.c.bf16 %v6905_v16, %v6904_v51  ;;  %v6917_v19 = vld [vmem:[%s12777_s9 + $0x318] sm:$0xff]  ;;  %v6919_v20 = vld [vmem:[%s12777_s9 + $0x328] sm:$0xff]  ;;  %v7229_v16 = vld [vmem:[%s12778_s11 + $0x80] sm:$0xff] }
 0x5ca   :  { %6669 = vst.msk [vmem:[#allocation6 + $0x78] sm:$0xff] %vm5671_vm6, %v6653_v24  ;;  %v6783_v24 = vor.u32 %v6782_v8, %v6781_v43 }
 0x5cc   :  { %v6785_v11 = vor.u32 %v6784_v5, %v6783_v24 }
 0x5cd   :  { %v6707_v23 = vld [vmem:[#allocation6 + $0x3] ss:$16 sm:$0xc0]  ;;  %v6684_v46 = vld [vmem:[#allocation6 + $0x1] ss:$16 sm:$0xc0] }
 0x5ce   :  { %v6708_v26 = vor.u32 %v6707_v23, %v6706_v21  ;;  %v6698_v17 = vld [vmem:[#allocation6 + $0x2] ss:$16 sm:$0xc0]  ;;  %v6675_v33 = vld [vmem:[#allocation6] ss:$16 sm:$0xc0]  ;;  %v6685_v12 = vor.u32 %v6684_v46, %v6683_v27  ;;  %v6761_v21 = vor.u32 %v6760_v15, %v6759_v52 }
 0x5cf   :  { %v6699_v55 = vor.u32 %v6698_v17, %v6697_v61  ;;  %v6676_v59 = vor.u32 %v6675_v33, %v6674_v63  ;;  %v6742_v39 = vld [vmem:[#allocation6 + $0x6] ss:$16 sm:$0xc0]  ;;  %v6720_v42 = vld [vmem:[#allocation6 + $0x4] ss:$16 sm:$0xc0]  ;;  %v6794_v63 = vor.u32 %v6793_v38, %v6792_v34  ;;  %v10122_v38 = vpack.c.bf16 %v6919_v20, %v6918_v9 }
 0x5d0   :  { %6710 = vrot.lane.b32.xlu1 %v6708_v26, %s10524_s8  ;;  %v6743_v7 = vor.u32 %v6742_v39, %v6741_v10  ;;  %v6751_v36 = vld [vmem:[#allocation6 + $0x7] ss:$16 sm:$0xc0]  ;;  %v6721_v37 = vor.u32 %v6720_v42, %v6719_v25  ;;  %v6729_v62 = vld [vmem:[#allocation6 + $0x5] ss:$16 sm:$0xc0]  ;;  %v6763_v23 = vor.u32 %v6762_v41, %v6761_v21 }
 0x5d1   :  { %v6808_v47 = vld [vmem:[#allocation6 + $0xc] ss:$16 sm:$0xc0]  ;;  %6700 = vst.msk [vmem:[#allocation7 + $0x8] sm:$0xff] %vm5671_vm6, %v6699_v55  ;;  %6677 = vst.msk [vmem:[#allocation7] sm:$0xff] %vm5671_vm6, %v6676_v59  ;;  %v6752_v22 = vor.u32 %v6751_v36, %v6750_v56  ;;  %v6730_v8 = vor.u32 %v6729_v62, %v6728_v44  ;;  %v10525_v61 = vmov 0.0|0.0  }
 0x5d2   :  { %v6809_v29 = vor.u32 %v6808_v47, %v6807_v48  ;;  %6744 = vst.msk [vmem:[#allocation7 + $0x18] sm:$0xff] %vm5671_vm6, %v6743_v7  ;;  %6722 = vst.msk [vmem:[#allocation7 + $0x10] sm:$0xff] %vm5671_vm6, %v6721_v37  ;;  %v6786_v4 = vld [vmem:[#allocation6 + $0xa] ss:$16 sm:$0xc0]  ;;  %10115 = vmatprep.subr.bf16.mxu1 %v10525_v61  ;;  %v6882_v48 = vld [vmem:[%s12777_s9 + $0x200] sm:$0xff] }
 0x5d3   :  { %v6787_v54 = vor.u32 %v6786_v4, %v6785_v11  ;;  %v6764_v49 = vld [vmem:[#allocation6 + $0x8] ss:$16 sm:$0xc0]  ;;  %v6795_v26 = vld [vmem:[#allocation6 + $0xb] ss:$16 sm:$0xc0] }
 0x5d4   :  { %6810 = vst.msk [vmem:[#allocation7 + $0x30] sm:$0xff] %vm5671_vm6, %v6809_v29  ;;  %6687 = vrot.lane.b32.xlu1 %v6685_v12, %s10524_s8  ;;  %v6765_v32 = vor.u32 %v6764_v49, %v6763_v23  ;;  %v6769_v46 = vld [vmem:[#allocation6 + $0x9] ss:$16 sm:$0xc]  ;;  %v6796_v31 = vor.u32 %v6795_v26, %v6794_v63  ;;  %v6884_v7 = vld [vmem:[%s12777_s9 + $0x210] sm:$0xff]  ;;  %v6902_v29 = vld [vmem:[%s12777_s9 + $0x2a0] sm:$0xff] }
 0x5d5   :  { %6788 = vst.msk [vmem:[#allocation7 + $0x28] sm:$0xff] %vm5671_vm6, %v6787_v54  ;;  %v6771_v27 = vld [vmem:[#allocation6 + $0x9] ss:$16 sm:$0x30]  ;;  %v6770_v28 = vor.u32 %v6769_v46, %v6768_v14  ;;  %v10089_v53 = vpack.c.bf16 %v6885_v57, %v6884_v7  ;;  %v6886_v42 = vld [vmem:[%s12777_s9 + $0x220] sm:$0xff]  ;;  %v6916_v41 = vld [vmem:[%s12777_s9 + $0x310] sm:$0xff] }
 0x5d6   :  { %6766 = vst.msk [vmem:[#allocation7 + $0x20] sm:$0xff] %vm5671_vm6, %v6765_v32  ;;  %v6773_v17 = vld [vmem:[#allocation6 + $0x9] ss:$16 sm:$0xc0]  ;;  %v6914_v15 = vld [vmem:[%s12777_s9 + $0x300] sm:$0xff]  ;;  %v10119_v54 = vpack.c.bf16 %v6917_v19, %v6916_v41  ;;  %v6908_v44 = vld [vmem:[%s12777_s9 + $0x2d0] sm:$0xff] }
 0x5d7   :  { %v6772_v33 = vor.u32 %v6771_v27, %v6770_v28  ;;  %v6883_v55 = vld [vmem:[%s12777_s9 + $0x208] sm:$0xff]  ;;  %v6889_v11 = vld [vmem:[%s12777_s9 + $0x238] sm:$0xff]  ;;  %v6906_v21 = vld [vmem:[%s12777_s9 + $0x2c0] sm:$0xff] }
 0x5d8   :  { %6754 = vrot.lane.b32.xlu1 %v6752_v22, %s10524_s8  ;;  %v10085_v47 = vpack.c.bf16 %v6883_v55, %v6882_v48  ;;  %v6903_v12 = vld [vmem:[%s12777_s9 + $0x2a8] sm:$0xff]  ;;  %v10097_v50 = vpack.c.bf16 %v6889_v11, %v6888_v60  ;;  %v6909_v49 = vld [vmem:[%s12777_s9 + $0x2d8] sm:$0xff]  ;;  %v6892_v32 = vld [vmem:[%s12777_s9 + $0x250] sm:$0xff] }
 0x5d9   :  { %v6774_v10 = vor.u32 %v6773_v17, %v6772_v33  ;;  %v10091_v24 = vpack.c.bf16 %v6903_v12, %v6902_v29  ;;  %v6887_v52 = vld [vmem:[%s12777_s9 + $0x228] sm:$0xff]  ;;  %v6893_v34 = vld [vmem:[%s12777_s9 + $0x258] sm:$0xff]  ;;  %v6920_v26 = vld [vmem:[%s12777_s9 + $0x330] sm:$0xff] }
 0x5da   :  { %v6915_v36 = vld [vmem:[%s12777_s9 + $0x308] sm:$0xff]  ;;  %v10093_v56 = vpack.c.bf16 %v6887_v52, %v6886_v42  ;;  %v6921_v46 = vld [vmem:[%s12777_s9 + $0x338] sm:$0xff]  ;;  %v6910_v63 = vld [vmem:[%s12777_s9 + $0x2e0] sm:$0xff]  ;;  %v10105_v27 = vpack.c.bf16 %v6893_v34, %v6892_v32 }
 0x5db   :  { %v10116_v6 = vpack.c.bf16 %v6915_v36, %v6914_v15  ;;  %v6907_v22 = vld [vmem:[%s12777_s9 + $0x2c8] sm:$0xff]  ;;  %v6894_v17 = vld [vmem:[%s12777_s9 + $0x260] sm:$0xff]  ;;  %v6896_v48 = vld [vmem:[%s12777_s9 + $0x270] sm:$0xff] }
 0x5dc   :  { %6732 = vrot.lane.b32.xlu1 %v6730_v8, %s10524_s8  ;;  %v10099_v30 = vpack.c.bf16 %v6907_v22, %v6906_v21  ;;  %v6891_v62 = vld [vmem:[%s12777_s9 + $0x248] sm:$0xff]  ;;  %v10103_v8 = vpack.c.bf16 %v6909_v49, %v6908_v44  ;;  %v6897_v55 = vld [vmem:[%s12777_s9 + $0x278] sm:$0xff]  ;;  %v7223_v42 = vld [vmem:[%s12778_s11 + $0x50] sm:$0xff] }
 0x5dd   :  { %v10101_v18 = vpack.c.bf16 %v6891_v62, %v6890_v13  ;;  %v6911_v14 = vld [vmem:[%s12777_s9 + $0x2e8] sm:$0xff]  ;;  %v7224_v57 = vld [vmem:[%s12778_s11 + $0x58] sm:$0xff]  ;;  %v7245_v22 = vld [vmem:[%s12778_s11 + $0x100] sm:$0xff] }
 0x5de   :  { %v10107_v28 = vpack.c.bf16 %v6911_v14, %v6910_v63  ;;  %v6895_v33 = vld [vmem:[%s12777_s9 + $0x268] sm:$0xff]  ;;  %v7232_v36 = vld [vmem:[%s12778_s11 + $0x98] sm:$0xff]  ;;  %v7255_v62 = vld [vmem:[%s12778_s11 + $0x150] sm:$0xff] }
 0x5df   :  { %v7238_v15 = vld [vmem:[%s12778_s11 + $0xc8] sm:$0xff]  ;;  %v7256_v21 = vld [vmem:[%s12778_s11 + $0x158] sm:$0xff]  ;;  %v7269_v32 = vld [vmem:[%s12778_s11 + $0x1c0] sm:$0xff] }
 0x5e0   :  { %6798 = vrot.lane.b32.xlu1 %v6796_v31, %s10524_s8  ;;  %v10125_v31 = vpack.c.bf16 %v6921_v46, %v6920_v26  ;;  %v7246_v41 = vld [vmem:[%s12778_s11 + $0x108] sm:$0xff]  ;;  %v7264_v44 = vld [vmem:[%s12778_s11 + $0x198] sm:$0xff]  ;;  %v7263_v26 = vld [vmem:[%s12778_s11 + $0x190] sm:$0xff] }
 0x5e1   :  { %v7254_v19 = vld [vmem:[%s12778_s11 + $0x148] sm:$0xff]  ;;  %v7271_v46 = vld [vmem:[%s12778_s11 + $0x1d0] sm:$0xff] }
 0x5e2   :  { %v7262_v20 = vld [vmem:[%s12778_s11 + $0x188] sm:$0xff]  ;;  %v10157_v14 = vpack.c.bf16 %v7271_v46, %v7263_v26  ;;  %v7273_v26 = vld [vmem:[%s12778_s11 + $0x1e0] sm:$0xff]  ;;  %v7275_v46 = vld [vmem:[%s12778_s11 + $0x1f0] sm:$0xff] }
 0x5e3   :  { %v7218_v63 = vld [vmem:[%s12778_s11 + $0x28] sm:$0xff] }
 0x5e4   :  { %6776 = vrot.lane.b32.xlu1 %v6774_v10, %s10524_s8  ;;  %v6912_v10 = vld [vmem:[%s12777_s9 + $0x2f0] sm:$0xff] }
 0x642   :  { %v6711_v58 = vpop.permute.xlu1 %6710 }
 0x643   :  { %6713 = vst.msk [vmem:[#allocation7 + $0x8] sm:$0xff] %vm6690_vm7, %v6711_v58  ;;  %v6913_v58 = vld [vmem:[%s12777_s9 + $0x2f8] sm:$0xff] }
 0x646   :  { %v6688_v43 = vpop.permute.xlu1 %6687 }
 0x647   :  { %6691 = vst.msk [vmem:[#allocation7] sm:$0xff] %vm6690_vm7, %v6688_v43  ;;  %v10111_v43 = vpack.c.bf16 %v6913_v58, %v6912_v10 }
 0x64a   :  { %v6755_v59 = vpop.permute.xlu1 %6754  ;;  %v6812_v39 = vld [vmem:[#allocation7 + $0x8] sm:$0xff] }
 0x64b   :  { %6757 = vst.msk [vmem:[#allocation7 + $0x18] sm:$0xff] %vm6690_vm7, %v6755_v59  ;;  %6996 = vmatprep.mubr.f32.mxu0 %v6812_v39  ;;  %v6817_v59 = vld [vmem:[#allocation7 + $0x30] sm:$0xff]  ;;  %v10113_v39 = vpack.c.bf16 %v6897_v55, %v6896_v48 }
 0x64e   :  { %v6733_v25 = vpop.permute.xlu1 %6732  ;;  %v6811_v5 = vld [vmem:[#allocation7] sm:$0xff] }
 0x64f   :  { %6735 = vst.msk [vmem:[#allocation7 + $0x10] sm:$0xff] %vm6690_vm7, %v6733_v25  ;;  %6997 = vmatmul.mubr.f32.vlgmr.msra.gmra.mrb[68].mxu0 %v6811_v5  ;;  %v7213_v25 = vld [vmem:[%s12778_s11] sm:$0xff] }
 0x650   :  { %10086 = vmatpush3.bf16.msra.mxu0 %v10085_v47  ;;  %v7222_v47 = vld [vmem:[%s12778_s11 + $0x48] sm:$0xff]  ;;  %v7221_v5 = vld [vmem:[%s12778_s11 + $0x40] sm:$0xff] }
 0x651   :  { %10088 = vmatprep.subr.bf16.mxu0 %v10087_v1  ;;  %v7216_v1 = vld [vmem:[%s12778_s11 + $0x18] sm:$0xff]  ;;  %v10127_v7 = vpack.c.bf16 %v7222_v47, %v7214_v2  ;;  %v10129_v12 = vpack.c.bf16 %v7221_v5, %v7213_v25  ;;  %v7217_v25 = vld [vmem:[%s12778_s11 + $0x20] sm:$0xff] }
 0x652   :  { %v6799_v45 = vpop.permute.xlu1 %6798  ;;  %v6814_v37 = vld [vmem:[#allocation7 + $0x18] sm:$0xff]  ;;  %v10143_v29 = vpack.c.bf16 %v7224_v57, %v7216_v1  ;;  %v7225_v5 = vld [vmem:[%s12778_s11 + $0x60] sm:$0xff] }
 0x653   :  { %6801 = vst.msk [vmem:[#allocation7 + $0x28] sm:$0xff] %vm6690_vm7, %v6799_v45  ;;  %7066 = vmatprep.mubr.f32.mxu1 %v6814_v37  ;;  %v7240_v45 = vld [vmem:[%s12778_s11 + $0xd8] sm:$0xff] }
 0x654   :  { %10090 = vmatpush3.bf16.msra.mxu0 %v10089_v53  ;;  %v7215_v53 = vld [vmem:[%s12778_s11 + $0x10] sm:$0xff]  ;;  %v10147_v51 = vpack.c.bf16 %v7240_v45, %v7232_v36  ;;  %v10161_v45 = vpack.c.bf16 %v7225_v5, %v7217_v25 }
 0x655   :  { %10092 = vmatprep.subr.bf16.mxu0 %v10091_v24  ;;  %v7230_v24 = vld [vmem:[%s12778_s11 + $0x88] sm:$0xff]  ;;  %v10145_v52 = vpack.c.bf16 %v7223_v42, %v7215_v53  ;;  %v7227_v53 = vld [vmem:[%s12778_s11 + $0x70] sm:$0xff] }
 0x656   :  { %v6777_v3 = vpop.permute.xlu1 %6776  ;;  %v6813_v4 = vld [vmem:[#allocation7 + $0x10] sm:$0xff]  ;;  %v10131_v37 = vpack.c.bf16 %v7238_v15, %v7230_v24  ;;  %v7234_v42 = vld [vmem:[%s12778_s11 + $0xa8] sm:$0xff]  ;;  %v7244_v15 = vld [vmem:[%s12778_s11 + $0xf8] sm:$0xff] }
 0x657   :  { %6779 = vst.msk [vmem:[#allocation7 + $0x20] sm:$0xff] %vm6690_vm7, %v6777_v3  ;;  %7067 = vmatmul.mubr.f32.vlgmr.msra.gmra.mrb[76].mxu1 %v6813_v4  ;;  %v7248_v3 = vld [vmem:[%s12778_s11 + $0x118] sm:$0xff]  ;;  %v10135_v4 = vpack.c.bf16 %v7254_v19, %v7246_v41  ;;  %v7242_v24 = vld [vmem:[%s12778_s11 + $0xe8] sm:$0xff] }
 0x658   :  { %10094 = vmatpush3.bf16.msra.mxu0 %v10093_v56  ;;  %10117 = vmatpush3.bf16.msra.mxu1 %v10116_v6  ;;  %v7237_v56 = vld [vmem:[%s12778_s11 + $0xc0] sm:$0xff]  ;;  %v7231_v6 = vld [vmem:[%s12778_s11 + $0x90] sm:$0xff]  ;;  %v7250_v41 = vld [vmem:[%s12778_s11 + $0x128] sm:$0xff] }
 0x659   :  { %10096 = vmatprep.subr.bf16.mxu0 %v10095_v0  ;;  %10118 = vmatprep.subr.bf16.mxu1 %v10525_v61  ;;  %v10133_v60 = vpack.c.bf16 %v7237_v56, %v7229_v16  ;;  %v7239_v0 = vld [vmem:[%s12778_s11 + $0xd0] sm:$0xff]  ;;  %v7241_v16 = vld [vmem:[%s12778_s11 + $0xe0] sm:$0xff]  ;;  %v7258_v19 = vld [vmem:[%s12778_s11 + $0x168] sm:$0xff] }
 0x65a   :  { %v6816_v23 = vld [vmem:[#allocation7 + $0x28] sm:$0xff]  ;;  %9536 = vmatprep.mubr.msk.f32.mxu1 %vm10526_vm8, %v10523_v35  ;;  %v10149_v11 = vpack.c.bf16 %v7239_v0, %v7231_v6  ;;  %v10163_v6 = vpack.c.bf16 %v7242_v24, %v7234_v42  ;;  %v7235_v0 = vld [vmem:[%s12778_s11 + $0xb0] sm:$0xff] }
 0x65b   :  { %7136 = vmatprep.mubr.f32.mxu0 %v6816_v23  ;;  %v7270_v23 = vld [vmem:[%s12778_s11 + $0x1c8] sm:$0xff] }
 0x65c   :  { %10098 = vmatpush3.bf16.msra.mxu0 %v10097_v50  ;;  %10120 = vmatpush3.bf16.msra.mxu1 %v10119_v54  ;;  %v7253_v50 = vld [vmem:[%s12778_s11 + $0x140] sm:$0xff]  ;;  %v10151_v54 = vpack.c.bf16 %v7256_v21, %v7248_v3  ;;  %v10139_v49 = vpack.c.bf16 %v7270_v23, %v7262_v20  ;;  %v7252_v3 = vld [vmem:[%s12778_s11 + $0x138] sm:$0xff]  ;;  %v7266_v20 = vld [vmem:[%s12778_s11 + $0x1a8] sm:$0xff] }
 0x65d   :  { %10100 = vmatprep.subr.bf16.mxu0 %v10099_v30  ;;  %10121 = vmatprep.subr.bf16.mxu1 %v10525_v61  ;;  %v10137_v13 = vpack.c.bf16 %v7253_v50, %v7245_v22  ;;  %v7247_v30 = vld [vmem:[%s12778_s11 + $0x110] sm:$0xff]  ;;  %v7249_v50 = vld [vmem:[%s12778_s11 + $0x120] sm:$0xff]  ;;  %v7274_v23 = vld [vmem:[%s12778_s11 + $0x1e8] sm:$0xff] }
 0x65e   :  { %v6815_v40 = vld [vmem:[#allocation7 + $0x20] sm:$0xff]  ;;  %v10153_v9 = vpack.c.bf16 %v7255_v62, %v7247_v30  ;;  %v7251_v62 = vld [vmem:[%s12778_s11 + $0x130] sm:$0xff] }
 0x660   :  { %10102 = vmatpush3.bf16.msra.mxu0 %v10101_v18  ;;  %10123 = vmatpush3.bf16.msra.mxu1 %v10122_v38  ;;  %v7272_v18 = vld [vmem:[%s12778_s11 + $0x1d8] sm:$0xff]  ;;  %v7261_v38 = vld [vmem:[%s12778_s11 + $0x180] sm:$0xff] }
 0x661   :  { %10104 = vmatprep.subr.bf16.mxu0 %v10103_v8  ;;  %10124 = vmatprep.subr.bf16.mxu1 %v10525_v61  ;;  %v10109_v61 = vpack.c.bf16 %v6895_v33, %v6894_v17  ;;  %v10155_v8 = vpack.c.bf16 %v7272_v18, %v7264_v44  ;;  %v10141_v34 = vpack.c.bf16 %v7269_v32, %v7261_v38  ;;  %v7268_v44 = vld [vmem:[%s12778_s11 + $0x1b8] sm:$0xff]  ;;  %v7265_v32 = vld [vmem:[%s12778_s11 + $0x1a0] sm:$0xff] }
 0x664   :  { %10106 = vmatpush3.bf16.msra.mxu0 %v10105_v27  ;;  %10126 = vmatpush3.bf16.msra.mxu1 %v10125_v31  ;;  %v7226_v27 = vld [vmem:[%s12778_s11 + $0x68] sm:$0xff]  ;;  %v7220_v31 = vld [vmem:[%s12778_s11 + $0x38] sm:$0xff] }
 0x665   :  { %10108 = vmatprep.subr.bf16.mxu0 %v10107_v28  ;;  %10128 = vmatprep.subr.bf16.mxu1 %v10127_v7  ;;  %v7228_v28 = vld [vmem:[%s12778_s11 + $0x78] sm:$0xff]  ;;  %v10159_v17 = vpack.c.bf16 %v7226_v27, %v7218_v63  ;;  %v10173_v63 = vpack.c.bf16 %v7273_v26, %v7265_v32  ;;  %v7279_v27 = vlaneseq }
 0x666   :  { %v10175_v33 = vpack.c.bf16 %v7228_v28, %v7220_v31 }
 0x667   :  { %9537 = vmatmul.mubr.msk.f32.vlgmr.msra.gmra.mrb[78].mxu1 %vm5671_vm6, %v6817_v59  ;;  %v7280_v31 = vshrl.u32 %v7279_v27, 7 }
 0x668   :  { %10110 = vmatpush3.bf16.msra.mxu0 %v10109_v61  ;;  %7386 = vmatprep.mubr.f32.mxu1 %v10523_v35 }
 0x669   :  { %10112 = vmatprep.subr.bf16.mxu0 %v10111_v43  ;;  %10130 = vmatpush1.bf16.msra.mxu1 %v10129_v12  ;;  %v7968_v43 = vld [vmem:[%s12779_s10] ss:$0 sm:$0xff]  ;;  %v7219_v12 = vld [vmem:[%s12778_s11 + $0x30] sm:$0xff]  ;;  %v7281_v28 = vsub.s32 0, %v7280_v31  ;;  %v7297_v25 = vsub.s32 4, %v7280_v31  ;;  %v7305_v5 = vsub.s32 6, %v7280_v31 }
 0x66a   :  { %10132 = vmatprep.subr.bf16.mxu1 %v10131_v37  ;;  %v10177_v37 = vpack.c.bf16 %v7227_v53, %v7219_v12  ;;  %v7309_v12 = vsub.s32 7, %v7280_v31 }
 0x66c   :  { %10114 = vmatpush3.bf16.msra.mxu0 %v10113_v39 }
 0x66d   :  { %10144 = vmatprep.subr.bf16.mxu0 %v10143_v29  ;;  %10134 = vmatpush1.bf16.msra.mxu1 %v10133_v60 }
 0x66e   :  { %10136 = vmatprep.subr.bf16.mxu1 %v10135_v4  ;;  %v7260_v4 = vld [vmem:[%s12778_s11 + $0x178] sm:$0xff] }
 0x66f   :  { %7137 = vmatmul.mubr.f32.vlgmr.msra.gmra.mrb[70].mxu0 %v6815_v40  ;;  %v10183_v30 = vpack.c.bf16 %v7260_v4, %v7252_v3 }
 0x670   :  { %7457 = vmatprep.mubr.f32.mxu0 %v10523_v35  ;;  %10146 = vmatpush1.bf16.msra.mxu0 %v10145_v52  ;;  %v7236_v52 = vld [vmem:[%s12778_s11 + $0xb8] sm:$0xff] }
 0x671   :  { %10148 = vmatprep.subr.bf16.mxu0 %v10147_v51  ;;  %10138 = vmatpush1.bf16.msra.mxu1 %v10137_v13  ;;  %v7233_v51 = vld [vmem:[%s12778_s11 + $0xa0] sm:$0xff]  ;;  %v10179_v60 = vpack.c.bf16 %v7244_v15, %v7236_v52  ;;  %v10167_v13 = vpack.c.bf16 %v7258_v19, %v7250_v41 }
 0x672   :  { %10140 = vmatprep.subr.bf16.mxu1 %v10139_v49  ;;  %v10165_v21 = vpack.c.bf16 %v7241_v16, %v7233_v51  ;;  %v7276_v49 = vld [vmem:[%s12778_s11 + $0x1f8] sm:$0xff] }
 0x674   :  { %10150 = vmatpush1.bf16.msra.mxu0 %v10149_v11  ;;  %v7243_v11 = vld [vmem:[%s12778_s11 + $0xf0] sm:$0xff] }
 0x675   :  { %10152 = vmatprep.subr.bf16.mxu0 %v10151_v54  ;;  %10142 = vmatpush1.bf16.msra.mxu1 %v10141_v34  ;;  %v10181_v22 = vpack.c.bf16 %v7243_v11, %v7235_v0  ;;  %v7257_v54 = vld [vmem:[%s12778_s11 + $0x160] sm:$0xff]  ;;  %v10187_v34 = vpack.c.bf16 %v7276_v49, %v7268_v44 }
 0x676   :  { %10160 = vmatprep.subr.bf16.mxu1 %v10159_v17  ;;  %v10169_v18 = vpack.c.bf16 %v7257_v54, %v7249_v50  ;;  %v7289_v17 = vsub.s32 2, %v7280_v31 }
 0x678   :  { %10154 = vmatpush1.bf16.msra.mxu0 %v10153_v9  ;;  %v7259_v9 = vld [vmem:[%s12778_s11 + $0x170] sm:$0xff] }
 0x679   :  { %10156 = vmatprep.subr.bf16.mxu0 %v10155_v8  ;;  %v10185_v38 = vpack.c.bf16 %v7259_v9, %v7251_v62  ;;  %v10171_v8 = vpack.c.bf16 %v7274_v23, %v7266_v20 }
 0x67c   :  { %10158 = vmatpush1.bf16.msra.mxu0 %v10157_v14 }
 0x67d   :  { %10176 = vmatprep.subr.bf16.mxu0 %v10175_v33  ;;  %v7277_v33 = vld [vmem:[%s12780_s12] sm:$0xff] }
 0x67e   :  { %v7298_v53 = vrot.slane %v7277_v33, %v7297_v25  ;;  %v7306_v42 = vrot.slane %v7277_v33, %v7305_v5  ;;  %v7310_v52 = vrot.slane %v7277_v33, %v7309_v12 }
 0x722   :  { %v8534_v10 = vpop.f32.mrb[68].mxu0 }
 0x723   :  { %v8535_v58 = vpop.f32.mrb[69].mxu0 }
 0x724   :  { %v8536_v61 = vadd.f32 %v8535_v58, %v8534_v10  ;;  %v7285_v10 = vsub.s32 1, %v7280_v31  ;;  %v7293_v58 = vsub.s32 3, %v7280_v31 }
 0x726   :  { %v6999_v59 = vadd.f32 %v8536_v61, %v7968_v43  ;;  %v7282_v61 = vrot.slane %v7277_v33, %v7281_v28  ;;  %v7290_v43 = vrot.slane %v7277_v33, %v7289_v17 }
 0x72a   :  { %v8569_v48 = vpop.f32.mrb[76].mxu1 }
 0x72b   :  { %v8570_v55 = vpop.f32.mrb[77].mxu1 }
 0x72c   :  { %v8571_v39 = vadd.f32 %v8570_v55, %v8569_v48  ;;  %v7286_v48 = vrot.slane %v7277_v33, %v7285_v10  ;;  %v7294_v55 = vrot.slane %v7277_v33, %v7293_v58 }
 0x72e   :  { %v7069_v40 = vadd.f32 %v8571_v39, %v6999_v59 }
 0x73a   :  { %v7208_v2 = vpop.f32.mrb[78].mxu1 }
 0x73b   :  { %v9538_v47 = vpop.f32.mrb[79].mxu1 }
 0x742   :  { %v8604_v1 = vpop.f32.mrb[70].mxu0 }
 0x743   :  { %v8605_v7 = vpop.f32.mrb[71].mxu0 }
 0x744   :  { %v8606_v57 = vadd.f32 %v8605_v7, %v8604_v1 }
 0x746   :  { %v7139_v29 = vadd.f32 %v8606_v57, %v7069_v40 }
 0x748   :  { %v7209_v36 = vadd.f32 %v7208_v2, %v7139_v29  ;;  %v7301_v29 = vsub.s32 5, %v7280_v31 }
 0x74a   :  { %v7212_v56 = vmax.f32 %v7209_v36, 0.0  ;;  %v7302_v24 = vrot.slane %v7277_v33, %v7301_v29 }
 0x74c   :  { %7970 = vmatmul.mubr.msk.f32.vlgmr.msra.gmra.mrb[80].mxu1 %vm5671_vm6, %v7212_v56  ;;  %7971 = vmatmul.mubr.msk.f32.vlgmr.msra.gmra.mrb[72].mxu0 %vm5671_vm6, %v7212_v56 }
 0x74d   :  { %10162 = vmatpush1.bf16.msra.mxu1 %v10161_v45  ;;  %10178 = vmatpush1.bf16.msra.mxu0 %v10177_v37 }
 0x74e   :  { %10164 = vmatprep.subr.bf16.mxu1 %v10163_v6  ;;  %10180 = vmatprep.subr.bf16.mxu0 %v10179_v60 }
 0x74f   :  { %7528 = vmatprep.mubr.f32.mxu1 %v10523_v35  ;;  %7599 = vmatprep.mubr.f32.mxu0 %v10523_v35  ;;  %v7267_v35 = vld [vmem:[%s12778_s11 + $0x1b0] sm:$0xff] }
 0x750   :  { %v10189_v14 = vpack.c.bf16 %v7275_v46, %v7267_v35 }
 0x751   :  { %10166 = vmatpush1.bf16.msra.mxu1 %v10165_v21  ;;  %10182 = vmatpush1.bf16.msra.mxu0 %v10181_v22 }
 0x752   :  { %10168 = vmatprep.subr.bf16.mxu1 %v10167_v13  ;;  %10184 = vmatprep.subr.bf16.mxu0 %v10183_v30 }
 0x755   :  { %10170 = vmatpush1.bf16.msra.mxu1 %v10169_v18  ;;  %10186 = vmatpush1.bf16.msra.mxu0 %v10185_v38 }
 0x756   :  { %10172 = vmatprep.subr.bf16.mxu1 %v10171_v8  ;;  %10188 = vmatprep.subr.bf16.mxu0 %v10187_v34 }
 0x759   :  { %10174 = vmatpush1.bf16.msra.mxu1 %v10173_v63  ;;  %10190 = vmatpush1.bf16.msra.mxu0 %v10189_v14 }
 0x75c   :  { %7972 = vmatmul.mubr.msk.f32.vlgmr.msra.gmra.mrb[82].mxu1 %vm5671_vm6, %v7212_v56  ;;  %7973 = vmatmul.mubr.msk.f32.vlgmr.msra.gmra.mrb[74].mxu0 %vm5671_vm6, %v7212_v56 }
 0x81f   :  { %v7388_v59 = vpop.f32.mrb[80].mxu1  ;;  %v7459_v39 = vpop.f32.mrb[72].mxu0 }
 0x820   :  { %v7389_v40 = vadd.f32 %v7388_v59, %v7282_v61  ;;  %v7460_v2 = vadd.f32 %v7459_v39, %v7290_v43  ;;  %v7390_v47 = vpop.f32.mrb[81].mxu1  ;;  %v7461_v1 = vpop.f32.mrb[73].mxu0 }
 0x821   :  { %v7391_v7 = vadd.f32 %v7390_v47, %v7286_v48  ;;  %v7462_v57 = vadd.f32 %v7461_v1, %v7294_v55 }
 0x822   :  { %7606 = vst [vmem:[%s12781_s13] sm:$0xff] %v7389_v40  ;;  %7608 = vst [vmem:[%s12781_s13 + $0x10] sm:$0xff] %v7460_v2 }
 0x823   :  { %7607 = vst [vmem:[%s12781_s13 + $0x8] sm:$0xff] %v7391_v7  ;;  %7609 = vst [vmem:[%s12781_s13 + $0x18] sm:$0xff] %v7462_v57 }
 0x82f   :  { %v7530_v15 = vpop.f32.mrb[82].mxu1  ;;  %v7601_v36 = vpop.f32.mrb[74].mxu0 }
 0x830   :  { %v7531_v45 = vadd.f32 %v7530_v15, %v7298_v53  ;;  %v7602_v37 = vadd.f32 %v7601_v36, %v7306_v42  ;;  %v7532_v51 = vpop.f32.mrb[83].mxu1  ;;  %v7603_v16 = vpop.f32.mrb[75].mxu0 }
 0x831   :  { %v7533_v56 = vadd.f32 %v7532_v51, %v7302_v24  ;;  %v7604_v6 = vadd.f32 %v7603_v16, %v7310_v52 }
 0x832   :  { %7610 = vst [vmem:[%s12781_s13 + $0x20] sm:$0xff] %v7531_v45  ;;  %7612 = vst [vmem:[%s12781_s13 + $0x30] sm:$0xff] %v7602_v37 }
 0x833   :  { %7611 = vst [vmem:[%s12781_s13 + $0x28] sm:$0xff] %v7533_v56  ;;  %7613 = vst [vmem:[%s12781_s13 + $0x38] sm:$0xff] %v7604_v6 }

</bundles_post_ra>
